<compile_context>
chip_gen: v7x
topology: tpu7x:2x2x1
jax: 0.10.0
libtpu: 0.0.40
codegen_flags: <defaults>
</compile_context>

<pallas_src>
import jax
import jax.numpy as jnp
from jax.experimental import pallas as pl
from jax.experimental.pallas import tpu as pltpu

# ---------------- configuration (small shapes consistent with the module) ------------
CONFIG = dict(window_size=4, hidden_dim=4, num_layers=1, dropout=0.1)
EMB = CONFIG['hidden_dim'] * 8        # LSTM input size == hidden size == 32
SEQ_LEN = 8                           # N sentences per document
NUM_DOCS = 16                         # independent documents batched into one call
DOCS_PER_BLOCK = 8                    # documents per grid step (fills the 8 sublanes)


# ---------------- fused Pallas kernel --------------------------------------------------
def make_discourse_kernel(ctx, n_seq, docs_blk, d, n_layers):
    H = d
    G = docs_blk
    N = n_seq
    NG = N * G
    H4 = 4 * H

    def kernel(x_ref, wih_ref, whh_ref, b_ref, wpT_ref, bp_ref, out_ref,
               enc_ref, pproj_ref, hs_ref):
        # x_ref:     (N, G, D)            time-major block of G documents
        # wih_ref:   (L, D, 4H)           transposed weight_ih_l (gate order i, f, g, o)
        # whh_ref:   (L, H, 4H)           transposed weight_hh_l
        # b_ref:     (L, 1, 4H)           bias_ih + bias_hh
        # wpT_ref:   (D, 1)               pre_pred weight, transposed
        # bp_ref:    (1, 1)               pre_pred bias
        # out_ref:   (N, G, D)
        # enc_ref:   (N*G, H)       scratch: pass-1 hidden states, time-major
        # pproj_ref: ((ctx-1+N)*G, 4H) scratch: layer-0 projections of the padded seq
        # hs_ref:    (ctx*N*G, H)   scratch: pass-2 hidden states, context-step major

        def run_layer(get_xp, whh, T, batch, out_scr):
            # One LSTM layer. get_xp(t) = x_t @ W_ih^T + b, shape (batch, 4H).
            # TODO(synk): stage whh in the MXU across the recurrence with
            #   pltpu.matmul_push_rhs / matmul_acc_lhs / matmul_pop; accumulator
            #   semantics differ between MRF (v5e/v6e) and MRB (v7x), so the portable
            #   jnp.dot path is kept here.
            h = jnp.zeros((batch, H), jnp.float32)
            c = jnp.zeros((batch, H), jnp.float32)
            for t in range(T):                      # static, fully unrolled recurrence
                gates = get_xp(t) + jnp.dot(h, whh, preferred_element_type=jnp.float32)
                sig = jax.nn.sigmoid(gates)         # full-(batch,4H) EUP ops, slice after
                th = jnp.tanh(gates)
                c = sig[:, H:2 * H] * c + sig[:, 0:H] * th[:, 2 * H:3 * H]
                h = sig[:, 3 * H:4 * H] * jnp.tanh(c)
                out_scr[t * batch:(t + 1) * batch, :] = h    # scratch-resident outputs

        def run_stacked(get_xp0, T, batch, out_scr):
            # Layer 0 consumes precomputed projections; deeper layers (if any) project
            # the previous layer's scratch-resident outputs with one batched matmul.
            run_layer(get_xp0, whh_ref[0], T, batch, out_scr)
            for l in range(1, n_layers):
                proj = (jnp.dot(out_scr[...], wih_ref[l],
                                preferred_element_type=jnp.float32) + b_ref[l])
                run_layer(lambda t: proj[t * batch:(t + 1) * batch],
                          whh_ref[l], T, batch, out_scr)

        # ---- pass 1: LSTM over the document (batch = G docs, time = N) --------------
        x_flat = x_ref[...].reshape(NG, H)
        proj1 = jnp.dot(x_flat, wih_ref[0],
                        preferred_element_type=jnp.float32) + b_ref[0]       # (NG, 4H)
        run_stacked(lambda t: proj1[t * G:(t + 1) * G], N, G, enc_ref)

        # ---- contextualize: zero-pad rows project exactly to the bias ---------------
        pad_rows = (ctx - 1) * G                                             # 24: 8-aligned
        pproj_ref[0:pad_rows, :] = jnp.broadcast_to(b_ref[0], (pad_rows, H4))
        pproj_ref[pad_rows:, :] = (
            jnp.dot(enc_ref[...], wih_ref[0], preferred_element_type=jnp.float32)
            + b_ref[0])

        # ---- pass 2: same LSTM over ctx-sized windows (batch = N*G windows) ----------
        # window i, context step t reads padded row i+t  ->  rows [t*G, t*G + N*G)
        run_stacked(lambda t: pproj_ref[t * G:t * G + NG, :], ctx, NG, hs_ref)

        # ---- attention pool: one-matmul scoring, softmax over ctx, weighted sum ------
        hs = hs_ref[...]                                                     # (ctx*NG, H)
        acts = (jnp.dot(hs, wpT_ref[...], preferred_element_type=jnp.float32)
                + bp_ref[...]).reshape(ctx, NG, 1)
        amax = jnp.max(acts, axis=0, keepdims=True)
        e = jnp.exp(acts - amax)
        attn = e / jnp.sum(e, axis=0, keepdims=True)
        pooled = jnp.sum(attn * hs.reshape(ctx, NG, H), axis=0)              # (NG, H)
        out_ref[...] = pooled.reshape(N, G, H).astype(out_ref.dtype)

    return kernel


# ---------------- wrapper --------------------------------------------------------------
def discourse_encoder_forward(sent_encodings, kparams,
                              ctx=CONFIG['window_size'],
                              docs_per_block=DOCS_PER_BLOCK):
    """sent_encodings: (B, N, D) -- B independent documents. Each document is processed
    exactly like the torch module's (1, N, D) forward; batching only fills MXU rows /
    sublanes and amortizes launch overhead."""
    B, N, D = sent_encodings.shape
    wih, whh, b, wpT, bp = kparams
    L, _, H4 = wih.shape
    G = min(docs_per_block, B)
    assert B % G == 0, "number of documents must be divisible by docs_per_block"
    num_blocks = B // G

    x_tm = jnp.transpose(sent_encodings, (1, 0, 2))            # (N, B, D), time-major

    out_tm = pl.pallas_call(
        make_discourse_kernel(ctx, N, G, D, L),
        out_shape=jax.ShapeDtypeStruct((N, B, D), jnp.float32),
        grid_spec=pltpu.PrefetchScalarGridSpec(
            num_scalar_prefetch=0,
            grid=(num_blocks,),
            in_specs=[
                pl.BlockSpec((N, G, D), lambda i: (0, i, 0)),   # doc block (streamed)
                pl.BlockSpec((L, D, H4), lambda i: (0, 0, 0)),  # weights: constant maps,
                pl.BlockSpec((L, D, H4), lambda i: (0, 0, 0)),  #   stay VMEM-resident
                pl.BlockSpec((L, 1, H4), lambda i: (0, 0, 0)),
                pl.BlockSpec((D, 1), lambda i: (0, 0)),
                pl.BlockSpec((1, 1), lambda i: (0, 0)),
            ],
            out_specs=pl.BlockSpec((N, G, D), lambda i: (0, i, 0)),
            scratch_shapes=[
                pltpu.VMEM((N * G, D), jnp.float32),                # pass-1 encodings
                pltpu.VMEM(((ctx - 1 + N) * G, H4), jnp.float32),   # padded projections
                pltpu.VMEM((ctx * N * G, D), jnp.float32),          # pass-2 hidden states
            ],
        ),
        compiler_params=pltpu.CompilerParams(
            dimension_semantics=("parallel",)),   # doc blocks shard over 2 TCs on v7x
    )(x_tm, wih, whh, b, wpT, bp)
    return jnp.transpose(out_tm, (1, 0, 2))                         # (B, N, D)


# ---------------- pure-JAX reference (follows the torch code structurally) -------------
def reference_forward(sent_encoding, params, ctx=CONFIG['window_size']):
    x = sent_encoding[0]                   # text.squeeze(0)-style, single document
    N, D = x.shape
    H = D

    def run(steps):                        # steps: list of per-time-step (B, D) arrays
        cur = steps
        for layer in params['layers']:
            bias = layer['b_ih'] + layer['b_hh']
            B = cur[0].shape[0]
            h = jnp.zeros((B, H), jnp.float32)
            c = jnp.zeros((B, H), jnp.float32)
            outs = []
            for x_t in cur:
                gates = x_t @ layer['w_ih'].T + h @ layer['w_hh'].T + bias
                i_g = jax.nn.sigmoid(gates[:, :H])
                f_g = jax.nn.sigmoid(gates[:, H:2 * H])
                g_g = jnp.tanh(gates[:, 2 * H:3 * H])
                o_g = jax.nn.sigmoid(gates[:, 3 * H:])
                c = f_g * c + i_g * g_g
                h = o_g * jnp.tanh(c)
                outs.append(h)
            cur = outs
        return cur

    enc = jnp.concatenate(run([x[t:t + 1] for t in range(N)]), axis=0)            # (N, H)
    padded = jnp.concatenate([jnp.zeros((ctx - 1, D), jnp.float32), enc], axis=0)
    windows = jnp.stack([padded[i:i + ctx] for i in range(N)], axis=0)            # (N, ctx, D)
    inner = jnp.stack(run([windows[:, t, :] for t in range(ctx)]), axis=0)        # (ctx, N, H)
    act = jnp.einsum('tnh,h->tn', inner, params['w_pred'][0])[..., None] + params['b_pred'][0]
    attn = jax.nn.softmax(act, axis=0)
    return jnp.sum(attn * inner, axis=0)                                          # (N, H)


# ---------------- deterministic parameter init (torch layout) --------------------------
def init_torch_style_params(key, num_layers, d):
    h = d
    scale = 0.1
    keys = jax.random.split(key, 4 * num_layers + 1)
    layers = []
    for l in range(num_layers):
        layers.append(dict(
            w_ih=scale * jax.random.normal(keys[4 * l + 0], (4 * h, d), jnp.float32),
            w_hh=scale * jax.random.normal(keys[4 * l + 1], (4 * h, h), jnp.float32),
            b_ih=scale * jax.random.normal(keys[4 * l + 2], (4 * h,), jnp.float32),
            b_hh=scale * jax.random.normal(keys[4 * l + 3], (4 * h,), jnp.float32),
        ))
    w_pred = scale * jax.random.normal(keys[-1], (1, d), jnp.float32)
    b_pred = jnp.zeros((1,), jnp.float32)          # module: pre_pred.bias.data.fill_(0)
    return dict(layers=layers, w_pred=w_pred, b_pred=b_pred)


def pack_kernel_params(params):
    # NOTE: bf16 weight casting (v6e/v7x MXU path) deliberately not applied to keep the
    # strict f32 1e-3 correctness check; it is a one-line change here if desired.
    wih = jnp.stack([l['w_ih'].T for l in params['layers']], axis=0)              # (L, D, 4H)
    whh = jnp.stack([l['w_hh'].T for l in params['layers']], axis=0)              # (L, H, 4H)
    b = jnp.stack([(l['b_ih'] + l['b_hh'])[None, :] for l in params['layers']],
                  axis=0)                                                         # (L, 1, 4H)
    wpT = params['w_pred'].T                                                      # (D, 1)
    bp = params['b_pred'].reshape(1, 1)                                           # (1, 1)
    return wih, whh, b, wpT, bp


if __name__ == "__main__":
    key = jax.random.PRNGKey(0)
    pkey, xkey = jax.random.split(key)
    params = init_torch_style_params(pkey, CONFIG['num_layers'], EMB)
    docs = jax.random.normal(xkey, (NUM_DOCS, SEQ_LEN, EMB), jnp.float32)

    out = jax.block_until_ready(
        discourse_encoder_forward(docs, pack_kernel_params(params)))
    assert out.shape == (NUM_DOCS, SEQ_LEN, EMB), out.shape

    ref = jnp.stack([reference_forward(docs[i:i + 1], params)
                     for i in range(NUM_DOCS)], axis=0)
    ref = jax.block_until_ready(ref)
    assert jnp.allclose(out, ref, atol=1e-3, rtol=1e-3), \
        float(jnp.max(jnp.abs(out - ref)))
    print("KERNEL_OK")
</pallas_src>

<mosaic_0001>
module attributes {stable_mosaic.version = 11 : i64} {
  func.func @kernel(%arg0: i32, %arg1: memref<8x8x32xf32, #tpu.memory_space<vmem>>, %arg2: memref<1x32x128xf32, #tpu.memory_space<vmem>>, %arg3: memref<1x32x128xf32, #tpu.memory_space<vmem>>, %arg4: memref<1x1x128xf32, #tpu.memory_space<vmem>>, %arg5: memref<32x1xf32, #tpu.memory_space<vmem>>, %arg6: memref<1x1xf32, #tpu.memory_space<vmem>>, %arg7: memref<8x8x32xf32, #tpu.memory_space<vmem>>, %arg8: memref<64x32xf32, #tpu.memory_space<vmem>>, %arg9: memref<88x128xf32, #tpu.memory_space<vmem>>, %arg10: memref<256x32xf32, #tpu.memory_space<vmem>>) attributes {dimension_semantics = [#tpu.dimension_semantics<parallel>], iteration_bounds = array<i64: 2>, scalar_prefetch = 0 : i64, scratch_operands = 3 : i64, tpu.core_type = #tpu.core_type<tc>, window_params = [{transform_indices = @transform_0, window_bounds = array<i64: 8, 8, 32>}, {pipeline_mode = #tpu.pipeline_mode<synchronous>, transform_indices = @transform_1, window_bounds = array<i64: 1, 32, 128>}, {pipeline_mode = #tpu.pipeline_mode<synchronous>, transform_indices = @transform_2, window_bounds = array<i64: 1, 32, 128>}, {pipeline_mode = #tpu.pipeline_mode<synchronous>, transform_indices = @transform_3, window_bounds = array<i64: 1, 1, 128>}, {pipeline_mode = #tpu.pipeline_mode<synchronous>, transform_indices = @transform_4, window_bounds = array<i64: 32, 1>}, {pipeline_mode = #tpu.pipeline_mode<synchronous>, transform_indices = @transform_5, window_bounds = array<i64: 1, 1>}, {transform_indices = @transform_6, window_bounds = array<i64: 8, 8, 32>}]} {
    %c0 = arith.constant 0 : index
    %c0_0 = arith.constant 0 : index
    %c0_1 = arith.constant 0 : index
    %0 = vector.load %arg1[%c0, %c0_0, %c0_1] : memref<8x8x32xf32, #tpu.memory_space<vmem>>, vector<8x8x32xf32>
    %1 = vector.shape_cast %0 : vector<8x8x32xf32> to vector<64x32xf32>
    %c0_2 = arith.constant 0 : index
    %c0_3 = arith.constant 0 : index
    %c0_4 = arith.constant 0 : index
    %2 = vector.load %arg2[%c0_2, %c0_3, %c0_4] : memref<1x32x128xf32, #tpu.memory_space<vmem>>, vector<1x32x128xf32>
    %3 = vector.shape_cast %2 : vector<1x32x128xf32> to vector<32x128xf32>
    %cst = arith.constant dense<0.000000e+00> : vector<64x128xf32>
    %4 = tpu.matmul %1, %3, %cst {dimension_numbers = #tpu.dot_dimension_numbers<[1], [0], [0], [1], [0, 0, 1, 1], [], []>} : vector<64x32xf32>, vector<32x128xf32>, vector<64x128xf32> -> vector<64x128xf32>
    %c0_5 = arith.constant 0 : index
    %c0_6 = arith.constant 0 : index
    %c0_7 = arith.constant 0 : index
    %5 = vector.load %arg4[%c0_5, %c0_6, %c0_7] : memref<1x1x128xf32, #tpu.memory_space<vmem>>, vector<1x1x128xf32>
    %6 = vector.shape_cast %5 : vector<1x1x128xf32> to vector<1x128xf32>
    %7 = vector.broadcast %6 : vector<1x128xf32> to vector<64x128xf32>
    %8 = arith.addf %4, %7 : vector<64x128xf32>
    %c0_8 = arith.constant 0 : index
    %c0_9 = arith.constant 0 : index
    %c0_10 = arith.constant 0 : index
    %9 = vector.load %arg3[%c0_8, %c0_9, %c0_10] : memref<1x32x128xf32, #tpu.memory_space<vmem>>, vector<1x32x128xf32>
    %10 = vector.shape_cast %9 : vector<1x32x128xf32> to vector<32x128xf32>
    %cst_11 = arith.constant 0.000000e+00 : f32
    %11 = vector.broadcast %cst_11 : f32 to vector<8x32xf32>
    %cst_12 = arith.constant 0.000000e+00 : f32
    %12 = vector.broadcast %cst_12 : f32 to vector<8x32xf32>
    %13 = vector.extract_strided_slice %8 {offsets = [0, 0], sizes = [8, 128], strides = [1, 1]} : vector<64x128xf32> to vector<8x128xf32>
    %cst_13 = arith.constant dense<0.000000e+00> : vector<8x128xf32>
    %14 = tpu.matmul %11, %10, %cst_13 {dimension_numbers = #tpu.dot_dimension_numbers<[1], [0], [0], [1], [0, 0, 1, 1], [], []>} : vector<8x32xf32>, vector<32x128xf32>, vector<8x128xf32> -> vector<8x128xf32>
    %15 = arith.addf %13, %14 : vector<8x128xf32>
    %16 = arith.negf %15 : vector<8x128xf32>
    %17 = math.exp %16 : vector<8x128xf32>
    %cst_14 = arith.constant 1.000000e+00 : f32
    %18 = vector.broadcast %cst_14 : f32 to vector<8x128xf32>
    %19 = arith.addf %18, %17 : vector<8x128xf32>
    %20 = arith.divf %18, %19 : vector<8x128xf32>
    %21 = math.tanh %15 : vector<8x128xf32>
    %22 = vector.extract_strided_slice %20 {offsets = [0, 32], sizes = [8, 32], strides = [1, 1]} : vector<8x128xf32> to vector<8x32xf32>
    %23 = arith.mulf %22, %12 : vector<8x32xf32>
    %24 = vector.extract_strided_slice %20 {offsets = [0, 0], sizes = [8, 32], strides = [1, 1]} : vector<8x128xf32> to vector<8x32xf32>
    %25 = vector.extract_strided_slice %21 {offsets = [0, 64], sizes = [8, 32], strides = [1, 1]} : vector<8x128xf32> to vector<8x32xf32>
    %26 = arith.mulf %24, %25 : vector<8x32xf32>
    %27 = arith.addf %23, %26 : vector<8x32xf32>
    %28 = vector.extract_strided_slice %20 {offsets = [0, 96], sizes = [8, 32], strides = [1, 1]} : vector<8x128xf32> to vector<8x32xf32>
    %29 = math.tanh %27 : vector<8x32xf32>
    %30 = arith.mulf %28, %29 : vector<8x32xf32>
    %c0_15 = arith.constant 0 : index
    %c0_16 = arith.constant 0 : index
    %31 = vector.load %arg8[%c0_15, %c0_16] : memref<64x32xf32, #tpu.memory_space<vmem>>, vector<8x32xf32>
    tpu.vector_store %arg8[%c0_15, %c0_16], %30 {strides = array<i32>} : memref<64x32xf32, #tpu.memory_space<vmem>>, vector<8x32xf32>,
    %32 = vector.extract_strided_slice %8 {offsets = [8, 0], sizes = [8, 128], strides = [1, 1]} : vector<64x128xf32> to vector<8x128xf32>
    %cst_17 = arith.constant dense<0.000000e+00> : vector<8x128xf32>
    %33 = tpu.matmul %30, %10, %cst_17 {dimension_numbers = #tpu.dot_dimension_numbers<[1], [0], [0], [1], [0, 0, 1, 1], [], []>} : vector<8x32xf32>, vector<32x128xf32>, vector<8x128xf32> -> vector<8x128xf32>
    %34 = arith.addf %32, %33 : vector<8x128xf32>
    %35 = arith.negf %34 : vector<8x128xf32>
    %36 = math.exp %35 : vector<8x128xf32>
    %cst_18 = arith.constant 1.000000e+00 : f32
    %37 = vector.broadcast %cst_18 : f32 to vector<8x128xf32>
    %38 = arith.addf %37, %36 : vector<8x128xf32>
    %39 = arith.divf %37, %38 : vector<8x128xf32>
    %40 = math.tanh %34 : vector<8x128xf32>
    %41 = vector.extract_strided_slice %39 {offsets = [0, 32], sizes = [8, 32], strides = [1, 1]} : vector<8x128xf32> to vector<8x32xf32>
    %42 = arith.mulf %41, %27 : vector<8x32xf32>
    %43 = vector.extract_strided_slice %39 {offsets = [0, 0], sizes = [8, 32], strides = [1, 1]} : vector<8x128xf32> to vector<8x32xf32>
    %44 = vector.extract_strided_slice %40 {offsets = [0, 64], sizes = [8, 32], strides = [1, 1]} : vector<8x128xf32> to vector<8x32xf32>
    %45 = arith.mulf %43, %44 : vector<8x32xf32>
    %46 = arith.addf %42, %45 : vector<8x32xf32>
    %47 = vector.extract_strided_slice %39 {offsets = [0, 96], sizes = [8, 32], strides = [1, 1]} : vector<8x128xf32> to vector<8x32xf32>
    %48 = math.tanh %46 : vector<8x32xf32>
    %49 = arith.mulf %47, %48 : vector<8x32xf32>
    %c8 = arith.constant 8 : index
    %c0_19 = arith.constant 0 : index
    %50 = vector.load %arg8[%c8, %c0_19] : memref<64x32xf32, #tpu.memory_space<vmem>>, vector<8x32xf32>
    tpu.vector_store %arg8[%c8, %c0_19], %49 {strides = array<i32>} : memref<64x32xf32, #tpu.memory_space<vmem>>, vector<8x32xf32>,
    %51 = vector.extract_strided_slice %8 {offsets = [16, 0], sizes = [8, 128], strides = [1, 1]} : vector<64x128xf32> to vector<8x128xf32>
    %cst_20 = arith.constant dense<0.000000e+00> : vector<8x128xf32>
    %52 = tpu.matmul %49, %10, %cst_20 {dimension_numbers = #tpu.dot_dimension_numbers<[1], [0], [0], [1], [0, 0, 1, 1], [], []>} : vector<8x32xf32>, vector<32x128xf32>, vector<8x128xf32> -> vector<8x128xf32>
    %53 = arith.addf %51, %52 : vector<8x128xf32>
    %54 = arith.negf %53 : vector<8x128xf32>
    %55 = math.exp %54 : vector<8x128xf32>
    %cst_21 = arith.constant 1.000000e+00 : f32
    %56 = vector.broadcast %cst_21 : f32 to vector<8x128xf32>
    %57 = arith.addf %56, %55 : vector<8x128xf32>
    %58 = arith.divf %56, %57 : vector<8x128xf32>
    %59 = math.tanh %53 : vector<8x128xf32>
    %60 = vector.extract_strided_slice %58 {offsets = [0, 32], sizes = [8, 32], strides = [1, 1]} : vector<8x128xf32> to vector<8x32xf32>
    %61 = arith.mulf %60, %46 : vector<8x32xf32>
    %62 = vector.extract_strided_slice %58 {offsets = [0, 0], sizes = [8, 32], strides = [1, 1]} : vector<8x128xf32> to vector<8x32xf32>
    %63 = vector.extract_strided_slice %59 {offsets = [0, 64], sizes = [8, 32], strides = [1, 1]} : vector<8x128xf32> to vector<8x32xf32>
    %64 = arith.mulf %62, %63 : vector<8x32xf32>
    %65 = arith.addf %61, %64 : vector<8x32xf32>
    %66 = vector.extract_strided_slice %58 {offsets = [0, 96], sizes = [8, 32], strides = [1, 1]} : vector<8x128xf32> to vector<8x32xf32>
    %67 = math.tanh %65 : vector<8x32xf32>
    %68 = arith.mulf %66, %67 : vector<8x32xf32>
    %c16 = arith.constant 16 : index
    %c0_22 = arith.constant 0 : index
    %69 = vector.load %arg8[%c16, %c0_22] : memref<64x32xf32, #tpu.memory_space<vmem>>, vector<8x32xf32>
    tpu.vector_store %arg8[%c16, %c0_22], %68 {strides = array<i32>} : memref<64x32xf32, #tpu.memory_space<vmem>>, vector<8x32xf32>,
    %70 = vector.extract_strided_slice %8 {offsets = [24, 0], sizes = [8, 128], strides = [1, 1]} : vector<64x128xf32> to vector<8x128xf32>
    %cst_23 = arith.constant dense<0.000000e+00> : vector<8x128xf32>
    %71 = tpu.matmul %68, %10, %cst_23 {dimension_numbers = #tpu.dot_dimension_numbers<[1], [0], [0], [1], [0, 0, 1, 1], [], []>} : vector<8x32xf32>, vector<32x128xf32>, vector<8x128xf32> -> vector<8x128xf32>
    %72 = arith.addf %70, %71 : vector<8x128xf32>
    %73 = arith.negf %72 : vector<8x128xf32>
    %74 = math.exp %73 : vector<8x128xf32>
    %cst_24 = arith.constant 1.000000e+00 : f32
    %75 = vector.broadcast %cst_24 : f32 to vector<8x128xf32>
    %76 = arith.addf %75, %74 : vector<8x128xf32>
    %77 = arith.divf %75, %76 : vector<8x128xf32>
    %78 = math.tanh %72 : vector<8x128xf32>
    %79 = vector.extract_strided_slice %77 {offsets = [0, 32], sizes = [8, 32], strides = [1, 1]} : vector<8x128xf32> to vector<8x32xf32>
    %80 = arith.mulf %79, %65 : vector<8x32xf32>
    %81 = vector.extract_strided_slice %77 {offsets = [0, 0], sizes = [8, 32], strides = [1, 1]} : vector<8x128xf32> to vector<8x32xf32>
    %82 = vector.extract_strided_slice %78 {offsets = [0, 64], sizes = [8, 32], strides = [1, 1]} : vector<8x128xf32> to vector<8x32xf32>
    %83 = arith.mulf %81, %82 : vector<8x32xf32>
    %84 = arith.addf %80, %83 : vector<8x32xf32>
    %85 = vector.extract_strided_slice %77 {offsets = [0, 96], sizes = [8, 32], strides = [1, 1]} : vector<8x128xf32> to vector<8x32xf32>
    %86 = math.tanh %84 : vector<8x32xf32>
    %87 = arith.mulf %85, %86 : vector<8x32xf32>
    %c24 = arith.constant 24 : index
    %c0_25 = arith.constant 0 : index
    %88 = vector.load %arg8[%c24, %c0_25] : memref<64x32xf32, #tpu.memory_space<vmem>>, vector<8x32xf32>
    tpu.vector_store %arg8[%c24, %c0_25], %87 {strides = array<i32>} : memref<64x32xf32, #tpu.memory_space<vmem>>, vector<8x32xf32>,
    %89 = vector.extract_strided_slice %8 {offsets = [32, 0], sizes = [8, 128], strides = [1, 1]} : vector<64x128xf32> to vector<8x128xf32>
    %cst_26 = arith.constant dense<0.000000e+00> : vector<8x128xf32>
    %90 = tpu.matmul %87, %10, %cst_26 {dimension_numbers = #tpu.dot_dimension_numbers<[1], [0], [0], [1], [0, 0, 1, 1], [], []>} : vector<8x32xf32>, vector<32x128xf32>, vector<8x128xf32> -> vector<8x128xf32>
    %91 = arith.addf %89, %90 : vector<8x128xf32>
    %92 = arith.negf %91 : vector<8x128xf32>
    %93 = math.exp %92 : vector<8x128xf32>
    %cst_27 = arith.constant 1.000000e+00 : f32
    %94 = vector.broadcast %cst_27 : f32 to vector<8x128xf32>
    %95 = arith.addf %94, %93 : vector<8x128xf32>
    %96 = arith.divf %94, %95 : vector<8x128xf32>
    %97 = math.tanh %91 : vector<8x128xf32>
    %98 = vector.extract_strided_slice %96 {offsets = [0, 32], sizes = [8, 32], strides = [1, 1]} : vector<8x128xf32> to vector<8x32xf32>
    %99 = arith.mulf %98, %84 : vector<8x32xf32>
    %100 = vector.extract_strided_slice %96 {offsets = [0, 0], sizes = [8, 32], strides = [1, 1]} : vector<8x128xf32> to vector<8x32xf32>
    %101 = vector.extract_strided_slice %97 {offsets = [0, 64], sizes = [8, 32], strides = [1, 1]} : vector<8x128xf32> to vector<8x32xf32>
    %102 = arith.mulf %100, %101 : vector<8x32xf32>
    %103 = arith.addf %99, %102 : vector<8x32xf32>
    %104 = vector.extract_strided_slice %96 {offsets = [0, 96], sizes = [8, 32], strides = [1, 1]} : vector<8x128xf32> to vector<8x32xf32>
    %105 = math.tanh %103 : vector<8x32xf32>
    %106 = arith.mulf %104, %105 : vector<8x32xf32>
    %c32 = arith.constant 32 : index
    %c0_28 = arith.constant 0 : index
    %107 = vector.load %arg8[%c32, %c0_28] : memref<64x32xf32, #tpu.memory_space<vmem>>, vector<8x32xf32>
    tpu.vector_store %arg8[%c32, %c0_28], %106 {strides = array<i32>} : memref<64x32xf32, #tpu.memory_space<vmem>>, vector<8x32xf32>,
    %108 = vector.extract_strided_slice %8 {offsets = [40, 0], sizes = [8, 128], strides = [1, 1]} : vector<64x128xf32> to vector<8x128xf32>
    %cst_29 = arith.constant dense<0.000000e+00> : vector<8x128xf32>
    %109 = tpu.matmul %106, %10, %cst_29 {dimension_numbers = #tpu.dot_dimension_numbers<[1], [0], [0], [1], [0, 0, 1, 1], [], []>} : vector<8x32xf32>, vector<32x128xf32>, vector<8x128xf32> -> vector<8x128xf32>
    %110 = arith.addf %108, %109 : vector<8x128xf32>
    %111 = arith.negf %110 : vector<8x128xf32>
    %112 = math.exp %111 : vector<8x128xf32>
    %cst_30 = arith.constant 1.000000e+00 : f32
    %113 = vector.broadcast %cst_30 : f32 to vector<8x128xf32>
    %114 = arith.addf %113, %112 : vector<8x128xf32>
    %115 = arith.divf %113, %114 : vector<8x128xf32>
    %116 = math.tanh %110 : vector<8x128xf32>
    %117 = vector.extract_strided_slice %115 {offsets = [0, 32], sizes = [8, 32], strides = [1, 1]} : vector<8x128xf32> to vector<8x32xf32>
    %118 = arith.mulf %117, %103 : vector<8x32xf32>
    %119 = vector.extract_strided_slice %115 {offsets = [0, 0], sizes = [8, 32], strides = [1, 1]} : vector<8x128xf32> to vector<8x32xf32>
    %120 = vector.extract_strided_slice %116 {offsets = [0, 64], sizes = [8, 32], strides = [1, 1]} : vector<8x128xf32> to vector<8x32xf32>
    %121 = arith.mulf %119, %120 : vector<8x32xf32>
    %122 = arith.addf %118, %121 : vector<8x32xf32>
    %123 = vector.extract_strided_slice %115 {offsets = [0, 96], sizes = [8, 32], strides = [1, 1]} : vector<8x128xf32> to vector<8x32xf32>
    %124 = math.tanh %122 : vector<8x32xf32>
    %125 = arith.mulf %123, %124 : vector<8x32xf32>
    %c40 = arith.constant 40 : index
    %c0_31 = arith.constant 0 : index
    %126 = vector.load %arg8[%c40, %c0_31] : memref<64x32xf32, #tpu.memory_space<vmem>>, vector<8x32xf32>
    tpu.vector_store %arg8[%c40, %c0_31], %125 {strides = array<i32>} : memref<64x32xf32, #tpu.memory_space<vmem>>, vector<8x32xf32>,
    %127 = vector.extract_strided_slice %8 {offsets = [48, 0], sizes = [8, 128], strides = [1, 1]} : vector<64x128xf32> to vector<8x128xf32>
    %cst_32 = arith.constant dense<0.000000e+00> : vector<8x128xf32>
    %128 = tpu.matmul %125, %10, %cst_32 {dimension_numbers = #tpu.dot_dimension_numbers<[1], [0], [0], [1], [0, 0, 1, 1], [], []>} : vector<8x32xf32>, vector<32x128xf32>, vector<8x128xf32> -> vector<8x128xf32>
    %129 = arith.addf %127, %128 : vector<8x128xf32>
    %130 = arith.negf %129 : vector<8x128xf32>
    %131 = math.exp %130 : vector<8x128xf32>
    %cst_33 = arith.constant 1.000000e+00 : f32
    %132 = vector.broadcast %cst_33 : f32 to vector<8x128xf32>
    %133 = arith.addf %132, %131 : vector<8x128xf32>
    %134 = arith.divf %132, %133 : vector<8x128xf32>
    %135 = math.tanh %129 : vector<8x128xf32>
    %136 = vector.extract_strided_slice %134 {offsets = [0, 32], sizes = [8, 32], strides = [1, 1]} : vector<8x128xf32> to vector<8x32xf32>
    %137 = arith.mulf %136, %122 : vector<8x32xf32>
    %138 = vector.extract_strided_slice %134 {offsets = [0, 0], sizes = [8, 32], strides = [1, 1]} : vector<8x128xf32> to vector<8x32xf32>
    %139 = vector.extract_strided_slice %135 {offsets = [0, 64], sizes = [8, 32], strides = [1, 1]} : vector<8x128xf32> to vector<8x32xf32>
    %140 = arith.mulf %138, %139 : vector<8x32xf32>
    %141 = arith.addf %137, %140 : vector<8x32xf32>
    %142 = vector.extract_strided_slice %134 {offsets = [0, 96], sizes = [8, 32], strides = [1, 1]} : vector<8x128xf32> to vector<8x32xf32>
    %143 = math.tanh %141 : vector<8x32xf32>
    %144 = arith.mulf %142, %143 : vector<8x32xf32>
    %c48 = arith.constant 48 : index
    %c0_34 = arith.constant 0 : index
    %145 = vector.load %arg8[%c48, %c0_34] : memref<64x32xf32, #tpu.memory_space<vmem>>, vector<8x32xf32>
    tpu.vector_store %arg8[%c48, %c0_34], %144 {strides = array<i32>} : memref<64x32xf32, #tpu.memory_space<vmem>>, vector<8x32xf32>,
    %146 = vector.extract_strided_slice %8 {offsets = [56, 0], sizes = [8, 128], strides = [1, 1]} : vector<64x128xf32> to vector<8x128xf32>
    %cst_35 = arith.constant dense<0.000000e+00> : vector<8x128xf32>
    %147 = tpu.matmul %144, %10, %cst_35 {dimension_numbers = #tpu.dot_dimension_numbers<[1], [0], [0], [1], [0, 0, 1, 1], [], []>} : vector<8x32xf32>, vector<32x128xf32>, vector<8x128xf32> -> vector<8x128xf32>
    %148 = arith.addf %146, %147 : vector<8x128xf32>
    %149 = arith.negf %148 : vector<8x128xf32>
    %150 = math.exp %149 : vector<8x128xf32>
    %cst_36 = arith.constant 1.000000e+00 : f32
    %151 = vector.broadcast %cst_36 : f32 to vector<8x128xf32>
    %152 = arith.addf %151, %150 : vector<8x128xf32>
    %153 = arith.divf %151, %152 : vector<8x128xf32>
    %154 = math.tanh %148 : vector<8x128xf32>
    %155 = vector.extract_strided_slice %153 {offsets = [0, 32], sizes = [8, 32], strides = [1, 1]} : vector<8x128xf32> to vector<8x32xf32>
    %156 = arith.mulf %155, %141 : vector<8x32xf32>
    %157 = vector.extract_strided_slice %153 {offsets = [0, 0], sizes = [8, 32], strides = [1, 1]} : vector<8x128xf32> to vector<8x32xf32>
    %158 = vector.extract_strided_slice %154 {offsets = [0, 64], sizes = [8, 32], strides = [1, 1]} : vector<8x128xf32> to vector<8x32xf32>
    %159 = arith.mulf %157, %158 : vector<8x32xf32>
    %160 = arith.addf %156, %159 : vector<8x32xf32>
    %161 = vector.extract_strided_slice %153 {offsets = [0, 96], sizes = [8, 32], strides = [1, 1]} : vector<8x128xf32> to vector<8x32xf32>
    %162 = math.tanh %160 : vector<8x32xf32>
    %163 = arith.mulf %161, %162 : vector<8x32xf32>
    %c56 = arith.constant 56 : index
    %c0_37 = arith.constant 0 : index
    %164 = vector.load %arg8[%c56, %c0_37] : memref<64x32xf32, #tpu.memory_space<vmem>>, vector<8x32xf32>
    tpu.vector_store %arg8[%c56, %c0_37], %163 {strides = array<i32>} : memref<64x32xf32, #tpu.memory_space<vmem>>, vector<8x32xf32>,
    %c0_38 = arith.constant 0 : index
    %c0_39 = arith.constant 0 : index
    %c0_40 = arith.constant 0 : index
    %165 = vector.load %arg4[%c0_38, %c0_39, %c0_40] : memref<1x1x128xf32, #tpu.memory_space<vmem>>, vector<1x1x128xf32>
    %166 = vector.shape_cast %165 : vector<1x1x128xf32> to vector<1x128xf32>
    %167 = vector.shape_cast %166 : vector<1x128xf32> to vector<1x128xf32>
    %168 = vector.broadcast %167 : vector<1x128xf32> to vector<24x128xf32>
    %c0_41 = arith.constant 0 : index
    %c0_42 = arith.constant 0 : index
    %169 = vector.load %arg9[%c0_41, %c0_42] : memref<88x128xf32, #tpu.memory_space<vmem>>, vector<24x128xf32>
    tpu.vector_store %arg9[%c0_41, %c0_42], %168 {strides = array<i32>} : memref<88x128xf32, #tpu.memory_space<vmem>>, vector<24x128xf32>,
    %c0_43 = arith.constant 0 : index
    %c0_44 = arith.constant 0 : index
    %170 = vector.load %arg8[%c0_43, %c0_44] : memref<64x32xf32, #tpu.memory_space<vmem>>, vector<64x32xf32>
    %c0_45 = arith.constant 0 : index
    %c0_46 = arith.constant 0 : index
    %c0_47 = arith.constant 0 : index
    %171 = vector.load %arg2[%c0_45, %c0_46, %c0_47] : memref<1x32x128xf32, #tpu.memory_space<vmem>>, vector<1x32x128xf32>
    %172 = vector.shape_cast %171 : vector<1x32x128xf32> to vector<32x128xf32>
    %cst_48 = arith.constant dense<0.000000e+00> : vector<64x128xf32>
    %173 = tpu.matmul %170, %172, %cst_48 {dimension_numbers = #tpu.dot_dimension_numbers<[1], [0], [0], [1], [0, 0, 1, 1], [], []>} : vector<64x32xf32>, vector<32x128xf32>, vector<64x128xf32> -> vector<64x128xf32>
    %c0_49 = arith.constant 0 : index
    %c0_50 = arith.constant 0 : index
    %c0_51 = arith.constant 0 : index
    %174 = vector.load %arg4[%c0_49, %c0_50, %c0_51] : memref<1x1x128xf32, #tpu.memory_space<vmem>>, vector<1x1x128xf32>
    %175 = vector.shape_cast %174 : vector<1x1x128xf32> to vector<1x128xf32>
    %176 = vector.broadcast %175 : vector<1x128xf32> to vector<64x128xf32>
    %177 = arith.addf %173, %176 : vector<64x128xf32>
    %c24_52 = arith.constant 24 : index
    %c0_53 = arith.constant 0 : index
    %178 = vector.load %arg9[%c24_52, %c0_53] : memref<88x128xf32, #tpu.memory_space<vmem>>, vector<64x128xf32>
    tpu.vector_store %arg9[%c24_52, %c0_53], %177 {strides = array<i32>} : memref<88x128xf32, #tpu.memory_space<vmem>>, vector<64x128xf32>,
    %c0_54 = arith.constant 0 : index
    %c0_55 = arith.constant 0 : index
    %c0_56 = arith.constant 0 : index
    %179 = vector.load %arg3[%c0_54, %c0_55, %c0_56] : memref<1x32x128xf32, #tpu.memory_space<vmem>>, vector<1x32x128xf32>
    %180 = vector.shape_cast %179 : vector<1x32x128xf32> to vector<32x128xf32>
    %cst_57 = arith.constant 0.000000e+00 : f32
    %181 = vector.broadcast %cst_57 : f32 to vector<64x32xf32>
    %cst_58 = arith.constant 0.000000e+00 : f32
    %182 = vector.broadcast %cst_58 : f32 to vector<64x32xf32>
    %c0_59 = arith.constant 0 : index
    %c0_60 = arith.constant 0 : index
    %183 = vector.load %arg9[%c0_59, %c0_60] : memref<88x128xf32, #tpu.memory_space<vmem>>, vector<64x128xf32>
    %cst_61 = arith.constant dense<0.000000e+00> : vector<64x128xf32>
    %184 = tpu.matmul %181, %180, %cst_61 {dimension_numbers = #tpu.dot_dimension_numbers<[1], [0], [0], [1], [0, 0, 1, 1], [], []>} : vector<64x32xf32>, vector<32x128xf32>, vector<64x128xf32> -> vector<64x128xf32>
    %185 = arith.addf %183, %184 : vector<64x128xf32>
    %186 = arith.negf %185 : vector<64x128xf32>
    %187 = math.exp %186 : vector<64x128xf32>
    %cst_62 = arith.constant 1.000000e+00 : f32
    %188 = vector.broadcast %cst_62 : f32 to vector<64x128xf32>
    %189 = arith.addf %188, %187 : vector<64x128xf32>
    %190 = arith.divf %188, %189 : vector<64x128xf32>
    %191 = math.tanh %185 : vector<64x128xf32>
    %192 = vector.extract_strided_slice %190 {offsets = [0, 32], sizes = [64, 32], strides = [1, 1]} : vector<64x128xf32> to vector<64x32xf32>
    %193 = arith.mulf %192, %182 : vector<64x32xf32>
    %194 = vector.extract_strided_slice %190 {offsets = [0, 0], sizes = [64, 32], strides = [1, 1]} : vector<64x128xf32> to vector<64x32xf32>
    %195 = vector.extract_strided_slice %191 {offsets = [0, 64], sizes = [64, 32], strides = [1, 1]} : vector<64x128xf32> to vector<64x32xf32>
    %196 = arith.mulf %194, %195 : vector<64x32xf32>
    %197 = arith.addf %193, %196 : vector<64x32xf32>
    %198 = vector.extract_strided_slice %190 {offsets = [0, 96], sizes = [64, 32], strides = [1, 1]} : vector<64x128xf32> to vector<64x32xf32>
    %199 = math.tanh %197 : vector<64x32xf32>
    %200 = arith.mulf %198, %199 : vector<64x32xf32>
    %c0_63 = arith.constant 0 : index
    %c0_64 = arith.constant 0 : index
    %201 = vector.load %arg10[%c0_63, %c0_64] : memref<256x32xf32, #tpu.memory_space<vmem>>, vector<64x32xf32>
    tpu.vector_store %arg10[%c0_63, %c0_64], %200 {strides = array<i32>} : memref<256x32xf32, #tpu.memory_space<vmem>>, vector<64x32xf32>,
    %c8_65 = arith.constant 8 : index
    %c0_66 = arith.constant 0 : index
    %202 = vector.load %arg9[%c8_65, %c0_66] : memref<88x128xf32, #tpu.memory_space<vmem>>, vector<64x128xf32>
    %cst_67 = arith.constant dense<0.000000e+00> : vector<64x128xf32>
    %203 = tpu.matmul %200, %180, %cst_67 {dimension_numbers = #tpu.dot_dimension_numbers<[1], [0], [0], [1], [0, 0, 1, 1], [], []>} : vector<64x32xf32>, vector<32x128xf32>, vector<64x128xf32> -> vector<64x128xf32>
    %204 = arith.addf %202, %203 : vector<64x128xf32>
    %205 = arith.negf %204 : vector<64x128xf32>
    %206 = math.exp %205 : vector<64x128xf32>
    %cst_68 = arith.constant 1.000000e+00 : f32
    %207 = vector.broadcast %cst_68 : f32 to vector<64x128xf32>
    %208 = arith.addf %207, %206 : vector<64x128xf32>
    %209 = arith.divf %207, %208 : vector<64x128xf32>
    %210 = math.tanh %204 : vector<64x128xf32>
    %211 = vector.extract_strided_slice %209 {offsets = [0, 32], sizes = [64, 32], strides = [1, 1]} : vector<64x128xf32> to vector<64x32xf32>
    %212 = arith.mulf %211, %197 : vector<64x32xf32>
    %213 = vector.extract_strided_slice %209 {offsets = [0, 0], sizes = [64, 32], strides = [1, 1]} : vector<64x128xf32> to vector<64x32xf32>
    %214 = vector.extract_strided_slice %210 {offsets = [0, 64], sizes = [64, 32], strides = [1, 1]} : vector<64x128xf32> to vector<64x32xf32>
    %215 = arith.mulf %213, %214 : vector<64x32xf32>
    %216 = arith.addf %212, %215 : vector<64x32xf32>
    %217 = vector.extract_strided_slice %209 {offsets = [0, 96], sizes = [64, 32], strides = [1, 1]} : vector<64x128xf32> to vector<64x32xf32>
    %218 = math.tanh %216 : vector<64x32xf32>
    %219 = arith.mulf %217, %218 : vector<64x32xf32>
    %c64 = arith.constant 64 : index
    %c0_69 = arith.constant 0 : index
    %220 = vector.load %arg10[%c64, %c0_69] : memref<256x32xf32, #tpu.memory_space<vmem>>, vector<64x32xf32>
    tpu.vector_store %arg10[%c64, %c0_69], %219 {strides = array<i32>} : memref<256x32xf32, #tpu.memory_space<vmem>>, vector<64x32xf32>,
    %c16_70 = arith.constant 16 : index
    %c0_71 = arith.constant 0 : index
    %221 = vector.load %arg9[%c16_70, %c0_71] : memref<88x128xf32, #tpu.memory_space<vmem>>, vector<64x128xf32>
    %cst_72 = arith.constant dense<0.000000e+00> : vector<64x128xf32>
    %222 = tpu.matmul %219, %180, %cst_72 {dimension_numbers = #tpu.dot_dimension_numbers<[1], [0], [0], [1], [0, 0, 1, 1], [], []>} : vector<64x32xf32>, vector<32x128xf32>, vector<64x128xf32> -> vector<64x128xf32>
    %223 = arith.addf %221, %222 : vector<64x128xf32>
    %224 = arith.negf %223 : vector<64x128xf32>
    %225 = math.exp %224 : vector<64x128xf32>
    %cst_73 = arith.constant 1.000000e+00 : f32
    %226 = vector.broadcast %cst_73 : f32 to vector<64x128xf32>
    %227 = arith.addf %226, %225 : vector<64x128xf32>
    %228 = arith.divf %226, %227 : vector<64x128xf32>
    %229 = math.tanh %223 : vector<64x128xf32>
    %230 = vector.extract_strided_slice %228 {offsets = [0, 32], sizes = [64, 32], strides = [1, 1]} : vector<64x128xf32> to vector<64x32xf32>
    %231 = arith.mulf %230, %216 : vector<64x32xf32>
    %232 = vector.extract_strided_slice %228 {offsets = [0, 0], sizes = [64, 32], strides = [1, 1]} : vector<64x128xf32> to vector<64x32xf32>
    %233 = vector.extract_strided_slice %229 {offsets = [0, 64], sizes = [64, 32], strides = [1, 1]} : vector<64x128xf32> to vector<64x32xf32>
    %234 = arith.mulf %232, %233 : vector<64x32xf32>
    %235 = arith.addf %231, %234 : vector<64x32xf32>
    %236 = vector.extract_strided_slice %228 {offsets = [0, 96], sizes = [64, 32], strides = [1, 1]} : vector<64x128xf32> to vector<64x32xf32>
    %237 = math.tanh %235 : vector<64x32xf32>
    %238 = arith.mulf %236, %237 : vector<64x32xf32>
    %c128 = arith.constant 128 : index
    %c0_74 = arith.constant 0 : index
    %239 = vector.load %arg10[%c128, %c0_74] : memref<256x32xf32, #tpu.memory_space<vmem>>, vector<64x32xf32>
    tpu.vector_store %arg10[%c128, %c0_74], %238 {strides = array<i32>} : memref<256x32xf32, #tpu.memory_space<vmem>>, vector<64x32xf32>,
    %c24_75 = arith.constant 24 : index
    %c0_76 = arith.constant 0 : index
    %240 = vector.load %arg9[%c24_75, %c0_76] : memref<88x128xf32, #tpu.memory_space<vmem>>, vector<64x128xf32>
    %cst_77 = arith.constant dense<0.000000e+00> : vector<64x128xf32>
    %241 = tpu.matmul %238, %180, %cst_77 {dimension_numbers = #tpu.dot_dimension_numbers<[1], [0], [0], [1], [0, 0, 1, 1], [], []>} : vector<64x32xf32>, vector<32x128xf32>, vector<64x128xf32> -> vector<64x128xf32>
    %242 = arith.addf %240, %241 : vector<64x128xf32>
    %243 = arith.negf %242 : vector<64x128xf32>
    %244 = math.exp %243 : vector<64x128xf32>
    %cst_78 = arith.constant 1.000000e+00 : f32
    %245 = vector.broadcast %cst_78 : f32 to vector<64x128xf32>
    %246 = arith.addf %245, %244 : vector<64x128xf32>
    %247 = arith.divf %245, %246 : vector<64x128xf32>
    %248 = math.tanh %242 : vector<64x128xf32>
    %249 = vector.extract_strided_slice %247 {offsets = [0, 32], sizes = [64, 32], strides = [1, 1]} : vector<64x128xf32> to vector<64x32xf32>
    %250 = arith.mulf %249, %235 : vector<64x32xf32>
    %251 = vector.extract_strided_slice %247 {offsets = [0, 0], sizes = [64, 32], strides = [1, 1]} : vector<64x128xf32> to vector<64x32xf32>
    %252 = vector.extract_strided_slice %248 {offsets = [0, 64], sizes = [64, 32], strides = [1, 1]} : vector<64x128xf32> to vector<64x32xf32>
    %253 = arith.mulf %251, %252 : vector<64x32xf32>
    %254 = arith.addf %250, %253 : vector<64x32xf32>
    %255 = vector.extract_strided_slice %247 {offsets = [0, 96], sizes = [64, 32], strides = [1, 1]} : vector<64x128xf32> to vector<64x32xf32>
    %256 = math.tanh %254 : vector<64x32xf32>
    %257 = arith.mulf %255, %256 : vector<64x32xf32>
    %c192 = arith.constant 192 : index
    %c0_79 = arith.constant 0 : index
    %258 = vector.load %arg10[%c192, %c0_79] : memref<256x32xf32, #tpu.memory_space<vmem>>, vector<64x32xf32>
    tpu.vector_store %arg10[%c192, %c0_79], %257 {strides = array<i32>} : memref<256x32xf32, #tpu.memory_space<vmem>>, vector<64x32xf32>,
    %c0_80 = arith.constant 0 : index
    %c0_81 = arith.constant 0 : index
    %259 = vector.load %arg10[%c0_80, %c0_81] : memref<256x32xf32, #tpu.memory_space<vmem>>, vector<256x32xf32>
    %c0_82 = arith.constant 0 : index
    %c0_83 = arith.constant 0 : index
    %260 = vector.load %arg5[%c0_82, %c0_83] : memref<32x1xf32, #tpu.memory_space<vmem>>, vector<32x1xf32>
    %cst_84 = arith.constant dense<0.000000e+00> : vector<256x1xf32>
    %261 = tpu.matmul %259, %260, %cst_84 {dimension_numbers = #tpu.dot_dimension_numbers<[1], [0], [0], [1], [0, 0, 1, 1], [], []>} : vector<256x32xf32>, vector<32x1xf32>, vector<256x1xf32> -> vector<256x1xf32>
    %c0_85 = arith.constant 0 : index
    %c0_86 = arith.constant 0 : index
    %262 = vector.load %arg6[%c0_85, %c0_86] : memref<1x1xf32, #tpu.memory_space<vmem>>, vector<1x1xf32>
    %263 = vector.broadcast %262 : vector<1x1xf32> to vector<256x1xf32>
    %264 = arith.addf %261, %263 : vector<256x1xf32>
    %265 = vector.shape_cast %264 : vector<256x1xf32> to vector<4x64x1xf32>
    %cst_87 = arith.constant dense<0xFF800000> : vector<64x1xf32>
    %266 = vector.multi_reduction <maximumf>, %265, %cst_87 [0] : vector<4x64x1xf32> to vector<64x1xf32>
    %267 = vector.shape_cast %266 : vector<64x1xf32> to vector<1x64x1xf32>
    %268 = vector.broadcast %267 : vector<1x64x1xf32> to vector<4x64x1xf32>
    %269 = arith.subf %265, %268 : vector<4x64x1xf32>
    %270 = math.exp %269 : vector<4x64x1xf32>
    %cst_88 = arith.constant dense<0.000000e+00> : vector<64x1xf32>
    %271 = vector.multi_reduction <add>, %270, %cst_88 [0] : vector<4x64x1xf32> to vector<64x1xf32>
    %272 = vector.shape_cast %271 : vector<64x1xf32> to vector<1x64x1xf32>
    %273 = vector.broadcast %272 : vector<1x64x1xf32> to vector<4x64x1xf32>
    %274 = arith.divf %270, %273 : vector<4x64x1xf32>
    %275 = vector.shape_cast %259 : vector<256x32xf32> to vector<4x64x32xf32>
    %276 = vector.broadcast %274 : vector<4x64x1xf32> to vector<4x64x32xf32>
    %277 = arith.mulf %276, %275 : vector<4x64x32xf32>
    %cst_89 = arith.constant dense<0.000000e+00> : vector<64x32xf32>
    %278 = vector.multi_reduction <add>, %277, %cst_89 [0] : vector<4x64x32xf32> to vector<64x32xf32>
    %279 = vector.shape_cast %278 : vector<64x32xf32> to vector<8x8x32xf32>
    %c0_90 = arith.constant 0 : index
    %c0_91 = arith.constant 0 : index
    %c0_92 = arith.constant 0 : index
    %280 = vector.load %arg7[%c0_90, %c0_91, %c0_92] : memref<8x8x32xf32, #tpu.memory_space<vmem>>, vector<8x8x32xf32>
    tpu.vector_store %arg7[%c0_90, %c0_91, %c0_92], %279 {strides = array<i32>} : memref<8x8x32xf32, #tpu.memory_space<vmem>>, vector<8x8x32xf32>,
    return
  }
  func.func @transform_0(%arg0: i32) -> (i32, i32, i32) {
    %c0_i32 = arith.constant 0 : i32
    %c0_i32_0 = arith.constant 0 : i32
    %c0_i32_1 = arith.constant 0 : i32
    return %c0_i32, %arg0, %c0_i32_0 : i32, i32, i32
  }
  func.func @transform_1(%arg0: i32) -> (i32, i32, i32) {
    %c0_i32 = arith.constant 0 : i32
    %c0_i32_0 = arith.constant 0 : i32
    %c0_i32_1 = arith.constant 0 : i32
    %c0_i32_2 = arith.constant 0 : i32
    return %c0_i32, %c0_i32_0, %c0_i32_1 : i32, i32, i32
  }
  func.func @transform_2(%arg0: i32) -> (i32, i32, i32) {
    %c0_i32 = arith.constant 0 : i32
    %c0_i32_0 = arith.constant 0 : i32
    %c0_i32_1 = arith.constant 0 : i32
    %c0_i32_2 = arith.constant 0 : i32
    return %c0_i32, %c0_i32_0, %c0_i32_1 : i32, i32, i32
  }
  func.func @transform_3(%arg0: i32) -> (i32, i32, i32) {
    %c0_i32 = arith.constant 0 : i32
    %c0_i32_0 = arith.constant 0 : i32
    %c0_i32_1 = arith.constant 0 : i32
    %c0_i32_2 = arith.constant 0 : i32
    return %c0_i32, %c0_i32_0, %c0_i32_1 : i32, i32, i32
  }
  func.func @transform_4(%arg0: i32) -> (i32, i32) {
    %c0_i32 = arith.constant 0 : i32
    %c0_i32_0 = arith.constant 0 : i32
    %c0_i32_1 = arith.constant 0 : i32
    return %c0_i32, %c0_i32_0 : i32, i32
  }
  func.func @transform_5(%arg0: i32) -> (i32, i32) {
    %c0_i32 = arith.constant 0 : i32
    %c0_i32_0 = arith.constant 0 : i32
    %c0_i32_1 = arith.constant 0 : i32
    return %c0_i32, %c0_i32_0 : i32, i32
  }
  func.func @transform_6(%arg0: i32) -> (i32, i32, i32) {
    %c0_i32 = arith.constant 0 : i32
    %c0_i32_0 = arith.constant 0 : i32
    %c0_i32_1 = arith.constant 0 : i32
    return %c0_i32, %arg0, %c0_i32_0 : i32, i32, i32
  }
}

</mosaic_0001>

<bundles_post_ra>
// kernel: tpu_custom_call.1
= control target key start
LH: loop header
LB: loop body
LE: loop exit
PB: predicated region body
PF: predicated region fallthrough
CT: control target
= control target key end

     0   :  { %s6636_s0 = inlined_call_operand.hbm [shape: f32[8,16,32], index: 0, kind: input, shape index: {}]   ;;  %s6637_s1 = inlined_call_operand.vmem [shape: f32[1,32,128], index: 1, kind: input, shape index: {}]   ;;  %s6638_s2 = inlined_call_operand.hbm [shape: f32[1,32,128], index: 2, kind: input, shape index: {}]   ;;  %s6639_s3 = inlined_call_operand.vmem [shape: f32[1,1,128], index: 3, kind: input, shape index: {}]   ;;  %s6640_s4 = inlined_call_operand.vmem [shape: f32[32,1], index: 4, kind: input, shape index: {}]   ;;  %s6641_s5 = inlined_call_operand.<no memory space> [shape: f32[1,1], index: 5, kind: input, shape index: {}]   ;;  %s6642_s6 = inlined_call_operand.hbm [shape: f32[8,16,32], index: 6, kind: output, shape index: {}]  }
   0x1   :  { %v11_v0 = vstv %s6641_s5 }
   0x2   :  { %12 = vst [vmem:[#allocation5] sm:$0x1] %v11_v0 }
   0x3   :  { %13 = vsyncpa [#allocation7], 0 }
   0x4   :  { %15 = vsyncpa [#allocation7 + $0x1], 0 }
   0x5   :  { %16 = vsyncpa [#allocation10], 0 }
   0x6   :  { %17 = vsyncpa [#allocation8], 0 }
   0x7   :  { %19 = vsyncpa [#allocation8 + $0x1], 0  ;;  %s5188_s23 = smov 0   ;;  %s5190_s24 = smov 0  }
   0x8   :  { %s5192_s25 = smov 0   ;;  %s5194_s26 = smov 0  }
   0x9 LB: > { %s5209_s5 = sadd.s32 4294967295, %s5133_s26   ;;  %s3851_s27 = sadd.s32 4294967294, %s5133_s26   ;;  %s5133_s26 = sphi %s5194_s26, %s6668_s26   ;;  %s5129_s25 = sphi %s5192_s25, %s6667_s25   ;;  %s5125_s24 = sphi %s5190_s24, %s6666_s24   ;;  %s5121_s23 = sphi %s5188_s23, %s6665_s23  }
   0xa   : > { %s5213_s28 = sadd.s32 1, %s5133_s26   ;;  %s32_s29 = sadd.s32 1, %s5129_s25 }
   0xb   : > { %s29_s30 = ssub.s32 %s5133_s26, %s5213_s28  ;;  %p39_p0 = scmp.ne.s32.totalorder %s5129_s25, %s5125_s24 }
   0xc   : > { %p30_p1 = scmp.eq.s32.totalorder %s29_s30, 0  ;;  %p40_p2 = scmp.eq.s32.totalorder %s5133_s26, 0 }
   0xd   : > { %p45_p3 = scmp.ne.s32.totalorder %s5125_s24, %s5121_s23  ;;  %p6643_p4 = scmp.eq.s32.totalorder %s5209_s5, 0 }
   0xe   : > { %s5225_s7 = scalar_select %p30_p1, %s5129_s25, %s32_s29  }
   0xf   : > { %p5227_p5 = por %p40_p2, %p39_p0  ;;  %p5233_p6 = por %p6643_p4, %p45_p3 }
  0x10   : > { %p174_p7 = scmp.eq.s32.totalorder %s5209_s5, 1  ;;  %p180_p8 = scmp.eq.s32.totalorder %s3851_s27, 1 }
  0x11   : > { %s6648_s8 = scalar_select %p5227_p5, 1, 0 }
  0x12   : > { %s6649_s9 = scalar_select %p5233_p6, 1, 0 }
  0x13   : > { %p3852_p9 = scmp.ge.s32.totalorder %s5133_s26, 1  ;;  %p187_p10 = scmp.lt.s32.totalorder %s5133_s26, 3 }
  0x14   : > { %p5240_p11 = por %p174_p7, %p39_p0  ;;  %p5244_p12 = por %p180_p8, %p45_p3 }
  0x15   : > { %p5248_p13 = pnand %p3852_p9, %p187_p10  ;;  %s5135_s13 = smov [#allocation9]  }
  0x16   : > { %s6650_s10 = scalar_select %p5240_p11, 1, 0 }
  0x17   : > { %s6651_s11 = scalar_select %p5244_p12, 1, 0 }
  0x18   : > { %s6652_s12 = scalar_select %p5248_p13, 1, 0 }
  0x19   : > { %p4516_p1 = pneg %p5248_p13  ;;  %s202_s14 = sshll.u32 %s5135_s13, 4  ;;  %s203_s14 = int_to_ptr.vmem [resolvable:$true] %s202_s14 }
  0x1a   : > { %s225_s16 = sand.u32 1, %s5129_s25   ;;  %s5005_s19 = scalar_lea.hbm %s6638_s2, 512 }
  0x1b   : > { %p5256_p2 = pnand %p4516_p1, %p6643_p4  ;;  %p5006_p7 = scmp.ne.s32.totalorder %s6638_s2, %s5005_s19 }
  0x1c   : > { %p5012_p1 = scmp.lt.u32.totalorder %s5005_s19, %s6638_s2 }
  0x1d   : > { %p5007_p8 = pneg %p5256_p2 }
  0x1f   : > { %p5008_p9 = pnand %p5007_p8, %p5006_p7 }
  0x21   : > { %p5009_p10 = pneg %p5008_p9 }
  0x23   : > { %p5014_p4 = pnand %p5012_p1, %p5009_p10 }
  0x25   : > { %5017 = shalt.err (!%p5014_p4)
}
  0x26   : > { %s5018_s29 = scalar_lea.vmem %s203_s14, 512  ;;  %p5026_p11 = scmp.lt.s32.totalorder %s203_s14, %s203_s14 }
  0x27   : > { %p5019_p0 = scmp.ne.s32.totalorder %s203_s14, %s5018_s29  ;;  %p5027_p6 = scmp.lt.s32.totalorder %s5018_s29, %s5018_s29 }
  0x29   : > { %p5021_p3 = pnand %p5019_p0, %p5007_p8  ;;  %p5028_p13 = por %p5027_p6, %p5026_p11 }
  0x2b   : > { %p5022_p12 = pneg %p5021_p3 }
  0x2d   : > { %p5029_p5 = pnand %p5028_p13, %p5022_p12 }
  0x2f   : > { %5032 = shalt.err (!%p5029_p5)
}
  0x30   : > { %s6647_s30 = smov 128   ;;  %s5137_s13 = smov 8  }
  0x31   : > { %4519 = dma.hbm_to_vmem [thread:$0]  (!%p5256_p2), %s6638_s2, 512, %s203_s14, [#allocation10], %s6647_s30, %s6647_s30, %s5137_s13  }
  0x32   : > { %p6654_p4 = scmp.ne.s32.totalorder %s6648_s8, 0  ;;  %p6655_p0 = scmp.lt.s32.totalorder %s5133_s26, 2 }
  0x33   : > { %s3855_s20 = sshll.u32 %s225_s16, 6  ;;  %s3856_s21 = sshll.u32 %s5133_s26, 7 }
  0x34   : > { %p5286_p3 = pnand %p6655_p0, %p6654_p4  ;;  %s5294_s15 = scalar_lea.hbm %s6636_s0, %s3856_s21 }
  0x35   : > { %s229_s14 = scalar_lea.vmem [#allocation6], %s3855_s20  ;;  %s5298_s29 = scalar_lea.sflag [#allocation7], %s225_s16 }
  0x36   : > { %s235_s8 = sshll.u32 %s229_s14, 4  ;;  %s5033_s17 = scalar_lea.hbm %s5294_s15, 1024  ;;  %s5296_s8 = int_to_ptr.vmem [resolvable:$true] %s235_s8 }
  0x37   : > { %p5034_p5 = scmp.ne.s32.totalorder %s5294_s15, %s5033_s17  ;;  %p5035_p6 = pneg %p5286_p3 }
  0x38   : > { %s5038_s22 = scalar_lea.hbm %s6636_s0, 2048  ;;  %p5039_p13 = scmp.lt.u32.totalorder %s5294_s15, %s6636_s0 }
  0x39   : > { %p5036_p11 = pnand %p5035_p6, %p5034_p5  ;;  %p5040_p2 = scmp.lt.u32.totalorder %s5038_s22, %s5033_s17 }
  0x3a   : > { %p5042_p8 = scmp.lt.u32.totalorder %s5033_s17, %s5294_s15 }
  0x3b   : > { %p5037_p12 = pneg %p5036_p11  ;;  %p5041_p7 = por %p5040_p2, %p5039_p13 }
  0x3d   : > { %p5043_p9 = por %p5042_p8, %p5041_p7 }
  0x3f   : > { %p5044_p10 = pnand %p5043_p9, %p5037_p12 }
  0x41   : > { %5047 = shalt.err (!%p5044_p10)
}
  0x42   : > { %s5048_s16 = scalar_lea.vmem %s5296_s8, 1024  ;;  %s5138_s20 = smov [#allocation6]  }
  0x43   : > { %p5049_p1 = scmp.ne.s32.totalorder %s5296_s8, %s5048_s16  ;;  %s5053_s14 = sshll.u32 %s5138_s20, 4  ;;  %s5054_s14 = int_to_ptr.vmem [resolvable:$false] %s5053_s14 }
  0x44   : > { %s5055_s30 = scalar_lea.vmem %s5054_s14, 2048  ;;  %p5056_p5 = scmp.lt.s32.totalorder %s5296_s8, %s5054_s14 }
  0x45   : > { %p5051_p4 = pnand %p5049_p1, %p5035_p6  ;;  %p5057_p11 = scmp.lt.s32.totalorder %s5055_s30, %s5048_s16 }
  0x47   : > { %p5052_p0 = pneg %p5051_p4  ;;  %p5058_p13 = por %p5057_p11, %p5056_p5 }
  0x49   : > { %p5059_p2 = pnand %p5058_p13, %p5052_p0 }
  0x4b   : > { %5062 = shalt.err (!%p5059_p2)
}
  0x4c   : > { %s5139_s17 = smov 256   ;;  %s6657_s18 = smov 128  }
  0x4d   : > { %4523 = dma.hbm_to_vmem [thread:$0]  (!%p5286_p3), %s5294_s15, 1024, %s5296_s8, %s5298_s29, %s5139_s17, %s6657_s18, %s5137_s13  }
  0x4e   : > { %p6658_p6 = scmp.ne.s32.totalorder %s6652_s12, 0 }
  0x4f   : > { %s5331_s21 = sand.u32 (!%p6658_p6), 1, %s5125_s24   ;;  %p6659_p12 = scmp.ne.s32.totalorder (!%p6658_p6), %s6649_s9, 0 }
  0x50   : > { %247 = sbr.rel (%p6658_p6) target bundleno = 8320 (0x2080), region = 44  ;;  %s3858_s22 = sshll.u32 (!%p6658_p6), %s5331_s21, 6 }
  0x51   : > { %s250_s27 = scalar_lea.sflag (!%p6658_p6), [#allocation7], %s5331_s21  ;;  %s5337_s19 = scalar_lea.vmem (!%p6658_p6), [#allocation6], %s3858_s22 }
  0x57   : > { %5108 = dma.done.wait (%p6659_p12), %s250_s27, 1024  }
  0x58   : > { %5110 = vsyncadd (%p6659_p12), %s250_s27, 4294966272  ;;  %p6660_p3 = scmp.eq.s32.totalorder %s5209_s5, 0 }
  0x5a   : > { %5112 = dma.done.wait (%p6660_p3), [#allocation10], 512   ;;  %p6661_p7 = pmov %p6660_p3 }
  0x5b   : > { %v5140_v1 = vmov 0.0|0.0   ;;  %vm5141_vm0 = vmmov 0   ;;  %v5142_v2 = vmov 0.0   ;;  %v294_v3 = vld [vmem:[%s6637_s1] sm:$0xff]  ;;  %v295_v4 = vld [vmem:[%s6637_s1 + $0x8] sm:$0xff]  ;;  %vm305_vm1 = vcmask 261120  }
  0x5c   : > { %5114 = vsyncadd (%p6661_p7), [#allocation10], 4294966784  ;;  %4408 = vmatprep.subr.bf16.mxu1 %v5140_v1  ;;  %4164 = vmatprep.mubr.msk.f32.mxu1 %vm5141_vm0, %v5142_v2  ;;  %v435_v5 = vld [vmem:[#allocation9] sm:$0xff]  ;;  %v5356_v6 = vpack.c.bf16 %v295_v4, %v294_v3  ;;  %v436_v7 = vld [vmem:[#allocation9 + $0x8] sm:$0xff]  ;;  %s5143_s17 = smov 64   ;;  %s5144_s18 = smov 32  }
  0x5d   : > { %v296_v8 = vld [vmem:[%s6637_s1 + $0x10] sm:$0xff]  ;;  %v297_v9 = vld [vmem:[%s6637_s1 + $0x18] sm:$0xff]  ;;  %v5364_v10 = vpack.c.bf16 %v436_v7, %v435_v5  ;;  %v286_v12 = vld [vmem:[%s5337_s19] sm:$0xff]  ;;  %vm3250_vm2 = vcmask 7168   ;;  %s3756_s12 = scalar_lea.sflag [#allocation8], %s5331_s21  ;;  %p6662_p9 = scmp.ne.s32.totalorder %s6650_s10, 0 }
  0x5e   : > { %v5366_v11 = vpack.c.bf16 %v297_v9, %v296_v8  ;;  %v437_v13 = vld [vmem:[#allocation9 + $0x10] sm:$0xff]  ;;  %v438_v14 = vld [vmem:[#allocation9 + $0x18] sm:$0xff]  ;;  %4401 = vmatprep.subr.bf16.mxu0 %v5356_v6  ;;  %4144 = vmatprep.mubr.msk.f32.mxu0 %vm305_vm1, %v286_v12  ;;  %v287_v16 = vld [vmem:[%s5337_s19 + $0x8] sm:$0xff]  ;;  %s5146_s9 = smov [#allocation11]  }
  0x5f   : > { %4403 = vmatpush3.bf16.msra.mxu0 %v5356_v6  ;;  %4410 = vmatpush3.bf16.msra.mxu1 %v5364_v10  ;;  %v5373_v15 = vpack.c.bf16 %v438_v14, %v437_v13  ;;  %v5397_v17 = vld [vmem:[%s6639_s3] ss:$0 sm:$0xff]  ;;  %v288_v52 = vld [vmem:[%s5337_s19 + $0x10] sm:$0xff]  ;;  %v290_v54 = vld [vmem:[%s5337_s19 + $0x20] sm:$0xff]  ;;  %s5067_s15 = sshll.u32 %s5146_s9, 4  ;;  %s5068_s15 = int_to_ptr.vmem [resolvable:$false] %s5067_s15 }
  0x60   : > { %4405 = vmatprep.subr.bf16.mxu0 %v5366_v11  ;;  %4411 = vmatprep.subr.bf16.mxu1 %v5140_v1  ;;  %v289_v53 = vld [vmem:[%s5337_s19 + $0x18] sm:$0xff]  ;;  %v291_v55 = vld [vmem:[%s5337_s19 + $0x28] sm:$0xff]  ;;  %v292_v56 = vld [vmem:[%s5337_s19 + $0x30] sm:$0xff]  ;;  %s5069_s8 = scalar_lea.vmem %s5068_s15, 2048 }
  0x61   : > { %v293_v57 = vld [vmem:[%s5337_s19 + $0x38] sm:$0xff] }
  0x63   : > { %4407 = vmatpush3.bf16.msra.mxu0 %v5366_v11  ;;  %4413 = vmatpush3.bf16.msra.mxu1 %v5373_v15 }
  0x64   : > { %4414 = vmatprep.subr.bf16.mxu1 %v5140_v1  ;;  %4420 = vmatprep.subr.bf16.mxu0 %v5140_v1 }
  0x66   : > { %4145 = vmatmul.mubr.msk.f32.vlgmr.msra.gmra.mrb[0].mxu0 %vm305_vm1, %v287_v16  ;;  %4165 = vmatmul.mubr.f32.vlgmr.msra.gmra.mrb[0].mxu1 %v5142_v2 }
  0x67   : > { %4416 = vmatpush3.bf16.msra.mxu1 %v5364_v10  ;;  %4175 = vmatprep.mubr.msk.f32.mxu1 %vm5141_vm0, %v5142_v2 }
  0x68   : > { %4417 = vmatprep.subr.bf16.mxu1 %v5140_v1  ;;  %4422 = vmatpush3.bf16.msra.mxu0 %v5364_v10 }
  0x69   : > { %4423 = vmatprep.subr.bf16.mxu0 %v5140_v1  ;;  %4147 = vmatprep.mubr.msk.f32.mxu0 %vm305_vm1, %v288_v52 }
  0x6a   : > { %4148 = vmatmul.mubr.msk.f32.gmra.mrb[2].mxu0 %vm305_vm1, %v289_v53 }
  0x6b   : > { %4419 = vmatpush3.bf16.msra.mxu1 %v5373_v15  ;;  %4150 = vmatprep.mubr.msk.f32.mxu0 %vm305_vm1, %v290_v54 }
  0x6c   : > { %4425 = vmatpush3.bf16.msra.mxu0 %v5373_v15  ;;  %4426 = vmatprep.subr.bf16.mxu1 %v5140_v1 }
  0x6d   : > { %4432 = vmatprep.subr.bf16.mxu0 %v5140_v1 }
  0x6e   : > { %4151 = vmatmul.mubr.msk.f32.gmra.mrb[4].mxu0 %vm305_vm1, %v291_v55 }
  0x6f   : > { %4153 = vmatprep.mubr.msk.f32.mxu0 %vm305_vm1, %v292_v56 }
  0x72   : > { %4154 = vmatmul.mubr.msk.f32.gmra.mrb[6].mxu0 %vm305_vm1, %v293_v57 }
  0x73   : > { %4186 = vmatprep.mubr.msk.f32.mxu0 %vm5141_vm0, %v5142_v2 }
 0x139   : > { %v4146_v18 = vpop.f32.mrb[0].mxu0  ;;  %v508_v19 = vpop.f32.mrb[0].mxu1 }
 0x13a   : > { %v396_v20 = vpop.f32.mrb[1].mxu0  ;;  %v4166_v21 = vpop.f32.mrb[1].mxu1  ;;  %v402_v38 = vadd.f32 %v4146_v18, %v5397_v17 }
 0x13b   : > { %v397_v22 = vadd.f32 %v5397_v17, %v396_v20 }
 0x13d   : > { %v512_v23 = vadd.f32 %v508_v19, %v397_v22  ;;  %v4149_v61 = vpop.f32.mrb[2].mxu0 }
 0x13e   : > { %v406_v62 = vpop.f32.mrb[3].mxu0 }
 0x13f   : > { %4579 = vtanh.f32 %v512_v23  ;;  %v3870_v25 = vmul.f32 -1.442695, %v512_v23  ;;  %v407_v7 = vadd.f32 %v5397_v17, %v406_v62 }
 0x141   : > { %4581 = vpow2.f32 %v3870_v25  ;;  %v5431_v63 = vpop.f32.mrb[4].mxu0 }
 0x142   : > { %v5433_v0 = vpop.f32.mrb[5].mxu0 }
 0x145   : > { %v5435_v3 = vpop.f32.mrb[6].mxu0 }
 0x146   : > { %v5437_v4 = vpop.f32.mrb[7].mxu0 }
 0x149   : > { %v4580_v24 = vpop.eup %4579 }
 0x14a   : > { %522 = vrot.lane.b32.xlu0 %v4580_v24, %s5143_s17 }
 0x14b   : > { %v4582_v26 = vpop.eup %4581 }
 0x14c   : > { %v516_v27 = vadd.f32 1.0, %v4582_v26 }
 0x14e   : > { %4583 = vrcp.f32 %v516_v27 }
 0x158   : > { %v4584_v28 = vpop.eup %4583 }
 0x159   : > { %v520_v31 = vmul.f32 0.0, %v4584_v28 }
 0x1bc   : > { %v523_v29 = vpop.permute.xlu0 %522 }
 0x1bd   : > { %v525_v30 = vmul.f32 %v4584_v28, %v523_v29  ;;  %v412_v29 = vadd.f32 %v4149_v61, %v5397_v17 }
 0x1bf   : > { %527 = vrot.lane.b32.xlu0 %v525_v30, %s5144_s18 }
 0x231   : > { %v528_v32 = vpop.permute.xlu0 %527 }
 0x232   : > { %v530_v33 = vadd.f32 %v528_v32, %v520_v31 }
 0x234   : > { %4585 = vtanh.f32 %v530_v33 }
 0x23e   : > { %v4586_v34 = vpop.eup %4585 }
 0x23f   : > { %533 = vrot.lane.b32.xlu1 %v4586_v34, %s5143_s17 }
 0x2b1   : > { %v534_v35 = vpop.permute.xlu1 %533 }
 0x2b2   : > { %v536_v36 = vmul.f32 %v4584_v28, %v534_v35 }
 0x2b4   : > { %538 = vrot.lane.b32.xlu1 %v536_v36, %s5144_s18 }
 0x326   : > { %v539_v37 = vpop.permute.xlu1 %538 }
 0x327   : > { %541 = vst.msk [vmem:[#allocation2] sm:$0xff] %vm305_vm1, %v539_v37  ;;  %4176 = vmatmul.mubr.msk.f32.vlgmr.msra.gmra.mrb[2].mxu1 %vm305_vm1, %v539_v37 }
 0x328   : > { %4428 = vmatpush3.bf16.msra.mxu1 %v5364_v10  ;;  %4197 = vmatprep.mubr.msk.f32.mxu1 %vm5141_vm0, %v5142_v2 }
 0x329   : > { %4429 = vmatprep.subr.bf16.mxu1 %v5140_v1 }
 0x32c   : > { %4431 = vmatpush3.bf16.msra.mxu1 %v5373_v15 }
 0x32d   : > { %4438 = vmatprep.subr.bf16.mxu1 %v5140_v1 }
 0x3fa   : > { %v610_v39 = vpop.f32.mrb[2].mxu1 }
 0x3fb   : > { %v614_v40 = vadd.f32 %v610_v39, %v402_v38  ;;  %v4177_v41 = vpop.f32.mrb[3].mxu1 }
 0x3fd   : > { %4587 = vtanh.f32 %v614_v40  ;;  %v3872_v43 = vmul.f32 -1.442695, %v614_v40 }
 0x3ff   : > { %4589 = vpow2.f32 %v3872_v43 }
 0x407   : > { %v4588_v42 = vpop.eup %4587 }
 0x408   : > { %624 = vrot.lane.b32.xlu0 %v4588_v42, %s5143_s17 }
 0x409   : > { %v4590_v44 = vpop.eup %4589 }
 0x40a   : > { %v618_v45 = vadd.f32 1.0, %v4590_v44 }
 0x40c   : > { %4591 = vrcp.f32 %v618_v45 }
 0x416   : > { %v4592_v46 = vpop.eup %4591 }
 0x417   : > { %v622_v49 = vmul.f32 %v4592_v46, %v530_v33 }
 0x47a   : > { %v625_v47 = vpop.permute.xlu0 %624 }
 0x47b   : > { %v627_v48 = vmul.f32 %v4592_v46, %v625_v47  ;;  %v417_v47 = vadd.f32 %v5397_v17, %v5433_v0 }
 0x47d   : > { %629 = vrot.lane.b32.xlu1 %v627_v48, %s5144_s18 }
 0x4ef   : > { %v630_v50 = vpop.permute.xlu1 %629 }
 0x4f0   : > { %v632_v51 = vadd.f32 %v630_v50, %v622_v49 }
 0x4f2   : > { %4593 = vtanh.f32 %v632_v51 }
 0x4fc   : > { %v4594_v58 = vpop.eup %4593 }
 0x4fd   : > { %635 = vrot.lane.b32.xlu0 %v4594_v58, %s5143_s17 }
 0x56f   : > { %v636_v59 = vpop.permute.xlu0 %635 }
 0x570   : > { %v638_v60 = vmul.f32 %v4592_v46, %v636_v59 }
 0x572   : > { %640 = vrot.lane.b32.xlu1 %v638_v60, %s5144_s18 }
 0x5e4   : > { %v641_v5 = vpop.permute.xlu1 %640 }
 0x5e5   : > { %643 = vst.msk [vmem:[#allocation2 + $0x8] sm:$0xff] %vm305_vm1, %v641_v5  ;;  %4187 = vmatmul.mubr.msk.f32.vlgmr.msra.gmra.mrb[8].mxu0 %vm305_vm1, %v641_v5 }
 0x5e6   : > { %4434 = vmatpush3.bf16.msra.mxu0 %v5364_v10  ;;  %4208 = vmatprep.mubr.msk.f32.mxu0 %vm5141_vm0, %v5142_v2 }
 0x5e7   : > { %4435 = vmatprep.subr.bf16.mxu0 %v5140_v1 }
 0x5ea   : > { %4437 = vmatpush3.bf16.msra.mxu0 %v5373_v15 }
 0x5eb   : > { %4444 = vmatprep.subr.bf16.mxu0 %v5140_v1 }
 0x6b8   : > { %v712_v8 = vpop.f32.mrb[8].mxu0 }
 0x6b9   : > { %v716_v9 = vadd.f32 %v712_v8, %v407_v7  ;;  %v4188_v12 = vpop.f32.mrb[9].mxu0  ;;  %v422_v7 = vadd.f32 %v5431_v63, %v5397_v17 }
 0x6bb   : > { %4595 = vtanh.f32 %v716_v9  ;;  %v3874_v14 = vmul.f32 -1.442695, %v716_v9 }
 0x6bd   : > { %4597 = vpow2.f32 %v3874_v14 }
 0x6c5   : > { %v4596_v13 = vpop.eup %4595 }
 0x6c6   : > { %726 = vrot.lane.b32.xlu0 %v4596_v13, %s5143_s17 }
 0x6c7   : > { %v4598_v16 = vpop.eup %4597 }
 0x6c8   : > { %v720_v18 = vadd.f32 1.0, %v4598_v16 }
 0x6ca   : > { %4599 = vrcp.f32 %v720_v18 }
 0x6d4   : > { %v4600_v19 = vpop.eup %4599 }
 0x6d5   : > { %v724_v22 = vmul.f32 %v4600_v19, %v632_v51 }
 0x738   : > { %v727_v20 = vpop.permute.xlu0 %726 }
 0x739   : > { %v729_v21 = vmul.f32 %v4600_v19, %v727_v20 }
 0x73b   : > { %731 = vrot.lane.b32.xlu1 %v729_v21, %s5144_s18 }
 0x7ad   : > { %v732_v23 = vpop.permute.xlu1 %731 }
 0x7ae   : > { %v734_v24 = vadd.f32 %v732_v23, %v724_v22 }
 0x7b0   : > { %4601 = vtanh.f32 %v734_v24 }
 0x7ba   : > { %v4602_v25 = vpop.eup %4601 }
 0x7bb   : > { %737 = vrot.lane.b32.xlu0 %v4602_v25, %s5143_s17 }
 0x82d   : > { %v738_v26 = vpop.permute.xlu0 %737 }
 0x82e   : > { %v740_v27 = vmul.f32 %v4600_v19, %v738_v26 }
 0x830   : > { %742 = vrot.lane.b32.xlu1 %v740_v27, %s5144_s18  ;;  %v1266_v27 = vld [vmem:[#allocation2] sm:$0xff] }
 0x8a2   : > { %v743_v28 = vpop.permute.xlu1 %742 }
 0x8a3   : > { %745 = vst.msk [vmem:[#allocation2 + $0x10] sm:$0xff] %vm305_vm1, %v743_v28  ;;  %4198 = vmatmul.mubr.msk.f32.vlgmr.msra.gmra.mrb[4].mxu1 %vm305_vm1, %v743_v28  ;;  %v1267_v28 = vld [vmem:[#allocation2 + $0x8] sm:$0xff] }
 0x8a4   : > { %4440 = vmatpush3.bf16.msra.mxu1 %v5364_v10  ;;  %4219 = vmatprep.mubr.msk.f32.mxu1 %vm5141_vm0, %v5142_v2 }
 0x8a5   : > { %4441 = vmatprep.subr.bf16.mxu1 %v5140_v1 }
 0x8a8   : > { %4443 = vmatpush3.bf16.msra.mxu1 %v5373_v15 }
 0x8a9   : > { %4450 = vmatprep.subr.bf16.mxu1 %v5140_v1 }
 0x976   : > { %v814_v30 = vpop.f32.mrb[4].mxu1 }
 0x977   : > { %v818_v31 = vadd.f32 %v814_v30, %v412_v29  ;;  %v4199_v32 = vpop.f32.mrb[5].mxu1  ;;  %v1268_v29 = vld [vmem:[#allocation2 + $0x10] sm:$0xff] }
 0x979   : > { %4603 = vtanh.f32 %v818_v31  ;;  %v3876_v34 = vmul.f32 -1.442695, %v818_v31  ;;  %v427_v31 = vadd.f32 %v5397_v17, %v5437_v4 }
 0x97b   : > { %4605 = vpow2.f32 %v3876_v34 }
 0x983   : > { %v4604_v33 = vpop.eup %4603 }
 0x984   : > { %828 = vrot.lane.b32.xlu0 %v4604_v33, %s5143_s17 }
 0x985   : > { %v4606_v35 = vpop.eup %4605 }
 0x986   : > { %v822_v36 = vadd.f32 1.0, %v4606_v35 }
 0x988   : > { %4607 = vrcp.f32 %v822_v36 }
 0x992   : > { %v4608_v37 = vpop.eup %4607 }
 0x993   : > { %v826_v40 = vmul.f32 %v4608_v37, %v734_v24 }
 0x9f6   : > { %v829_v38 = vpop.permute.xlu0 %828 }
 0x9f7   : > { %v831_v39 = vmul.f32 %v4608_v37, %v829_v38 }
 0x9f9   : > { %833 = vrot.lane.b32.xlu1 %v831_v39, %s5144_s18 }
 0xa6b   : > { %v834_v41 = vpop.permute.xlu1 %833 }
 0xa6c   : > { %v836_v42 = vadd.f32 %v834_v41, %v826_v40 }
 0xa6e   : > { %4609 = vtanh.f32 %v836_v42 }
 0xa78   : > { %v4610_v43 = vpop.eup %4609 }
 0xa79   : > { %839 = vrot.lane.b32.xlu0 %v4610_v43, %s5143_s17 }
 0xaeb   : > { %v840_v44 = vpop.permute.xlu0 %839 }
 0xaec   : > { %v842_v45 = vmul.f32 %v4608_v37, %v840_v44 }
 0xaee   : > { %844 = vrot.lane.b32.xlu1 %v842_v45, %s5144_s18 }
 0xb60   : > { %v845_v46 = vpop.permute.xlu1 %844 }
 0xb61   : > { %847 = vst.msk [vmem:[#allocation2 + $0x18] sm:$0xff] %vm305_vm1, %v845_v46  ;;  %4209 = vmatmul.mubr.msk.f32.vlgmr.msra.gmra.mrb[10].mxu0 %vm305_vm1, %v845_v46 }
 0xb62   : > { %4446 = vmatpush3.bf16.msra.mxu0 %v5364_v10  ;;  %4230 = vmatprep.mubr.msk.f32.mxu0 %vm5141_vm0, %v5142_v2 }
 0xb63   : > { %4447 = vmatprep.subr.bf16.mxu0 %v5140_v1 }
 0xb66   : > { %4449 = vmatpush3.bf16.msra.mxu0 %v5373_v15 }
 0xb67   : > { %4457 = vmatprep.subr.bf16.mxu0 %v5356_v6 }
 0xb68   : > { %v1269_v30 = vld [vmem:[#allocation2 + $0x18] sm:$0xff] }
 0xc34   : > { %v916_v48 = vpop.f32.mrb[10].mxu0 }
 0xc35   : > { %v920_v49 = vadd.f32 %v916_v48, %v417_v47  ;;  %v4210_v50 = vpop.f32.mrb[11].mxu0 }
 0xc37   : > { %4611 = vtanh.f32 %v920_v49  ;;  %v3878_v52 = vmul.f32 -1.442695, %v920_v49 }
 0xc39   : > { %4613 = vpow2.f32 %v3878_v52 }
 0xc41   : > { %v4612_v51 = vpop.eup %4611 }
 0xc42   : > { %930 = vrot.lane.b32.xlu0 %v4612_v51, %s5143_s17 }
 0xc43   : > { %v4614_v53 = vpop.eup %4613 }
 0xc44   : > { %v924_v54 = vadd.f32 1.0, %v4614_v53 }
 0xc46   : > { %4615 = vrcp.f32 %v924_v54 }
 0xc50   : > { %v4616_v55 = vpop.eup %4615 }
 0xc51   : > { %v928_v58 = vmul.f32 %v4616_v55, %v836_v42 }
 0xcb4   : > { %v931_v56 = vpop.permute.xlu0 %930 }
 0xcb5   : > { %v933_v57 = vmul.f32 %v4616_v55, %v931_v56 }
 0xcb7   : > { %935 = vrot.lane.b32.xlu1 %v933_v57, %s5144_s18 }
 0xd29   : > { %v936_v59 = vpop.permute.xlu1 %935 }
 0xd2a   : > { %v938_v60 = vadd.f32 %v936_v59, %v928_v58 }
 0xd2c   : > { %4617 = vtanh.f32 %v938_v60 }
 0xd36   : > { %v4618_v61 = vpop.eup %4617 }
 0xd37   : > { %941 = vrot.lane.b32.xlu0 %v4618_v61, %s5143_s17 }
 0xda9   : > { %v942_v62 = vpop.permute.xlu0 %941 }
 0xdaa   : > { %v944_v0 = vmul.f32 %v4616_v55, %v942_v62  ;;  %v432_v55 = vadd.f32 %v5435_v3, %v5397_v17 }
 0xdac   : > { %946 = vrot.lane.b32.xlu1 %v944_v0, %s5144_s18 }
 0xe1e   : > { %v947_v5 = vpop.permute.xlu1 %946 }
 0xe1f   : > { %949 = vst.msk [vmem:[#allocation2 + $0x20] sm:$0xff] %vm305_vm1, %v947_v5  ;;  %4220 = vmatmul.mubr.msk.f32.vlgmr.msra.gmra.mrb[6].mxu1 %vm305_vm1, %v947_v5 }
 0xe20   : > { %4452 = vmatpush3.bf16.msra.mxu1 %v5364_v10  ;;  %4241 = vmatprep.mubr.msk.f32.mxu1 %vm5141_vm0, %v5142_v2 }
 0xe21   : > { %4453 = vmatprep.subr.bf16.mxu1 %v5140_v1 }
 0xe24   : > { %4455 = vmatpush3.bf16.msra.mxu1 %v5373_v15 }
 0xe25   : > { %4465 = vmatprep.subr.bf16.mxu1 %v5364_v10 }
 0xef2   : > { %v1018_v8 = vpop.f32.mrb[6].mxu1 }
 0xef3   : > { %v1022_v9 = vadd.f32 %v1018_v8, %v422_v7  ;;  %v4221_v12 = vpop.f32.mrb[7].mxu1 }
 0xef5   : > { %4619 = vtanh.f32 %v1022_v9  ;;  %v3880_v14 = vmul.f32 -1.442695, %v1022_v9 }
 0xef7   : > { %4621 = vpow2.f32 %v3880_v14 }
 0xeff   : > { %v4620_v13 = vpop.eup %4619 }
 0xf00   : > { %1032 = vrot.lane.b32.xlu0 %v4620_v13, %s5143_s17 }
 0xf01   : > { %v4622_v16 = vpop.eup %4621 }
 0xf02   : > { %v1026_v18 = vadd.f32 1.0, %v4622_v16 }
 0xf04   : > { %4623 = vrcp.f32 %v1026_v18 }
 0xf0e   : > { %v4624_v1 = vpop.eup %4623 }
 0xf0f   : > { %v1030_v21 = vmul.f32 %v4624_v1, %v938_v60 }
 0xf72   : > { %v1033_v19 = vpop.permute.xlu0 %1032 }
 0xf73   : > { %v1035_v20 = vmul.f32 %v4624_v1, %v1033_v19 }
 0xf75   : > { %1037 = vrot.lane.b32.xlu1 %v1035_v20, %s5144_s18 }
 0xfe7   : > { %v1038_v22 = vpop.permute.xlu1 %1037 }
 0xfe8   : > { %v1040_v63 = vadd.f32 %v1038_v22, %v1030_v21 }
 0xfea   : > { %4625 = vtanh.f32 %v1040_v63 }
 0xff4   : > { %v4626_v23 = vpop.eup %4625 }
 0xff5   : > { %1043 = vrot.lane.b32.xlu0 %v4626_v23, %s5143_s17 }
0x1067   : > { %v1044_v24 = vpop.permute.xlu0 %1043 }
0x1068   : > { %v1046_v25 = vmul.f32 %v4624_v1, %v1044_v24 }
0x106a   : > { %1048 = vrot.lane.b32.xlu1 %v1046_v25, %s5144_s18 }
0x10dc   : > { %v1049_v26 = vpop.permute.xlu1 %1048 }
0x10dd   : > { %1051 = vst.msk [vmem:[#allocation2 + $0x28] sm:$0xff] %vm305_vm1, %v1049_v26  ;;  %4231 = vmatmul.mubr.msk.f32.vlgmr.msra.gmra.mrb[12].mxu0 %vm305_vm1, %v1049_v26 }
0x10de   : > { %4459 = vmatpush3.bf16.msra.mxu0 %v5356_v6  ;;  %4252 = vmatprep.mubr.msk.f32.mxu0 %vm305_vm1, %v1266_v27  ;;  %v1270_v6 = vld [vmem:[#allocation2 + $0x20] sm:$0xff] }
0x10df   : > { %4461 = vmatprep.subr.bf16.mxu0 %v5366_v11 }
0x10e2   : > { %4463 = vmatpush3.bf16.msra.mxu0 %v5366_v11 }
0x10e3   : > { %4473 = vmatprep.subr.bf16.mxu0 %v5364_v10 }
0x10e4   : > { %v1271_v11 = vld [vmem:[#allocation2 + $0x28] sm:$0xff] }
0x10e5   : > { %4253 = vmatmul.mubr.msk.f32.vlgmr.msra.gmra.mrb[14].mxu0 %vm305_vm1, %v1267_v28 }
0x10e6   : > { %4255 = vmatprep.mubr.msk.f32.mxu0 %vm305_vm1, %v1268_v29  ;;  %4475 = vmatpush3.bf16.msra.mxu0 %v5364_v10 }
0x10e7   : > { %4477 = vmatprep.subr.bf16.mxu0 %v5373_v15 }
0x10e9   : > { %4256 = vmatmul.mubr.msk.f32.gmra.mrb[16].mxu0 %vm305_vm1, %v1269_v30 }
0x10ea   : > { %4258 = vmatprep.mubr.msk.f32.mxu0 %vm305_vm1, %v1270_v6  ;;  %4479 = vmatpush3.bf16.msra.mxu0 %v5373_v15 }
0x10eb   : > { %4489 = vmatprep.subr.bf16.mxu0 %v5364_v10 }
0x10ed   : > { %4259 = vmatmul.mubr.msk.f32.gmra.mrb[18].mxu0 %vm305_vm1, %v1271_v11 }
0x11b0   : > { %v1120_v32 = vpop.f32.mrb[12].mxu0 }
0x11b1   : > { %v1124_v33 = vadd.f32 %v1120_v32, %v427_v31  ;;  %v4232_v34 = vpop.f32.mrb[13].mxu0 }
0x11b3   : > { %4627 = vtanh.f32 %v1124_v33  ;;  %v3882_v42 = vmul.f32 -1.442695, %v1124_v33 }
0x11b5   : > { %4629 = vpow2.f32 %v3882_v42 }
0x11b8   : > { %v5511_v35 = vpop.f32.mrb[14].mxu0 }
0x11b9   : > { %v1375_v36 = vpop.f32.mrb[15].mxu0  ;;  %v5559_v13 = vadd.f32 %v5511_v35, %v5397_v17 }
0x11ba   : > { %v5549_v0 = vadd.f32 %v5397_v17, %v1375_v36 }
0x11bc   : > { %v5513_v37 = vpop.f32.mrb[16].mxu0 }
0x11bd   : > { %v4628_v38 = vpop.eup %4627  ;;  %v1385_v39 = vpop.f32.mrb[17].mxu0  ;;  %v5571_v23 = vadd.f32 %v5513_v37, %v5397_v17 }
0x11be   : > { %1134 = vrot.lane.b32.xlu0 %v4628_v38, %s5143_s17  ;;  %v5555_v9 = vadd.f32 %v5397_v17, %v1385_v39 }
0x11bf   : > { %v4630_v4 = vpop.eup %4629 }
0x11c0   : > { %v5516_v40 = vpop.f32.mrb[18].mxu0  ;;  %v1128_v43 = vadd.f32 1.0, %v4630_v4 }
0x11c1   : > { %v5518_v41 = vpop.f32.mrb[19].mxu0 }
0x11c2   : > { %4631 = vrcp.f32 %v1128_v43  ;;  %v5564_v18 = vadd.f32 %v5397_v17, %v5518_v41 }
0x11cc   : > { %v4632_v44 = vpop.eup %4631 }
0x11cd   : > { %v1132_v47 = vmul.f32 %v4632_v44, %v1040_v63 }
0x1230   : > { %v1135_v45 = vpop.permute.xlu0 %1134 }
0x1231   : > { %v1137_v46 = vmul.f32 %v4632_v44, %v1135_v45 }
0x1233   : > { %1139 = vrot.lane.b32.xlu1 %v1137_v46, %s5144_s18 }
0x12a5   : > { %v1140_v48 = vpop.permute.xlu1 %1139 }
0x12a6   : > { %v5521_v49 = vadd.f32 %v1140_v48, %v1132_v47 }
0x12a8   : > { %4633 = vtanh.f32 %v5521_v49 }
0x12b2   : > { %v4634_v50 = vpop.eup %4633 }
0x12b3   : > { %1145 = vrot.lane.b32.xlu0 %v4634_v50, %s5143_s17 }
0x1325   : > { %v1146_v51 = vpop.permute.xlu0 %1145 }
0x1326   : > { %v1148_v52 = vmul.f32 %v4632_v44, %v1146_v51 }
0x1328   : > { %1150 = vrot.lane.b32.xlu1 %v1148_v52, %s5144_s18 }
0x139a   : > { %v1151_v53 = vpop.permute.xlu1 %1150 }
0x139b   : > { %1153 = vst.msk [vmem:[#allocation2 + $0x30] sm:$0xff] %vm305_vm1, %v1151_v53  ;;  %4242 = vmatmul.mubr.msk.f32.vlgmr.msra.gmra.mrb[8].mxu1 %vm305_vm1, %v1151_v53 }
0x139c   : > { %4467 = vmatpush3.bf16.msra.mxu1 %v5364_v10  ;;  %4272 = vmatprep.mubr.f32.mxu1 %v5142_v2 }
0x139d   : > { %4469 = vmatprep.subr.bf16.mxu1 %v5373_v15 }
0x13a0   : > { %4471 = vmatpush3.bf16.msra.mxu1 %v5373_v15 }
0x13a1   : > { %4481 = vmatprep.subr.bf16.mxu1 %v5364_v10 }
0x13a2   : > { %v1272_v54 = vld [vmem:[#allocation2 + $0x30] sm:$0xff] }
0x13a3   : > { %4273 = vmatmul.mubr.f32.vlgmr.msra.gmra.mrb[10].mxu1 %v5142_v2  ;;  %4261 = vmatprep.mubr.msk.f32.mxu0 %vm305_vm1, %v1272_v54 }
0x13a4   : > { %4275 = vmatprep.mubr.f32.mxu1 %v5142_v2  ;;  %4483 = vmatpush3.bf16.msra.mxu1 %v5364_v10 }
0x13a5   : > { %4485 = vmatprep.subr.bf16.mxu1 %v5373_v15 }
0x13a7   : > { %4276 = vmatmul.mubr.f32.gmra.mrb[12].mxu1 %v5142_v2 }
0x13a8   : > { %4278 = vmatprep.mubr.f32.mxu1 %v5142_v2  ;;  %4487 = vmatpush3.bf16.msra.mxu1 %v5373_v15 }
0x13ab   : > { %4279 = vmatmul.mubr.f32.gmra.mrb[14].mxu1 %v5142_v2 }
0x13ac   : > { %4281 = vmatprep.mubr.f32.mxu1 %v5142_v2 }
0x13af   : > { %4282 = vmatmul.mubr.f32.gmra.mrb[16].mxu1 %v5142_v2 }
0x146e   : > { %v1222_v56 = vpop.f32.mrb[8].mxu1 }
0x146f   : > { %v1226_v57 = vadd.f32 %v1222_v56, %v432_v55  ;;  %v4243_v58 = vpop.f32.mrb[9].mxu1 }
0x1471   : > { %4635 = vtanh.f32 %v1226_v57  ;;  %v3884_v30 = vmul.f32 -1.442695, %v1226_v57 }
0x1476   : > { %v4274_v59 = vpop.f32.mrb[10].mxu1 }
0x1477   : > { %v1540_v60 = vadd.f32 %v4274_v59, %v5397_v17  ;;  %v1500_v61 = vpop.f32.mrb[11].mxu1 }
0x1478   : > { %v1539_v62 = vadd.f32 %v5397_v17, %v1500_v61 }
0x1479   : > { %4637 = vtanh.f32 %v1540_v60  ;;  %v3896_v6 = vmul.f32 -1.442695, %v1540_v60 }
0x147a   : > { %4639 = vtanh.f32 %v1539_v62  ;;  %v4277_v5 = vpop.f32.mrb[12].mxu1  ;;  %v3895_v11 = vmul.f32 -1.442695, %v1539_v62 }
0x147b   : > { %v4636_v2 = vpop.eup %4635  ;;  %v1542_v7 = vadd.f32 %v4277_v5, %v5549_v0  ;;  %v1510_v3 = vpop.f32.mrb[13].mxu1 }
0x147c   : > { %v1541_v8 = vadd.f32 %v5397_v17, %v1510_v3  ;;  %1236 = vrot.lane.b32.xlu0 %v4636_v2, %s5143_s17 }
0x147d   : > { %4641 = vtanh.f32 %v1542_v7  ;;  %v3898_v31 = vmul.f32 -1.442695, %v1542_v7 }
0x147e   : > { %4643 = vtanh.f32 %v1541_v8  ;;  %v4280_v12 = vpop.f32.mrb[14].mxu1  ;;  %v3897_v33 = vmul.f32 -1.442695, %v1541_v8 }
0x147f   : > { %v1544_v14 = vadd.f32 %v4280_v12, %v5555_v9  ;;  %v1520_v16 = vpop.f32.mrb[15].mxu1 }
0x1480   : > { %v1543_v1 = vadd.f32 %v1520_v16, %v5559_v13 }
0x1481   : > { %4645 = vtanh.f32 %v1544_v14  ;;  %v3900_v35 = vmul.f32 -1.442695, %v1544_v14 }
0x1482   : > { %v4283_v19 = vpop.f32.mrb[16].mxu1  ;;  %4647 = vtanh.f32 %v1543_v1  ;;  %v3899_v36 = vmul.f32 -1.442695, %v1543_v1 }
0x1483   : > { %v4638_v20 = vpop.eup %4637  ;;  %v1546_v21 = vadd.f32 %v4283_v19, %v5564_v18  ;;  %v1530_v22 = vpop.f32.mrb[17].mxu1 }
0x1484   : > { %v4640_v63 = vpop.eup %4639  ;;  %1621 = vrot.lane.b32.xlu0 %v4638_v20, %s5143_s17  ;;  %v1545_v25 = vadd.f32 %v1530_v22, %v5571_v23 }
0x1485   : > { %1619 = vrot.lane.b32.xlu1 %v4640_v63, %s5143_s17  ;;  %4649 = vtanh.f32 %v1546_v21  ;;  %v3902_v38 = vmul.f32 -1.442695, %v1546_v21 }
0x1486   : > { %4651 = vtanh.f32 %v1545_v25  ;;  %v3901_v43 = vmul.f32 -1.442695, %v1545_v25 }
0x1487   : > { %v4642_v24 = vpop.eup %4641  ;;  %4653 = vpow2.f32 %v3884_v30 }
0x1488   : > { %v4644_v26 = vpop.eup %4643  ;;  %1625 = vrot.lane.b32.xlu0 %v4642_v24, %s5143_s17  ;;  %4655 = vpow2.f32 %v3896_v6 }
0x1489   : > { %1623 = vrot.lane.b32.xlu1 %v4644_v26, %s5143_s17  ;;  %4657 = vpow2.f32 %v3895_v11 }
0x148a   : > { %4659 = vpow2.f32 %v3898_v31 }
0x148b   : > { %v4646_v27 = vpop.eup %4645  ;;  %4661 = vpow2.f32 %v3897_v33 }
0x148c   : > { %1629 = vrot.lane.b32.xlu0 %v4646_v27, %s5143_s17  ;;  %v4648_v28 = vpop.eup %4647 }
0x148d   : > { %1627 = vrot.lane.b32.xlu1 %v4648_v28, %s5143_s17 }
0x148f   : > { %v4650_v29 = vpop.eup %4649 }
0x1490   : > { %1633 = vrot.lane.b32.xlu0 %v4650_v29, %s5143_s17  ;;  %v4652_v17 = vpop.eup %4651 }
0x1491   : > { %1631 = vrot.lane.b32.xlu1 %v4652_v17, %s5143_s17  ;;  %v4654_v32 = vpop.eup %4653 }
0x1492   : > { %v1230_v34 = vadd.f32 1.0, %v4654_v32  ;;  %v4656_v37 = vpop.eup %4655 }
0x1493   : > { %v4658_v39 = vpop.eup %4657  ;;  %v1572_v41 = vadd.f32 1.0, %v4656_v37 }
0x1494   : > { %4663 = vrcp.f32 %v1230_v34  ;;  %v1571_v42 = vadd.f32 1.0, %v4658_v39  ;;  %v4660_v4 = vpop.eup %4659 }
0x1495   : > { %4665 = vpow2.f32 %v3900_v35  ;;  %v4662_v44 = vpop.eup %4661  ;;  %v1574_v45 = vadd.f32 1.0, %v4660_v4 }
0x1496   : > { %4667 = vpow2.f32 %v3899_v36  ;;  %v1573_v47 = vadd.f32 1.0, %v4662_v44 }
0x1497   : > { %4669 = vpow2.f32 %v3902_v38 }
0x1498   : > { %4671 = vrcp.f32 %v1572_v41 }
0x1499   : > { %4673 = vrcp.f32 %v1571_v42 }
0x149a   : > { %4675 = vpow2.f32 %v3901_v43 }
0x149b   : > { %4677 = vrcp.f32 %v1574_v45 }
0x149c   : > { %4679 = vrcp.f32 %v1573_v47 }
0x149e   : > { %v5581_v46 = vpop.eup %4663 }
0x149f   : > { %v4666_v48 = vpop.eup %4665  ;;  %v1234_v17 = vmul.f32 %v5581_v46, %v5521_v49 }
0x14a0   : > { %v4668_v52 = vpop.eup %4667  ;;  %v1576_v53 = vadd.f32 1.0, %v4666_v48 }
0x14a1   : > { %v4670_v54 = vpop.eup %4669  ;;  %v1575_v55 = vadd.f32 1.0, %v4668_v52 }
0x14a2   : > { %v5585_v56 = vpop.eup %4671  ;;  %4681 = vrcp.f32 %v1576_v53  ;;  %v1578_v57 = vadd.f32 1.0, %v4670_v54 }
0x14a3   : > { %v5587_v58 = vpop.eup %4673  ;;  %4683 = vrcp.f32 %v1575_v55  ;;  %v1604_v11 = vmul.f32 0.0, %v5585_v56 }
0x14a4   : > { %v4676_v60 = vpop.eup %4675  ;;  %4685 = vrcp.f32 %v1578_v57  ;;  %v1603_v32 = vmul.f32 0.0, %v5587_v58 }
0x14a5   : > { %v5592_v2 = vpop.eup %4677  ;;  %v1577_v7 = vadd.f32 1.0, %v4676_v60 }
0x14a6   : > { %v5595_v8 = vpop.eup %4679  ;;  %v1606_v36 = vmul.f32 0.0, %v5592_v2 }
0x14a7   : > { %4687 = vrcp.f32 %v1577_v7  ;;  %v1605_v37 = vmul.f32 0.0, %v5595_v8 }
0x14ac   : > { %v5601_v1 = vpop.eup %4681 }
0x14ad   : > { %v5604_v21 = vpop.eup %4683  ;;  %v1608_v4 = vmul.f32 0.0, %v5601_v1 }
0x14ae   : > { %v5607_v63 = vpop.eup %4685  ;;  %v1607_v45 = vmul.f32 0.0, %v5604_v21 }
0x14af   : > { %v1610_v48 = vmul.f32 0.0, %v5607_v63 }
0x14b1   : > { %v5613_v27 = vpop.eup %4687 }
0x14b2   : > { %v1609_v57 = vmul.f32 0.0, %v5613_v27 }
0x14ee   : > { %v1237_v50 = vpop.permute.xlu0 %1236 }
0x14ef   : > { %v1239_v51 = vmul.f32 %v5581_v46, %v1237_v50 }
0x14f1   : > { %1241 = vrot.lane.b32.xlu1 %v1239_v51, %s5144_s18 }
0x14f6   : > { %v1622_v59 = vpop.permute.xlu0 %1621 }
0x14f7   : > { %v1644_v61 = vmul.f32 %v5585_v56, %v1622_v59  ;;  %v1620_v62 = vpop.permute.xlu1 %1619 }
0x14f8   : > { %v1643_v5 = vmul.f32 %v5587_v58, %v1620_v62 }
0x14f9   : > { %1661 = vrot.lane.b32.xlu1 %v1644_v61, %s5144_s18 }
0x14fa   : > { %1659 = vrot.lane.b32.xlu0 %v1643_v5, %s5144_s18  ;;  %v1626_v3 = vpop.permute.xlu0 %1625 }
0x14fb   : > { %v1646_v12 = vmul.f32 %v5592_v2, %v1626_v3  ;;  %v1624_v14 = vpop.permute.xlu1 %1623 }
0x14fc   : > { %v1645_v16 = vmul.f32 %v5595_v8, %v1624_v14 }
0x14fd   : > { %1665 = vrot.lane.b32.xlu1 %v1646_v12, %s5144_s18 }
0x14fe   : > { %1663 = vrot.lane.b32.xlu0 %v1645_v16, %s5144_s18  ;;  %v1630_v19 = vpop.permute.xlu0 %1629 }
0x14ff   : > { %v1648_v20 = vmul.f32 %v5601_v1, %v1630_v19  ;;  %v1628_v22 = vpop.permute.xlu1 %1627 }
0x1500   : > { %v1647_v24 = vmul.f32 %v5604_v21, %v1628_v22 }
0x1501   : > { %1669 = vrot.lane.b32.xlu1 %v1648_v20, %s5144_s18 }
0x1502   : > { %v1634_v25 = vpop.permute.xlu0 %1633  ;;  %1667 = vrot.lane.b32.xlu0 %v1647_v24, %s5144_s18 }
0x1503   : > { %v1650_v26 = vmul.f32 %v5607_v63, %v1634_v25  ;;  %v1632_v28 = vpop.permute.xlu1 %1631 }
0x1504   : > { %v1649_v29 = vmul.f32 %v5613_v27, %v1632_v28 }
0x1505   : > { %1673 = vrot.lane.b32.xlu1 %v1650_v26, %s5144_s18 }
0x1506   : > { %1671 = vrot.lane.b32.xlu0 %v1649_v29, %s5144_s18 }
0x1563   : > { %v1242_v30 = vpop.permute.xlu1 %1241 }
0x1564   : > { %v1244_v6 = vadd.f32 %v1242_v30, %v1234_v17 }
0x1566   : > { %4689 = vtanh.f32 %v1244_v6 }
0x156b   : > { %v1662_v31 = vpop.permute.xlu1 %1661 }
0x156c   : > { %v5621_v33 = vadd.f32 %v1662_v31, %v1604_v11  ;;  %v1660_v34 = vpop.permute.xlu0 %1659 }
0x156d   : > { %v5623_v35 = vadd.f32 %v1660_v34, %v1603_v32 }
0x156e   : > { %4691 = vtanh.f32 %v5621_v33 }
0x156f   : > { %4693 = vtanh.f32 %v5623_v35  ;;  %v1666_v49 = vpop.permute.xlu1 %1665 }
0x1570   : > { %v4690_v38 = vpop.eup %4689  ;;  %v5629_v39 = vadd.f32 %v1666_v49, %v1606_v36  ;;  %v1664_v41 = vpop.permute.xlu0 %1663 }
0x1571   : > { %v5631_v42 = vadd.f32 %v1664_v41, %v1605_v37  ;;  %1247 = vrot.lane.b32.xlu0 %v4690_v38, %s5143_s17  ;;  %v5706_v37 = vld [vmem:[%s6639_s3] ss:$0 sm:$0xff] }
0x1572   : > { %4695 = vtanh.f32 %v5629_v39 }
0x1573   : > { %4697 = vtanh.f32 %v5631_v42  ;;  %v1670_v43 = vpop.permute.xlu1 %1669 }
0x1574   : > { %v5637_v44 = vadd.f32 %v1670_v43, %v1608_v4  ;;  %v1668_v47 = vpop.permute.xlu0 %1667 }
0x1575   : > { %v5642_v51 = vadd.f32 %v1668_v47, %v1607_v45 }
0x1576   : > { %4699 = vtanh.f32 %v5637_v44 }
0x1577   : > { %v1674_v52 = vpop.permute.xlu1 %1673  ;;  %4701 = vtanh.f32 %v5642_v51 }
0x1578   : > { %v4692_v50 = vpop.eup %4691  ;;  %v5644_v54 = vadd.f32 %v1674_v52, %v1610_v48  ;;  %v1672_v60 = vpop.permute.xlu0 %1671 }
0x1579   : > { %v4694_v53 = vpop.eup %4693  ;;  %1709 = vrot.lane.b32.xlu0 %v4692_v50, %s5143_s17  ;;  %v5652_v61 = vadd.f32 %v1672_v60, %v1609_v57  ;;  %v5717_v60 = vadd.f32 %v5706_v37, %v5516_v40 }
0x157a   : > { %1707 = vrot.lane.b32.xlu1 %v4694_v53, %s5143_s17  ;;  %4703 = vtanh.f32 %v5644_v54 }
0x157b   : > { %4705 = vtanh.f32 %v5652_v61 }
0x157c   : > { %v4696_v55 = vpop.eup %4695 }
0x157d   : > { %v4698_v59 = vpop.eup %4697  ;;  %1713 = vrot.lane.b32.xlu0 %v4696_v55, %s5143_s17 }
0x157e   : > { %1711 = vrot.lane.b32.xlu1 %v4698_v59, %s5143_s17 }
0x1580   : > { %v4700_v62 = vpop.eup %4699 }
0x1581   : > { %1717 = vrot.lane.b32.xlu0 %v4700_v62, %s5143_s17  ;;  %v4702_v5 = vpop.eup %4701 }
0x1582   : > { %1715 = vrot.lane.b32.xlu1 %v4702_v5, %s5143_s17 }
0x1584   : > { %v4704_v7 = vpop.eup %4703 }
0x1585   : > { %1721 = vrot.lane.b32.xlu0 %v4704_v7, %s5143_s17  ;;  %v4706_v3 = vpop.eup %4705 }
0x1586   : > { %1719 = vrot.lane.b32.xlu1 %v4706_v3, %s5143_s17 }
0x15e3   : > { %v1248_v12 = vpop.permute.xlu0 %1247 }
0x15e4   : > { %v1250_v14 = vmul.f32 %v5581_v46, %v1248_v12 }
0x15e6   : > { %1252 = vrot.lane.b32.xlu1 %v1250_v14, %s5144_s18 }
0x15eb   : > { %v1710_v16 = vpop.permute.xlu0 %1709 }
0x15ec   : > { %v1732_v19 = vmul.f32 %v5585_v56, %v1710_v16  ;;  %v1708_v20 = vpop.permute.xlu1 %1707 }
0x15ed   : > { %v1731_v22 = vmul.f32 %v5587_v58, %v1708_v20 }
0x15ee   : > { %1749 = vrot.lane.b32.xlu1 %v1732_v19, %s5144_s18 }
0x15ef   : > { %1747 = vrot.lane.b32.xlu0 %v1731_v22, %s5144_s18  ;;  %v1714_v24 = vpop.permute.xlu0 %1713 }
0x15f0   : > { %v1734_v25 = vmul.f32 %v5592_v2, %v1714_v24  ;;  %v1712_v26 = vpop.permute.xlu1 %1711 }
0x15f1   : > { %v1733_v28 = vmul.f32 %v5595_v8, %v1712_v26 }
0x15f2   : > { %1753 = vrot.lane.b32.xlu1 %v1734_v25, %s5144_s18 }
0x15f3   : > { %1751 = vrot.lane.b32.xlu0 %v1733_v28, %s5144_s18  ;;  %v1718_v46 = vpop.permute.xlu0 %1717 }
0x15f4   : > { %v1736_v56 = vmul.f32 %v5601_v1, %v1718_v46  ;;  %v1716_v29 = vpop.permute.xlu1 %1715 }
0x15f5   : > { %v1735_v58 = vmul.f32 %v5604_v21, %v1716_v29 }
0x15f6   : > { %1757 = vrot.lane.b32.xlu1 %v1736_v56, %s5144_s18 }
0x15f7   : > { %v1722_v17 = vpop.permute.xlu0 %1721  ;;  %1755 = vrot.lane.b32.xlu0 %v1735_v58, %s5144_s18 }
0x15f8   : > { %v1738_v30 = vmul.f32 %v5607_v63, %v1722_v17  ;;  %v1720_v2 = vpop.permute.xlu1 %1719 }
0x15f9   : > { %v1737_v8 = vmul.f32 %v5613_v27, %v1720_v2 }
0x15fa   : > { %1761 = vrot.lane.b32.xlu1 %v1738_v30, %s5144_s18 }
0x15fb   : > { %1759 = vrot.lane.b32.xlu0 %v1737_v8, %s5144_s18 }
0x1658   : > { %v1253_v6 = vpop.permute.xlu1 %1252 }
0x1659   : > { %1255 = vst.msk [vmem:[#allocation2 + $0x38] sm:$0xff] %vm305_vm1, %v1253_v6 }
0x1660   : > { %v1750_v1 = vpop.permute.xlu1 %1749  ;;  %v1273_v11 = vld [vmem:[#allocation2 + $0x38] sm:$0xff] }
0x1661   : > { %1772 = vst.msk [vmem:[#allocation4 + $0x8] sm:$0xff] %vm305_vm1, %v1750_v1  ;;  %v1748_v21 = vpop.permute.xlu0 %1747  ;;  %4262 = vmatmul.mubr.msk.f32.gmra.mrb[20].mxu0 %vm305_vm1, %v1273_v11 }
0x1662   : > { %1771 = vst.msk [vmem:[#allocation4] sm:$0xff] %vm305_vm1, %v1748_v21  ;;  %4292 = vmatprep.mubr.msk.f32.mxu0 %vm305_vm1, %v1748_v21 }
0x1664   : > { %v1754_v63 = vpop.permute.xlu1 %1753 }
0x1665   : > { %1774 = vst.msk [vmem:[#allocation4 + $0x18] sm:$0xff] %vm305_vm1, %v1754_v63  ;;  %v1752_v27 = vpop.permute.xlu0 %1751  ;;  %4293 = vmatmul.mubr.msk.f32.vlgmr.msra.gmra.mrb[22].mxu0 %vm305_vm1, %v1750_v1 }
0x1666   : > { %1773 = vst.msk [vmem:[#allocation4 + $0x10] sm:$0xff] %vm305_vm1, %v1752_v27  ;;  %4295 = vmatprep.mubr.msk.f32.mxu0 %vm305_vm1, %v1752_v27  ;;  %4491 = vmatpush3.bf16.msra.mxu0 %v5364_v10 }
0x1667   : > { %4493 = vmatprep.subr.bf16.mxu0 %v5373_v15 }
0x1668   : > { %v1758_v31 = vpop.permute.xlu1 %1757 }
0x1669   : > { %4296 = vmatmul.mubr.msk.f32.gmra.mrb[24].mxu0 %vm305_vm1, %v1754_v63  ;;  %1776 = vst.msk [vmem:[#allocation4 + $0x28] sm:$0xff] %vm305_vm1, %v1758_v31  ;;  %v1756_v32 = vpop.permute.xlu0 %1755 }
0x166a   : > { %4495 = vmatpush3.bf16.msra.mxu0 %v5373_v15  ;;  %1775 = vst.msk [vmem:[#allocation4 + $0x20] sm:$0xff] %vm305_vm1, %v1756_v32  ;;  %4298 = vmatprep.mubr.msk.f32.mxu0 %vm305_vm1, %v1756_v32 }
0x166c   : > { %v1762_v34 = vpop.permute.xlu1 %1761 }
0x166d   : > { %1778 = vst.msk [vmem:[#allocation4 + $0x38] sm:$0xff] %vm305_vm1, %v1762_v34  ;;  %4299 = vmatmul.mubr.msk.f32.gmra.mrb[26].mxu0 %vm305_vm1, %v1758_v31  ;;  %v1760_v10 = vpop.permute.xlu0 %1759 }
0x166e   : > { %1777 = vst.msk [vmem:[#allocation4 + $0x30] sm:$0xff] %vm305_vm1, %v1760_v10  ;;  %4301 = vmatprep.mubr.msk.f32.mxu0 %vm305_vm1, %v1760_v10 }
0x1671   : > { %4302 = vmatmul.mubr.msk.f32.gmra.mrb[28].mxu0 %vm305_vm1, %v1762_v34 }
0x1734   : > { %v5699_v36 = vpop.f32.mrb[20].mxu0 }
0x1735   : > { %v5701_v15 = vpop.f32.mrb[21].mxu0 }
0x1738   : > { %v4294_v49 = vpop.f32.mrb[22].mxu0 }
0x1739   : > { %v1909_v38 = vadd.f32 %v5706_v37, %v4294_v49  ;;  %v1869_v41 = vpop.f32.mrb[23].mxu0 }
0x173a   : > { %v1908_v4 = vadd.f32 %v5706_v37, %v1869_v41 }
0x173b   : > { %4707 = vtanh.f32 %v1909_v38  ;;  %v3912_v22 = vmul.f32 -1.442695, %v1909_v38 }
0x173c   : > { %4709 = vtanh.f32 %v1908_v4  ;;  %v4297_v43 = vpop.f32.mrb[24].mxu0  ;;  %v3911_v24 = vmul.f32 -1.442695, %v1908_v4 }
0x173d   : > { %v1911_v45 = vadd.f32 %v4297_v43, %v5559_v13  ;;  %v1879_v47 = vpop.f32.mrb[25].mxu0 }
0x173e   : > { %v1910_v48 = vadd.f32 %v1879_v47, %v5549_v0 }
0x173f   : > { %4711 = vtanh.f32 %v1911_v45  ;;  %v3914_v25 = vmul.f32 -1.442695, %v1911_v45 }
0x1740   : > { %4713 = vtanh.f32 %v1910_v48  ;;  %v4300_v50 = vpop.f32.mrb[26].mxu0  ;;  %v3913_v26 = vmul.f32 -1.442695, %v1910_v48 }
0x1741   : > { %v1913_v52 = vadd.f32 %v4300_v50, %v5571_v23  ;;  %v1889_v53 = vpop.f32.mrb[27].mxu0 }
0x1742   : > { %v1912_v55 = vadd.f32 %v1889_v53, %v5555_v9 }
0x1743   : > { %4715 = vtanh.f32 %v1913_v52  ;;  %v3916_v28 = vmul.f32 -1.442695, %v1913_v52 }
0x1744   : > { %4717 = vtanh.f32 %v1912_v55  ;;  %v4303_v62 = vpop.f32.mrb[28].mxu0  ;;  %v3915_v46 = vmul.f32 -1.442695, %v1912_v55 }
0x1745   : > { %v4708_v57 = vpop.eup %4707  ;;  %v1899_v5 = vpop.f32.mrb[29].mxu0  ;;  %v1915_v3 = vadd.f32 %v4303_v62, %v5717_v60 }
0x1746   : > { %v4710_v59 = vpop.eup %4709  ;;  %1990 = vrot.lane.b32.xlu1 %v4708_v57, %s5143_s17  ;;  %v1914_v14 = vadd.f32 %v1899_v5, %v5564_v18 }
0x1747   : > { %1988 = vrot.lane.b32.xlu0 %v4710_v59, %s5143_s17  ;;  %4719 = vtanh.f32 %v1915_v3  ;;  %v3918_v8 = vmul.f32 -1.442695, %v1915_v3 }
0x1748   : > { %4721 = vtanh.f32 %v1914_v14  ;;  %v3917_v11 = vmul.f32 -1.442695, %v1914_v14 }
0x1749   : > { %v4712_v7 = vpop.eup %4711  ;;  %4723 = vpow2.f32 %v3912_v22 }
0x174a   : > { %v4714_v12 = vpop.eup %4713  ;;  %1994 = vrot.lane.b32.xlu1 %v4712_v7, %s5143_s17  ;;  %4725 = vpow2.f32 %v3911_v24 }
0x174b   : > { %1992 = vrot.lane.b32.xlu0 %v4714_v12, %s5143_s17  ;;  %4727 = vpow2.f32 %v3914_v25 }
0x174c   : > { %4729 = vpow2.f32 %v3913_v26 }
0x174d   : > { %v4716_v16 = vpop.eup %4715  ;;  %4731 = vpow2.f32 %v3916_v28 }
0x174e   : > { %v4718_v19 = vpop.eup %4717  ;;  %1998 = vrot.lane.b32.xlu1 %v4716_v16, %s5143_s17  ;;  %4733 = vpow2.f32 %v3915_v46 }
0x174f   : > { %1996 = vrot.lane.b32.xlu0 %v4718_v19, %s5143_s17 }
0x1751   : > { %v4720_v40 = vpop.eup %4719 }
0x1752   : > { %2002 = vrot.lane.b32.xlu1 %v4720_v40, %s5143_s17  ;;  %v4722_v20 = vpop.eup %4721 }
0x1753   : > { %2000 = vrot.lane.b32.xlu0 %v4722_v20, %s5143_s17  ;;  %v4724_v56 = vpop.eup %4723 }
0x1754   : > { %v4726_v29 = vpop.eup %4725  ;;  %v1941_v58 = vadd.f32 1.0, %v4724_v56 }
0x1755   : > { %v4728_v17 = vpop.eup %4727  ;;  %v1940_v30 = vadd.f32 1.0, %v4726_v29 }
0x1756   : > { %v4730_v2 = vpop.eup %4729  ;;  %4735 = vrcp.f32 %v1941_v58  ;;  %v1943_v6 = vadd.f32 1.0, %v4728_v17 }
0x1757   : > { %4737 = vrcp.f32 %v1940_v30  ;;  %v1942_v1 = vadd.f32 1.0, %v4730_v2  ;;  %v4732_v21 = vpop.eup %4731 }
0x1758   : > { %4739 = vpow2.f32 %v3918_v8  ;;  %v4734_v63 = vpop.eup %4733  ;;  %v1945_v27 = vadd.f32 1.0, %v4732_v21 }
0x1759   : > { %4741 = vrcp.f32 %v1943_v6  ;;  %v1944_v31 = vadd.f32 1.0, %v4734_v63 }
0x175a   : > { %4743 = vrcp.f32 %v1942_v1 }
0x175b   : > { %4745 = vpow2.f32 %v3917_v11 }
0x175c   : > { %4747 = vrcp.f32 %v1945_v27 }
0x175d   : > { %4749 = vrcp.f32 %v1944_v31 }
0x1760   : > { %v5728_v32 = vpop.eup %4735 }
0x1761   : > { %v5730_v34 = vpop.eup %4737  ;;  %v1973_v24 = vmul.f32 %v5728_v32, %v5621_v33 }
0x1762   : > { %v4740_v49 = vpop.eup %4739  ;;  %v1972_v26 = vmul.f32 %v5730_v34, %v5623_v35 }
0x1763   : > { %v5734_v43 = vpop.eup %4741  ;;  %v1947_v47 = vadd.f32 1.0, %v4740_v49 }
0x1764   : > { %v5737_v45 = vpop.eup %4743  ;;  %v1975_v29 = vmul.f32 %v5734_v43, %v5629_v39 }
0x1765   : > { %v4746_v50 = vpop.eup %4745  ;;  %4751 = vrcp.f32 %v1947_v47  ;;  %v1974_v33 = vmul.f32 %v5737_v45, %v5631_v42 }
0x1766   : > { %v1946_v57 = vadd.f32 1.0, %v4746_v50  ;;  %v5744_v59 = vpop.eup %4747 }
0x1767   : > { %v5746_v5 = vpop.eup %4749  ;;  %v1977_v2 = vmul.f32 %v5744_v59, %v5637_v44 }
0x1768   : > { %4753 = vrcp.f32 %v1946_v57  ;;  %v1976_v39 = vmul.f32 %v5746_v5, %v5642_v51 }
0x176f   : > { %v5752_v14 = vpop.eup %4751 }
0x1770   : > { %v1979_v63 = vmul.f32 %v5752_v14, %v5644_v54 }
0x1772   : > { %v5756_v40 = vpop.eup %4753 }
0x17b8   : > { %v1991_v10 = vpop.permute.xlu1 %1990 }
0x17b9   : > { %v2013_v38 = vmul.f32 %v5728_v32, %v1991_v10  ;;  %v1989_v41 = vpop.permute.xlu0 %1988  ;;  %v1978_v10 = vmul.f32 %v5756_v40, %v5652_v61 }
0x17ba   : > { %v2012_v4 = vmul.f32 %v5730_v34, %v1989_v41 }
0x17bb   : > { %2030 = vrot.lane.b32.xlu1 %v2013_v38, %s5144_s18 }
0x17bc   : > { %v1995_v48 = vpop.permute.xlu1 %1994  ;;  %2028 = vrot.lane.b32.xlu0 %v2012_v4, %s5144_s18 }
0x17bd   : > { %v2015_v52 = vmul.f32 %v5734_v43, %v1995_v48  ;;  %v1993_v53 = vpop.permute.xlu0 %1992 }
0x17be   : > { %v2014_v55 = vmul.f32 %v5737_v45, %v1993_v53  ;;  %v2919_v53 = vld [vmem:[%s6640_s4 + $0x8] sm:$0xff] }
0x17bf   : > { %2034 = vrot.lane.b32.xlu1 %v2015_v52, %s5144_s18  ;;  %v2918_v52 = vld [vmem:[%s6640_s4] sm:$0xff] }
0x17c0   : > { %2032 = vrot.lane.b32.xlu0 %v2014_v55, %s5144_s18  ;;  %v1999_v62 = vpop.permute.xlu1 %1998  ;;  %v5816_v57 = vpack.c.bf16 %v2919_v53, %v2918_v52  ;;  %v5877_v52 = vadd.f32 %v5706_v37, %v5701_v15 }
0x17c1   : > { %v2017_v7 = vmul.f32 %v5744_v59, %v1999_v62  ;;  %v1997_v3 = vpop.permute.xlu0 %1996 }
0x17c2   : > { %v2016_v12 = vmul.f32 %v5746_v5, %v1997_v3  ;;  %4504 = vmatprep.subr.bf16.mxu1 %v5816_v57  ;;  %4497 = vmatprep.subr.bf16.mxu0 %v5816_v57 }
0x17c3   : > { %2038 = vrot.lane.b32.xlu1 %v2017_v7, %s5144_s18 }
0x17c4   : > { %2036 = vrot.lane.b32.xlu0 %v2016_v12, %s5144_s18  ;;  %v2003_v16 = vpop.permute.xlu1 %2002 }
0x17c5   : > { %v2019_v19 = vmul.f32 %v5752_v14, %v2003_v16  ;;  %v2001_v20 = vpop.permute.xlu0 %2000 }
0x17c6   : > { %v2018_v22 = vmul.f32 %v5756_v40, %v2001_v20 }
0x17c7   : > { %2042 = vrot.lane.b32.xlu1 %v2019_v19, %s5144_s18 }
0x17c8   : > { %2040 = vrot.lane.b32.xlu0 %v2018_v22, %s5144_s18 }
0x182d   : > { %v2031_v25 = vpop.permute.xlu1 %2030 }
0x182e   : > { %v5764_v28 = vadd.f32 %v2031_v25, %v1973_v24  ;;  %v2029_v46 = vpop.permute.xlu0 %2028 }
0x182f   : > { %v5766_v56 = vadd.f32 %v2029_v46, %v1972_v26 }
0x1830   : > { %4755 = vtanh.f32 %v5764_v28 }
0x1831   : > { %4757 = vtanh.f32 %v5766_v56  ;;  %v2035_v58 = vpop.permute.xlu1 %2034 }
0x1832   : > { %v5774_v17 = vadd.f32 %v2035_v58, %v1975_v29  ;;  %v2033_v30 = vpop.permute.xlu0 %2032 }
0x1833   : > { %v5776_v35 = vadd.f32 %v2033_v30, %v1974_v33 }
0x1834   : > { %4759 = vtanh.f32 %v5774_v17 }
0x1835   : > { %4761 = vtanh.f32 %v5776_v35  ;;  %v2039_v8 = vpop.permute.xlu1 %2038 }
0x1836   : > { %v5784_v6 = vadd.f32 %v2039_v8, %v1977_v2  ;;  %v2037_v1 = vpop.permute.xlu0 %2036 }
0x1837   : > { %v5786_v42 = vadd.f32 %v2037_v1, %v1976_v39 }
0x1838   : > { %4763 = vtanh.f32 %v5784_v6 }
0x1839   : > { %4765 = vtanh.f32 %v5786_v42  ;;  %v2043_v27 = vpop.permute.xlu1 %2042 }
0x183a   : > { %v4756_v11 = vpop.eup %4755  ;;  %v5795_v31 = vadd.f32 %v2043_v27, %v1979_v63  ;;  %v2041_v38 = vpop.permute.xlu0 %2040 }
0x183b   : > { %v4758_v21 = vpop.eup %4757  ;;  %2078 = vrot.lane.b32.xlu1 %v4756_v11, %s5143_s17  ;;  %v5801_v4 = vadd.f32 %v2041_v38, %v1978_v10 }
0x183c   : > { %2076 = vrot.lane.b32.xlu0 %v4758_v21, %s5143_s17  ;;  %4767 = vtanh.f32 %v5795_v31 }
0x183d   : > { %4769 = vtanh.f32 %v5801_v4 }
0x183e   : > { %v4760_v44 = vpop.eup %4759 }
0x183f   : > { %v4762_v51 = vpop.eup %4761  ;;  %2082 = vrot.lane.b32.xlu1 %v4760_v44, %s5143_s17 }
0x1840   : > { %2080 = vrot.lane.b32.xlu0 %v4762_v51, %s5143_s17 }
0x1842   : > { %v4764_v49 = vpop.eup %4763 }
0x1843   : > { %v4766_v41 = vpop.eup %4765  ;;  %2086 = vrot.lane.b32.xlu1 %v4764_v49, %s5143_s17 }
0x1844   : > { %2084 = vrot.lane.b32.xlu0 %v4766_v41, %s5143_s17 }
0x1846   : > { %v4768_v54 = vpop.eup %4767 }
0x1847   : > { %2090 = vrot.lane.b32.xlu1 %v4768_v54, %s5143_s17  ;;  %v4770_v47 = vpop.eup %4769 }
0x1848   : > { %2088 = vrot.lane.b32.xlu0 %v4770_v47, %s5143_s17 }
0x18ad   : > { %v2079_v48 = vpop.permute.xlu1 %2078 }
0x18ae   : > { %v2101_v61 = vmul.f32 %v5728_v32, %v2079_v48  ;;  %v2077_v50 = vpop.permute.xlu0 %2076 }
0x18af   : > { %v2100_v55 = vmul.f32 %v5730_v34, %v2077_v50 }
0x18b0   : > { %2118 = vrot.lane.b32.xlu1 %v2101_v61, %s5144_s18 }
0x18b1   : > { %v2083_v62 = vpop.permute.xlu1 %2082  ;;  %2116 = vrot.lane.b32.xlu0 %v2100_v55, %s5144_s18 }
0x18b2   : > { %v2103_v32 = vmul.f32 %v5734_v43, %v2083_v62  ;;  %v2081_v7 = vpop.permute.xlu0 %2080 }
0x18b3   : > { %v2102_v3 = vmul.f32 %v5737_v45, %v2081_v7 }
0x18b4   : > { %2122 = vrot.lane.b32.xlu1 %v2103_v32, %s5144_s18 }
0x18b5   : > { %2120 = vrot.lane.b32.xlu0 %v2102_v3, %s5144_s18  ;;  %v2087_v34 = vpop.permute.xlu1 %2086 }
0x18b6   : > { %v2105_v12 = vmul.f32 %v5744_v59, %v2087_v34  ;;  %v2085_v16 = vpop.permute.xlu0 %2084  ;;  %v2920_v59 = vld [vmem:[%s6640_s4 + $0x10] sm:$0xff] }
0x18b7   : > { %v2104_v19 = vmul.f32 %v5746_v5, %v2085_v16  ;;  %v2921_v5 = vld [vmem:[%s6640_s4 + $0x18] sm:$0xff] }
0x18b8   : > { %2126 = vrot.lane.b32.xlu1 %v2105_v12, %s5144_s18 }
0x18b9   : > { %2124 = vrot.lane.b32.xlu0 %v2104_v19, %s5144_s18  ;;  %v2091_v43 = vpop.permute.xlu1 %2090 }
0x18ba   : > { %v2107_v20 = vmul.f32 %v5752_v14, %v2091_v43  ;;  %v2089_v45 = vpop.permute.xlu0 %2088  ;;  %v5841_v14 = vpack.c.bf16 %v2921_v5, %v2920_v59 }
0x18bb   : > { %v2106_v22 = vmul.f32 %v5756_v40, %v2089_v45 }
0x18bc   : > { %2130 = vrot.lane.b32.xlu1 %v2107_v20, %s5144_s18 }
0x18bd   : > { %2128 = vrot.lane.b32.xlu0 %v2106_v22, %s5144_s18 }
0x1922   : > { %v2119_v24 = vpop.permute.xlu1 %2118 }
0x1923   : > { %2141 = vst.msk [vmem:[#allocation4 + $0x48] sm:$0xff] %vm305_vm1, %v2119_v24  ;;  %v2117_v25 = vpop.permute.xlu0 %2116 }
0x1924   : > { %2140 = vst.msk [vmem:[#allocation4 + $0x40] sm:$0xff] %vm305_vm1, %v2117_v25  ;;  %4312 = vmatprep.mubr.msk.f32.mxu1 %vm305_vm1, %v2117_v25 }
0x1925   : > { %4313 = vmatmul.mubr.msk.f32.vlgmr.msra.gmra.mrb[18].mxu1 %vm305_vm1, %v2119_v24 }
0x1926   : > { %v2123_v40 = vpop.permute.xlu1 %2122  ;;  %4506 = vmatpush3.bf16.msra.mxu1 %v5816_v57 }
0x1927   : > { %2143 = vst.msk [vmem:[#allocation4 + $0x58] sm:$0xff] %vm305_vm1, %v2123_v40  ;;  %v2121_v26 = vpop.permute.xlu0 %2120  ;;  %4505 = vmatprep.subr.bf16.mxu1 %v5841_v14 }
0x1928   : > { %2142 = vst.msk [vmem:[#allocation4 + $0x50] sm:$0xff] %vm305_vm1, %v2121_v26  ;;  %4315 = vmatprep.mubr.msk.f32.mxu1 %vm305_vm1, %v2121_v26 }
0x1929   : > { %4316 = vmatmul.mubr.msk.f32.gmra.mrb[20].mxu1 %vm305_vm1, %v2123_v40 }
0x192a   : > { %4507 = vmatpush3.bf16.msra.mxu1 %v5841_v14  ;;  %v2127_v46 = vpop.permute.xlu1 %2126 }
0x192b   : > { %2145 = vst.msk [vmem:[#allocation4 + $0x68] sm:$0xff] %vm305_vm1, %v2127_v46  ;;  %v2125_v29 = vpop.permute.xlu0 %2124 }
0x192c   : > { %2144 = vst.msk [vmem:[#allocation4 + $0x60] sm:$0xff] %vm305_vm1, %v2125_v29  ;;  %4318 = vmatprep.mubr.msk.f32.mxu1 %vm305_vm1, %v2125_v29 }
0x192d   : > { %4319 = vmatmul.mubr.msk.f32.gmra.mrb[22].mxu1 %vm305_vm1, %v2127_v46 }
0x192e   : > { %v2131_v58 = vpop.permute.xlu1 %2130 }
0x192f   : > { %2147 = vst.msk [vmem:[#allocation4 + $0x78] sm:$0xff] %vm305_vm1, %v2131_v58  ;;  %v2129_v33 = vpop.permute.xlu0 %2128 }
0x1930   : > { %2146 = vst.msk [vmem:[#allocation4 + $0x70] sm:$0xff] %vm305_vm1, %v2129_v33  ;;  %4321 = vmatprep.mubr.msk.f32.mxu1 %vm305_vm1, %v2129_v33 }
0x1931   : > { %4322 = vmatmul.mubr.msk.f32.gmra.mrb[24].mxu1 %vm305_vm1, %v2131_v58 }
0x1932   : > { %v2899_v2 = vld [vmem:[#allocation4 + $0x68] sm:$0xff] }
0x1933   : > { %v2898_v30 = vld [vmem:[#allocation4 + $0x60] sm:$0xff] }
0x1934   : > { %4370 = vmatprep.mubr.msk.f32.mxu1 %vm305_vm1, %v2898_v30 }
0x1935   : > { %4371 = vmatmul.mubr.msk.f32.vlgmr.msra.gmra.mrb[26].mxu1 %vm305_vm1, %v2899_v2 }
0x1936   : > { %v2901_v39 = vld [vmem:[#allocation4 + $0x78] sm:$0xff] }
0x1937   : > { %v2900_v8 = vld [vmem:[#allocation4 + $0x70] sm:$0xff] }
0x1938   : > { %4373 = vmatprep.mubr.msk.f32.mxu1 %vm305_vm1, %v2900_v8 }
0x1939   : > { %4374 = vmatmul.mubr.msk.f32.gmra.mrb[28].mxu1 %vm305_vm1, %v2901_v39 }
0x19f8   : > { %v4314_v1 = vpop.f32.mrb[18].mxu1 }
0x19f9   : > { %v2278_v11 = vadd.f32 %v4314_v1, %v5549_v0  ;;  %v2238_v21 = vpop.f32.mrb[19].mxu1 }
0x19fa   : > { %v2277_v44 = vadd.f32 %v5706_v37, %v2238_v21 }
0x19fb   : > { %4771 = vtanh.f32 %v2278_v11  ;;  %v3928_v43 = vmul.f32 -1.442695, %v2278_v11 }
0x19fc   : > { %4773 = vtanh.f32 %v2277_v44  ;;  %v4317_v63 = vpop.f32.mrb[20].mxu1  ;;  %v3927_v20 = vmul.f32 -1.442695, %v2277_v44 }
0x19fd   : > { %v2280_v51 = vadd.f32 %v4317_v63, %v5555_v9  ;;  %v2248_v27 = vpop.f32.mrb[21].mxu1 }
0x19fe   : > { %v2279_v10 = vadd.f32 %v2248_v27, %v5559_v13 }
0x19ff   : > { %4775 = vtanh.f32 %v2280_v51  ;;  %v3930_v45 = vmul.f32 -1.442695, %v2280_v51 }
0x1a00   : > { %4777 = vtanh.f32 %v2279_v10  ;;  %v4320_v49 = vpop.f32.mrb[22].mxu1  ;;  %v3929_v22 = vmul.f32 -1.442695, %v2279_v10 }
0x1a01   : > { %v2282_v38 = vadd.f32 %v4320_v49, %v5564_v18  ;;  %v2258_v41 = vpop.f32.mrb[23].mxu1 }
0x1a02   : > { %v2281_v54 = vadd.f32 %v2258_v41, %v5571_v23 }
0x1a03   : > { %4779 = vtanh.f32 %v2282_v38  ;;  %v3932_v59 = vmul.f32 -1.442695, %v2282_v38 }
0x1a04   : > { %4781 = vtanh.f32 %v2281_v54  ;;  %v4323_v53 = vpop.f32.mrb[24].mxu1  ;;  %v3931_v5 = vmul.f32 -1.442695, %v2281_v54 }
0x1a05   : > { %v4772_v47 = vpop.eup %4771  ;;  %v2284_v62 = vadd.f32 %v4323_v53, %v5877_v52  ;;  %v2268_v32 = vpop.f32.mrb[25].mxu1 }
0x1a06   : > { %v4774_v48 = vpop.eup %4773  ;;  %2359 = vrot.lane.b32.xlu1 %v4772_v47, %s5143_s17  ;;  %v2283_v3 = vadd.f32 %v2268_v32, %v5717_v60 }
0x1a07   : > { %2357 = vrot.lane.b32.xlu0 %v4774_v48, %s5143_s17  ;;  %4783 = vtanh.f32 %v2284_v62  ;;  %v3934_v30 = vmul.f32 -1.442695, %v2284_v62 }
0x1a08   : > { %4785 = vtanh.f32 %v2283_v3  ;;  %v5883_v34 = vpop.f32.mrb[26].mxu1  ;;  %v3933_v2 = vmul.f32 -1.442695, %v2283_v3 }
0x1a09   : > { %v4776_v61 = vpop.eup %4775  ;;  %v5885_v12 = vpop.f32.mrb[27].mxu1  ;;  %4787 = vpow2.f32 %v3928_v43 }
0x1a0a   : > { %v4778_v50 = vpop.eup %4777  ;;  %2363 = vrot.lane.b32.xlu1 %v4776_v61, %s5143_s17  ;;  %4789 = vpow2.f32 %v3927_v20 }
0x1a0b   : > { %2361 = vrot.lane.b32.xlu0 %v4778_v50, %s5143_s17  ;;  %4791 = vpow2.f32 %v3930_v45 }
0x1a0c   : > { %v5887_v15 = vpop.f32.mrb[28].mxu1  ;;  %4793 = vpow2.f32 %v3929_v22 }
0x1a0d   : > { %v4780_v55 = vpop.eup %4779  ;;  %v5889_v37 = vpop.f32.mrb[29].mxu1  ;;  %4795 = vpow2.f32 %v3932_v59 }
0x1a0e   : > { %v4782_v7 = vpop.eup %4781  ;;  %2367 = vrot.lane.b32.xlu1 %v4780_v55, %s5143_s17  ;;  %4797 = vpow2.f32 %v3931_v5 }
0x1a0f   : > { %2365 = vrot.lane.b32.xlu0 %v4782_v7, %s5143_s17 }
0x1a11   : > { %v4784_v16 = vpop.eup %4783 }
0x1a12   : > { %v4786_v19 = vpop.eup %4785  ;;  %2371 = vrot.lane.b32.xlu1 %v4784_v16, %s5143_s17 }
0x1a13   : > { %2369 = vrot.lane.b32.xlu0 %v4786_v19, %s5143_s17  ;;  %v4788_v24 = vpop.eup %4787 }
0x1a14   : > { %v4790_v25 = vpop.eup %4789  ;;  %v2310_v46 = vadd.f32 1.0, %v4788_v24 }
0x1a15   : > { %v4792_v40 = vpop.eup %4791  ;;  %v2309_v29 = vadd.f32 1.0, %v4790_v25 }
0x1a16   : > { %v4794_v26 = vpop.eup %4793  ;;  %v2312_v58 = vadd.f32 1.0, %v4792_v40  ;;  %4799 = vrcp.f32 %v2310_v46 }
0x1a17   : > { %v2311_v33 = vadd.f32 1.0, %v4794_v26  ;;  %4801 = vrcp.f32 %v2309_v29  ;;  %v4796_v8 = vpop.eup %4795 }
0x1a18   : > { %4803 = vrcp.f32 %v2312_v58  ;;  %v4798_v39 = vpop.eup %4797  ;;  %v2314_v1 = vadd.f32 1.0, %v4796_v8 }
0x1a19   : > { %4805 = vrcp.f32 %v2311_v33  ;;  %v2313_v11 = vadd.f32 1.0, %v4798_v39 }
0x1a1a   : > { %4807 = vpow2.f32 %v3934_v30 }
0x1a1b   : > { %4809 = vpow2.f32 %v3933_v2 }
0x1a1c   : > { %4811 = vrcp.f32 %v2314_v1 }
0x1a1d   : > { %4813 = vrcp.f32 %v2313_v11 }
0x1a20   : > { %v5893_v21 = vpop.eup %4799 }
0x1a21   : > { %v5895_v63 = vpop.eup %4801  ;;  %v2342_v24 = vmul.f32 %v5893_v21, %v5764_v28 }
0x1a22   : > { %v5898_v10 = vpop.eup %4803  ;;  %v2341_v40 = vmul.f32 %v5895_v63, %v5766_v56 }
0x1a23   : > { %v5901_v38 = vpop.eup %4805  ;;  %v2344_v58 = vmul.f32 %v5898_v10, %v5774_v17 }
0x1a24   : > { %v4808_v41 = vpop.eup %4807  ;;  %v2343_v28 = vmul.f32 %v5901_v38, %v5776_v35 }
0x1a25   : > { %v4810_v47 = vpop.eup %4809  ;;  %v2316_v53 = vadd.f32 1.0, %v4808_v41 }
0x1a26   : > { %v2315_v55 = vadd.f32 1.0, %v4810_v47  ;;  %v5909_v62 = vpop.eup %4811 }
0x1a27   : > { %v5911_v7 = vpop.eup %4813  ;;  %4815 = vrcp.f32 %v2316_v53  ;;  %v2346_v8 = vmul.f32 %v5909_v62, %v5784_v6 }
0x1a28   : > { %4817 = vrcp.f32 %v2315_v55  ;;  %v2345_v17 = vmul.f32 %v5911_v7, %v5786_v42 }
0x1a31   : > { %v5917_v43 = vpop.eup %4815 }
0x1a32   : > { %v5919_v45 = vpop.eup %4817  ;;  %v2348_v42 = vmul.f32 %v5917_v43, %v5795_v31 }
0x1a33   : > { %v2347_v41 = vmul.f32 %v5919_v45, %v5801_v4 }
0x1a78   : > { %v2360_v44 = vpop.permute.xlu1 %2359 }
0x1a79   : > { %v2382_v51 = vmul.f32 %v5893_v21, %v2360_v44  ;;  %v2358_v27 = vpop.permute.xlu0 %2357 }
0x1a7a   : > { %v2381_v49 = vmul.f32 %v5895_v63, %v2358_v27 }
0x1a7b   : > { %2399 = vrot.lane.b32.xlu1 %v2382_v51, %s5144_s18 }
0x1a7c   : > { %v2364_v54 = vpop.permute.xlu1 %2363  ;;  %2397 = vrot.lane.b32.xlu0 %v2381_v49, %s5144_s18 }
0x1a7d   : > { %v2384_v48 = vmul.f32 %v5898_v10, %v2364_v54  ;;  %v2362_v61 = vpop.permute.xlu0 %2361 }
0x1a7e   : > { %v2383_v50 = vmul.f32 %v5901_v38, %v2362_v61 }
0x1a7f   : > { %2403 = vrot.lane.b32.xlu1 %v2384_v48, %s5144_s18 }
0x1a80   : > { %2401 = vrot.lane.b32.xlu0 %v2383_v50, %s5144_s18  ;;  %v2368_v32 = vpop.permute.xlu1 %2367 }
0x1a81   : > { %v2386_v3 = vmul.f32 %v5909_v62, %v2368_v32  ;;  %v2366_v16 = vpop.permute.xlu0 %2365 }
0x1a82   : > { %v2385_v19 = vmul.f32 %v5911_v7, %v2366_v16 }
0x1a83   : > { %2407 = vrot.lane.b32.xlu1 %v2386_v3, %s5144_s18 }
0x1a84   : > { %2405 = vrot.lane.b32.xlu0 %v2385_v19, %s5144_s18  ;;  %v2372_v20 = vpop.permute.xlu1 %2371 }
0x1a85   : > { %v2388_v22 = vmul.f32 %v5917_v43, %v2372_v20  ;;  %v2370_v59 = vpop.permute.xlu0 %2369 }
0x1a86   : > { %v2387_v5 = vmul.f32 %v5919_v45, %v2370_v59 }
0x1a87   : > { %2411 = vrot.lane.b32.xlu1 %v2388_v22, %s5144_s18 }
0x1a88   : > { %2409 = vrot.lane.b32.xlu0 %v2387_v5, %s5144_s18 }
0x1aed   : > { %v2400_v25 = vpop.permute.xlu1 %2399 }
0x1aee   : > { %v5929_v26 = vadd.f32 %v2400_v25, %v2342_v24  ;;  %v2398_v46 = vpop.permute.xlu0 %2397 }
0x1aef   : > { %v5931_v29 = vadd.f32 %v2398_v46, %v2341_v40 }
0x1af0   : > { %4819 = vtanh.f32 %v5929_v26 }
0x1af1   : > { %4821 = vtanh.f32 %v5931_v29  ;;  %v2404_v33 = vpop.permute.xlu1 %2403 }
0x1af2   : > { %v5939_v30 = vadd.f32 %v2404_v33, %v2344_v58  ;;  %v2402_v2 = vpop.permute.xlu0 %2401 }
0x1af3   : > { %v5941_v56 = vadd.f32 %v2402_v2, %v2343_v28 }
0x1af4   : > { %4823 = vtanh.f32 %v5939_v30 }
0x1af5   : > { %4825 = vtanh.f32 %v5941_v56  ;;  %v2408_v39 = vpop.permute.xlu1 %2407 }
0x1af6   : > { %v5949_v1 = vadd.f32 %v2408_v39, %v2346_v8  ;;  %v2406_v11 = vpop.permute.xlu0 %2405 }
0x1af7   : > { %v5951_v35 = vadd.f32 %v2406_v11, %v2345_v17  ;;  %v2886_v17 = vld [vmem:[#allocation4] sm:$0xff]  ;;  %v2887_v11 = vld [vmem:[#allocation4 + $0x8] sm:$0xff] }
0x1af8   : > { %4827 = vtanh.f32 %v5949_v1 }
0x1af9   : > { %4829 = vtanh.f32 %v5951_v35  ;;  %v2412_v49 = vpop.permute.xlu1 %2411 }
0x1afa   : > { %v4820_v44 = vpop.eup %4819  ;;  %v5963_v47 = vadd.f32 %v2412_v49, %v2348_v42  ;;  %v2410_v48 = vpop.permute.xlu0 %2409  ;;  %v2890_v42 = vld [vmem:[#allocation4 + $0x20] sm:$0xff]  ;;  %v2891_v49 = vld [vmem:[#allocation4 + $0x28] sm:$0xff] }
0x1afb   : > { %v4822_v51 = vpop.eup %4821  ;;  %2447 = vrot.lane.b32.xlu1 %v4820_v44, %s5143_s17  ;;  %v5965_v50 = vadd.f32 %v2410_v48, %v2347_v41  ;;  %v2888_v44 = vld [vmem:[#allocation4 + $0x10] sm:$0xff]  ;;  %v2894_v48 = vld [vmem:[#allocation4 + $0x40] sm:$0xff] }
0x1afc   : > { %2445 = vrot.lane.b32.xlu0 %v4822_v51, %s5143_s17  ;;  %4831 = vtanh.f32 %v5963_v47  ;;  %v2892_v41 = vld [vmem:[#allocation4 + $0x30] sm:$0xff] }
0x1afd   : > { %4833 = vtanh.f32 %v5965_v50 }
0x1afe   : > { %v4824_v6 = vpop.eup %4823 }
0x1aff   : > { %v4826_v27 = vpop.eup %4825  ;;  %2451 = vrot.lane.b32.xlu1 %v4824_v6, %s5143_s17  ;;  %v2889_v6 = vld [vmem:[#allocation4 + $0x18] sm:$0xff] }
0x1b00   : > { %2449 = vrot.lane.b32.xlu0 %v4826_v27, %s5143_s17 }
0x1b02   : > { %v4828_v54 = vpop.eup %4827 }
0x1b03   : > { %v4830_v61 = vpop.eup %4829  ;;  %2455 = vrot.lane.b32.xlu1 %v4828_v54, %s5143_s17  ;;  %v2893_v54 = vld [vmem:[#allocation4 + $0x38] sm:$0xff] }
0x1b04   : > { %2453 = vrot.lane.b32.xlu0 %v4830_v61, %s5143_s17  ;;  %v2895_v61 = vld [vmem:[#allocation4 + $0x48] sm:$0xff] }
0x1b06   : > { %v4832_v31 = vpop.eup %4831 }
0x1b07   : > { %v4834_v53 = vpop.eup %4833  ;;  %2459 = vrot.lane.b32.xlu1 %v4832_v31, %s5143_s17  ;;  %v2896_v31 = vld [vmem:[#allocation4 + $0x50] sm:$0xff] }
0x1b08   : > { %2457 = vrot.lane.b32.xlu0 %v4834_v53, %s5143_s17  ;;  %v2897_v53 = vld [vmem:[#allocation4 + $0x58] sm:$0xff] }
0x1b6d   : > { %v2448_v4 = vpop.permute.xlu1 %2447 }
0x1b6e   : > { %v2470_v55 = vmul.f32 %v5893_v21, %v2448_v4  ;;  %v2446_v32 = vpop.permute.xlu0 %2445 }
0x1b6f   : > { %v2469_v3 = vmul.f32 %v5895_v63, %v2446_v32 }
0x1b70   : > { %2487 = vrot.lane.b32.xlu1 %v2470_v55, %s5144_s18 }
0x1b71   : > { %v2452_v16 = vpop.permute.xlu1 %2451  ;;  %2485 = vrot.lane.b32.xlu0 %v2469_v3, %s5144_s18 }
0x1b72   : > { %v2472_v19 = vmul.f32 %v5898_v10, %v2452_v16  ;;  %v2450_v20 = vpop.permute.xlu0 %2449 }
0x1b73   : > { %v2471_v22 = vmul.f32 %v5901_v38, %v2450_v20 }
0x1b74   : > { %2491 = vrot.lane.b32.xlu1 %v2472_v19, %s5144_s18 }
0x1b75   : > { %2489 = vrot.lane.b32.xlu0 %v2471_v22, %s5144_s18  ;;  %v2456_v59 = vpop.permute.xlu1 %2455 }
0x1b76   : > { %v2474_v21 = vmul.f32 %v5909_v62, %v2456_v59  ;;  %v2454_v5 = vpop.permute.xlu0 %2453 }
0x1b77   : > { %v2473_v63 = vmul.f32 %v5911_v7, %v2454_v5 }
0x1b78   : > { %2495 = vrot.lane.b32.xlu1 %v2474_v21, %s5144_s18 }
0x1b79   : > { %2493 = vrot.lane.b32.xlu0 %v2473_v63, %s5144_s18  ;;  %v2460_v24 = vpop.permute.xlu1 %2459 }
0x1b7a   : > { %v2476_v10 = vmul.f32 %v5917_v43, %v2460_v24  ;;  %v2458_v25 = vpop.permute.xlu0 %2457 }
0x1b7b   : > { %v2475_v38 = vmul.f32 %v5919_v45, %v2458_v25 }
0x1b7c   : > { %2499 = vrot.lane.b32.xlu1 %v2476_v10, %s5144_s18 }
0x1b7d   : > { %2497 = vrot.lane.b32.xlu0 %v2475_v38, %s5144_s18 }
0x1be2   : > { %v2488_v40 = vpop.permute.xlu1 %2487 }
0x1be3   : > { %2510 = vst.msk [vmem:[#allocation4 + $0x88] sm:$0xff] %vm305_vm1, %v2488_v40  ;;  %v2486_v62 = vpop.permute.xlu0 %2485 }
0x1be4   : > { %2509 = vst.msk [vmem:[#allocation4 + $0x80] sm:$0xff] %vm305_vm1, %v2486_v62  ;;  %4332 = vmatprep.mubr.msk.f32.mxu0 %vm305_vm1, %v2486_v62 }
0x1be5   : > { %4333 = vmatmul.mubr.msk.f32.vlgmr.msra.gmra.mrb[30].mxu0 %vm305_vm1, %v2488_v40 }
0x1be6   : > { %v2492_v7 = vpop.permute.xlu1 %2491  ;;  %4499 = vmatpush3.bf16.msra.mxu0 %v5816_v57 }
0x1be7   : > { %2512 = vst.msk [vmem:[#allocation4 + $0x98] sm:$0xff] %vm305_vm1, %v2492_v7  ;;  %v2490_v43 = vpop.permute.xlu0 %2489  ;;  %4501 = vmatprep.subr.bf16.mxu0 %v5841_v14 }
0x1be8   : > { %2511 = vst.msk [vmem:[#allocation4 + $0x90] sm:$0xff] %vm305_vm1, %v2490_v43  ;;  %4335 = vmatprep.mubr.msk.f32.mxu0 %vm305_vm1, %v2490_v43 }
0x1be9   : > { %4336 = vmatmul.mubr.msk.f32.gmra.mrb[32].mxu0 %vm305_vm1, %v2492_v7 }
0x1bea   : > { %4503 = vmatpush3.bf16.msra.mxu0 %v5841_v14  ;;  %v2496_v45 = vpop.permute.xlu1 %2495  ;;  %v2903_v57 = vld [vmem:[#allocation4 + $0x88] sm:$0xff] }
0x1beb   : > { %v2902_v46 = vld [vmem:[#allocation4 + $0x80] sm:$0xff]  ;;  %2514 = vst.msk [vmem:[#allocation4 + $0xa8] sm:$0xff] %vm305_vm1, %v2496_v45  ;;  %v2494_v58 = vpop.permute.xlu0 %2493 }
0x1bec   : > { %4376 = vmatprep.mubr.msk.f32.mxu1 %vm305_vm1, %v2902_v46  ;;  %2513 = vst.msk [vmem:[#allocation4 + $0xa0] sm:$0xff] %vm305_vm1, %v2494_v58  ;;  %4338 = vmatprep.mubr.msk.f32.mxu0 %vm305_vm1, %v2494_v58 }
0x1bed   : > { %4377 = vmatmul.mubr.msk.f32.gmra.mrb[30].mxu1 %vm305_vm1, %v2903_v57  ;;  %4339 = vmatmul.mubr.msk.f32.gmra.mrb[34].mxu0 %vm305_vm1, %v2496_v45 }
0x1bee   : > { %v2905_v14 = vld [vmem:[#allocation4 + $0x98] sm:$0xff]  ;;  %v2500_v8 = vpop.permute.xlu1 %2499 }
0x1bef   : > { %v2904_v33 = vld [vmem:[#allocation4 + $0x90] sm:$0xff]  ;;  %2516 = vst.msk [vmem:[#allocation4 + $0xb8] sm:$0xff] %vm305_vm1, %v2500_v8  ;;  %v2498_v39 = vpop.permute.xlu0 %2497 }
0x1bf0   : > { %4379 = vmatprep.mubr.msk.f32.mxu1 %vm305_vm1, %v2904_v33  ;;  %2515 = vst.msk [vmem:[#allocation4 + $0xb0] sm:$0xff] %vm305_vm1, %v2498_v39  ;;  %4341 = vmatprep.mubr.msk.f32.mxu0 %vm305_vm1, %v2498_v39 }
0x1bf1   : > { %4380 = vmatmul.mubr.msk.f32.gmra.mrb[32].mxu1 %vm305_vm1, %v2905_v14  ;;  %4342 = vmatmul.mubr.msk.f32.gmra.mrb[36].mxu0 %vm305_vm1, %v2500_v8 }
0x1bf2   : > { %v2907_v2 = vld [vmem:[#allocation4 + $0xa8] sm:$0xff]  ;;  %4352 = vmatprep.mubr.msk.f32.mxu0 %vm305_vm1, %v2886_v17 }
0x1bf3   : > { %v2906_v28 = vld [vmem:[#allocation4 + $0xa0] sm:$0xff] }
0x1bf4   : > { %4382 = vmatprep.mubr.msk.f32.mxu1 %vm305_vm1, %v2906_v28 }
0x1bf5   : > { %4383 = vmatmul.mubr.msk.f32.gmra.mrb[34].mxu1 %vm305_vm1, %v2907_v2  ;;  %4353 = vmatmul.mubr.msk.f32.vlgmr.msra.gmra.mrb[38].mxu0 %vm305_vm1, %v2887_v11 }
0x1bf6   : > { %4355 = vmatprep.mubr.msk.f32.mxu0 %vm305_vm1, %v2888_v44  ;;  %v2909_v27 = vld [vmem:[#allocation4 + $0xb8] sm:$0xff] }
0x1bf7   : > { %v2908_v51 = vld [vmem:[#allocation4 + $0xb0] sm:$0xff] }
0x1bf8   : > { %4385 = vmatprep.mubr.msk.f32.mxu1 %vm305_vm1, %v2908_v51 }
0x1bf9   : > { %4356 = vmatmul.mubr.msk.f32.gmra.mrb[40].mxu0 %vm305_vm1, %v2889_v6  ;;  %4386 = vmatmul.mubr.msk.f32.gmra.mrb[36].mxu1 %vm305_vm1, %v2909_v27 }
0x1bfa   : > { %4358 = vmatprep.mubr.msk.f32.mxu0 %vm305_vm1, %v2890_v42 }
0x1bfd   : > { %4359 = vmatmul.mubr.msk.f32.gmra.mrb[42].mxu0 %vm305_vm1, %v2891_v49 }
0x1bfe   : > { %4361 = vmatprep.mubr.msk.f32.mxu0 %vm305_vm1, %v2892_v41 }
0x1c01   : > { %4362 = vmatmul.mubr.msk.f32.gmra.mrb[44].mxu0 %vm305_vm1, %v2893_v54 }
0x1c02   : > { %4364 = vmatprep.mubr.msk.f32.mxu0 %vm305_vm1, %v2894_v48 }
0x1c05   : > { %4365 = vmatmul.mubr.msk.f32.gmra.mrb[46].mxu0 %vm305_vm1, %v2895_v61 }
0x1c06   : > { %4367 = vmatprep.mubr.msk.f32.mxu0 %vm305_vm1, %v2896_v31 }
0x1c09   : > { %4368 = vmatmul.mubr.msk.f32.gmra.mrb[48].mxu0 %vm305_vm1, %v2897_v53 }
0x1cb8   : > { %v4334_v4 = vpop.f32.mrb[30].mxu0 }
0x1cb9   : > { %v6029_v55 = vadd.f32 %v4334_v4, %v5559_v13  ;;  %v2607_v32 = vpop.f32.mrb[31].mxu0 }
0x1cba   : > { %v6032_v3 = vadd.f32 %v2607_v32, %v5549_v0 }
0x1cbb   : > { %4835 = vtanh.f32 %v6029_v55 }
0x1cbc   : > { %4837 = vtanh.f32 %v6032_v3  ;;  %v4337_v16 = vpop.f32.mrb[32].mxu0 }
0x1cbd   : > { %v6037_v19 = vadd.f32 %v4337_v16, %v5571_v23  ;;  %v2617_v20 = vpop.f32.mrb[33].mxu0 }
0x1cbe   : > { %v6040_v22 = vadd.f32 %v2617_v20, %v5555_v9 }
0x1cbf   : > { %4839 = vtanh.f32 %v6037_v19 }
0x1cc0   : > { %4841 = vtanh.f32 %v6040_v22  ;;  %v6044_v13 = vpop.f32.mrb[30].mxu1  ;;  %v4340_v0 = vpop.f32.mrb[34].mxu0 }
0x1cc1   : > { %v6046_v59 = vpop.f32.mrb[31].mxu1  ;;  %v6049_v21 = vadd.f32 %v4340_v0, %v5717_v60  ;;  %v2627_v5 = vpop.f32.mrb[35].mxu0 }
0x1cc2   : > { %v6052_v23 = vadd.f32 %v2627_v5, %v5564_v18  ;;  %v4980_v18 = vld [vmem:[%s6639_s3] ss:$0 sm:$0xff] }
0x1cc3   : > { %4843 = vtanh.f32 %v6049_v21  ;;  %v1411_v62 = vadd.f32 %v4980_v18, %v5699_v36  ;;  %v6077_v36 = vld [vmem:[#allocation5] ss:$0 sm:$0xff] }
0x1cc4   : > { %v6055_v9 = vpop.f32.mrb[32].mxu1  ;;  %4845 = vtanh.f32 %v6052_v23  ;;  %v4343_v7 = vpop.f32.mrb[36].mxu0  ;;  %v6085_v17 = vadd.f32 %v6077_v36, %v5885_v12  ;;  %v6104_v41 = vadd.f32 %v5887_v15, %v6077_v36  ;;  %v6113_v61 = vadd.f32 %v6077_v36, %v5889_v37 }
0x1cc5   : > { %v4836_v63 = vpop.eup %4835  ;;  %v6058_v24 = vpop.f32.mrb[33].mxu1  ;;  %v6068_v45 = vadd.f32 %v4343_v7, %v1411_v62 }
0x1cc6   : > { %v4838_v10 = vpop.eup %4837  ;;  %2728 = vrot.lane.b32.xlu1 %v4836_v63, %s5143_s17  ;;  %v2637_v46 = vpop.f32.mrb[37].mxu0  ;;  %v3280_v48 = vsel %vm3250_vm2, %v6085_v17, -inf  ;;  %v3294_v18 = vsel %vm3250_vm2, %v6113_v61, -inf }
0x1cc7   : > { %2726 = vrot.lane.b32.xlu0 %v4838_v10, %s5143_s17  ;;  %v6071_v57 = vadd.f32 %v2637_v46, %v5877_v52  ;;  %4847 = vtanh.f32 %v6068_v45  ;;  %v6081_v52 = vadd.f32 %v5883_v34, %v6077_v36 }
0x1cc8   : > { %v4384_v25 = vpop.f32.mrb[34].mxu1  ;;  %v4354_v33 = vpop.f32.mrb[38].mxu0 }
0x1cc9   : > { %v4840_v60 = vpop.eup %4839  ;;  %v3191_v40 = vpop.f32.mrb[35].mxu1  ;;  %4849 = vtanh.f32 %v6071_v57  ;;  %v6088_v51 = vadd.f32 %v4384_v25, %v6077_v36  ;;  %v3287_v12 = vsel %vm3250_vm2, %v6081_v52, -inf  ;;  %v6138_v25 = vadd.f32 %v4354_v33, %v6077_v36 }
0x1cca   : > { %v4842_v38 = vpop.eup %4841  ;;  %2732 = vrot.lane.b32.xlu1 %v4840_v60, %s5143_s17  ;;  %v3091_v14 = vpop.f32.mrb[39].mxu0  ;;  %v6094_v49 = vadd.f32 %v6077_v36, %v3191_v40  ;;  %v3301_v60 = vsel %vm3250_vm2, %v6104_v41, -inf }
0x1ccb   : > { %2730 = vrot.lane.b32.xlu0 %v4842_v38, %s5143_s17  ;;  %v3289_v15 = vsel %vm3250_vm2, %v6088_v51, -inf  ;;  %v6147_v62 = vadd.f32 %v6077_v36, %v3091_v14  ;;  %v6162_v14 = vadd.f32 %v6077_v36, %v6046_v59 }
0x1ccc   : > { %v4357_v28 = vpop.f32.mrb[40].mxu0  ;;  %v4387_v2 = vpop.f32.mrb[36].mxu1  ;;  %v3282_v37 = vsel %vm3250_vm2, %v6094_v49, -inf }
0x1ccd   : > { %v4844_v43 = vpop.eup %4843  ;;  %v3101_v8 = vpop.f32.mrb[41].mxu0  ;;  %v6120_v32 = vadd.f32 %v4387_v2, %v6077_v36  ;;  %v3251_v59 = vsel %vm3250_vm2, %v6147_v62, -inf }
0x1cce   : > { %v4846_v58 = vpop.eup %4845  ;;  %2736 = vrot.lane.b32.xlu1 %v4844_v43, %s5143_s17  ;;  %v3201_v39 = vpop.f32.mrb[37].mxu1 }
0x1ccf   : > { %2734 = vrot.lane.b32.xlu0 %v4846_v58, %s5143_s17  ;;  %v6128_v5 = vadd.f32 %v6077_v36, %v3201_v39  ;;  %v6153_v58 = vadd.f32 %v6044_v13, %v6077_v36  ;;  %v3303_v33 = vsel %vm3250_vm2, %v6120_v32, -inf }
0x1cd0   : > { %v4360_v11 = vpop.f32.mrb[42].mxu0 }
0x1cd1   : > { %v4848_v44 = vpop.eup %4847  ;;  %v6091_v6 = vadd.f32 %v4360_v11, %v6077_v36  ;;  %v3111_v27 = vpop.f32.mrb[43].mxu0 }
0x1cd2   : > { %v6097_v34 = vadd.f32 %v6077_v36, %v3111_v27  ;;  %2740 = vrot.lane.b32.xlu1 %v4848_v44, %s5143_s17  ;;  %v3296_v44 = vsel %vm3250_vm2, %v6128_v5, -inf }
0x1cd3   : > { %v4850_v42 = vpop.eup %4849  ;;  %v3286_v54 = vsel %vm3250_vm2, %v6091_v6, -inf }
0x1cd4   : > { %2738 = vrot.lane.b32.xlu0 %v4850_v42, %s5143_s17  ;;  %v3288_v31 = vmax.f32 %v3286_v54, %v3287_v12  ;;  %v3279_v53 = vsel %vm3250_vm2, %v6097_v34, -inf  ;;  %v4363_v4 = vpop.f32.mrb[44].mxu0  ;;  %v3258_v42 = vsel %vm3250_vm2, %v6138_v25, -inf  ;;  %v6174_v12 = vadd.f32 %v4357_v28, %v6077_v36 }
0x1cd5   : > { %v3281_v16 = vmax.f32 %v3279_v53, %v3280_v48  ;;  %v6123_v20 = vadd.f32 %v4363_v4, %v6077_v36  ;;  %v3121_v0 = vpop.f32.mrb[45].mxu0  ;;  %v3261_v28 = vsel %vm3250_vm2, %v6153_v58, -inf }
0x1cd6   : > { %v6131_v63 = vadd.f32 %v6077_v36, %v3121_v0  ;;  %v6133_v10 = vmax.f32 %v3288_v31, %v3289_v15  ;;  %v6183_v31 = vadd.f32 %v6077_v36, %v3101_v8  ;;  %v3254_v8 = vsel %vm3250_vm2, %v6162_v14, -inf }
0x1cd7   : > { %v3300_v38 = vsel %vm3250_vm2, %v6123_v20, -inf  ;;  %v6142_v40 = vmax.f32 %v3281_v16, %v3282_v37  ;;  %v6191_v16 = vadd.f32 %v6055_v9, %v6077_v36  ;;  %v3272_v9 = vsel %vm3250_vm2, %v6174_v12, -inf }
0x1cd8   : > { %v3302_v7 = vmax.f32 %v3300_v38, %v3301_v60  ;;  %v3293_v43 = vsel %vm3250_vm2, %v6131_v63, -inf  ;;  %v4366_v46 = vpop.f32.mrb[46].mxu0  ;;  %v6200_v38 = vadd.f32 %v6077_v36, %v6058_v24 }
0x1cd9   : > { %v3295_v2 = vmax.f32 %v3293_v43, %v3294_v18  ;;  %v6158_v39 = vadd.f32 %v4366_v46, %v6077_v36  ;;  %v3131_v11 = vpop.f32.mrb[47].mxu0 }
0x1cda   : > { %v6167_v27 = vadd.f32 %v6077_v36, %v3131_v11  ;;  %v6169_v13 = vmax.f32 %v3302_v7, %v3303_v33  ;;  %v3265_v33 = vsel %vm3250_vm2, %v6183_v31, -inf  ;;  %v3275_v11 = vsel %vm3250_vm2, %v6191_v16, -inf }
0x1cdb   : > { %v3259_v54 = vsel %vm3250_vm2, %v6158_v39, -inf  ;;  %v6178_v48 = vmax.f32 %v3295_v2, %v3296_v44 }
0x1cdc   : > { %v3260_v53 = vmax.f32 %v3258_v42, %v3259_v54  ;;  %v3252_v4 = vsel %vm3250_vm2, %v6167_v27, -inf  ;;  %v4369_v15 = vpop.f32.mrb[48].mxu0  ;;  %v3268_v42 = vsel %vm3250_vm2, %v6200_v38, -inf }
0x1cdd   : > { %v3253_v0 = vmax.f32 %v3251_v59, %v3252_v4  ;;  %v6194_v37 = vadd.f32 %v4369_v15, %v6077_v36  ;;  %v3141_v60 = vpop.f32.mrb[49].mxu0  ;;  %v3943_v4 = vmul.f32 -1.442695, %v6032_v3  ;;  %v3946_v15 = vmul.f32 -1.442695, %v6037_v19 }
0x1cde   : > { %v6203_v18 = vadd.f32 %v6077_v36, %v3141_v60  ;;  %v6205_v7 = vmax.f32 %v3260_v53, %v3261_v28  ;;  %v3944_v53 = vmul.f32 -1.442695, %v6029_v55  ;;  %v3945_v28 = vmul.f32 -1.442695, %v6040_v22 }
0x1cdf   : > { %v3273_v43 = vsel %vm3250_vm2, %v6194_v37, -inf  ;;  %v6211_v46 = vmax.f32 %v3253_v0, %v3254_v8  ;;  %v3948_v0 = vmul.f32 -1.442695, %v6049_v21  ;;  %v3947_v60 = vmul.f32 -1.442695, %v6052_v23 }
0x1ce0   : > { %v3274_v2 = vmax.f32 %v3272_v9, %v3273_v43  ;;  %v3266_v24 = vsel %vm3250_vm2, %v6203_v18, -inf  ;;  %4851 = vpow2.f32 %v3944_v53  ;;  %v3950_v22 = vmul.f32 -1.442695, %v6068_v45 }
0x1ce1   : > { %v3267_v44 = vmax.f32 %v3265_v33, %v3266_v24  ;;  %4853 = vpow2.f32 %v3943_v4  ;;  %v3949_v24 = vmul.f32 -1.442695, %v6071_v57 }
0x1ce2   : > { %v6221_v54 = vmax.f32 %v3274_v2, %v3275_v11  ;;  %4855 = vpow2.f32 %v3946_v15 }
0x1ce3   : > { %v6223_v59 = vmax.f32 %v3267_v44, %v3268_v42  ;;  %4857 = vpow2.f32 %v3945_v28 }
0x1ce4   : > { %4859 = vpow2.f32 %v3948_v0 }
0x1ce5   : > { %4861 = vpow2.f32 %v3947_v60 }
0x1cea   : > { %v4852_v8 = vpop.eup %4851 }
0x1ceb   : > { %v4854_v9 = vpop.eup %4853  ;;  %v2679_v33 = vadd.f32 1.0, %v4852_v8 }
0x1cec   : > { %v4856_v43 = vpop.eup %4855  ;;  %v2678_v3 = vadd.f32 1.0, %v4854_v9 }
0x1ced   : > { %v4858_v55 = vpop.eup %4857  ;;  %v2681_v2 = vadd.f32 1.0, %v4856_v43  ;;  %4863 = vrcp.f32 %v2679_v33 }
0x1cee   : > { %v2680_v19 = vadd.f32 1.0, %v4858_v55  ;;  %4865 = vrcp.f32 %v2678_v3  ;;  %v4860_v11 = vpop.eup %4859 }
0x1cef   : > { %4867 = vrcp.f32 %v2681_v2  ;;  %v4862_v21 = vpop.eup %4861  ;;  %v2683_v23 = vadd.f32 1.0, %v4860_v11 }
0x1cf0   : > { %4869 = vrcp.f32 %v2680_v19  ;;  %v2682_v44 = vadd.f32 1.0, %v4862_v21 }
0x1cf1   : > { %4871 = vpow2.f32 %v3950_v22 }
0x1cf2   : > { %4873 = vpow2.f32 %v3949_v24 }
0x1cf3   : > { %4875 = vrcp.f32 %v2683_v23 }
0x1cf4   : > { %4877 = vrcp.f32 %v2682_v44 }
0x1cf7   : > { %v6233_v42 = vpop.eup %4863 }
0x1cf8   : > { %v6235_v4 = vpop.eup %4865 }
0x1cf9   : > { %v6238_v28 = vpop.eup %4867 }
0x1cfa   : > { %v6241_v0 = vpop.eup %4869 }
0x1cfb   : > { %v4872_v60 = vpop.eup %4871 }
0x1cfc   : > { %v4874_v9 = vpop.eup %4873  ;;  %v2685_v3 = vadd.f32 1.0, %v4872_v60 }
0x1cfd   : > { %v2684_v2 = vadd.f32 1.0, %v4874_v9  ;;  %v6249_v19 = vpop.eup %4875 }
0x1cfe   : > { %v6251_v24 = vpop.eup %4877  ;;  %4879 = vrcp.f32 %v2685_v3 }
0x1cff   : > { %4881 = vrcp.f32 %v2684_v2  ;;  %v2713_v2 = vmul.f32 %v6238_v28, %v5939_v30 }
0x1d08   : > { %v6257_v44 = vpop.eup %4879 }
0x1d38   : > { %v2729_v53 = vpop.permute.xlu1 %2728 }
0x1d39   : > { %v2751_v45 = vmul.f32 %v6233_v42, %v2729_v53  ;;  %v2727_v15 = vpop.permute.xlu0 %2726 }
0x1d3a   : > { %v2750_v57 = vmul.f32 %v6235_v4, %v2727_v15 }
0x1d3b   : > { %2768 = vrot.lane.b32.xlu1 %v2751_v45, %s5144_s18  ;;  %v6259_v45 = vpop.eup %4881 }
0x1d3c   : > { %v2733_v8 = vpop.permute.xlu1 %2732  ;;  %2766 = vrot.lane.b32.xlu0 %v2750_v57, %s5144_s18 }
0x1d3d   : > { %v2753_v43 = vmul.f32 %v6238_v28, %v2733_v8  ;;  %v2731_v55 = vpop.permute.xlu0 %2730  ;;  %v2711_v8 = vmul.f32 %v6233_v42, %v5929_v26  ;;  %v2715_v26 = vmul.f32 %v6249_v19, %v5949_v1  ;;  %v2717_v1 = vmul.f32 %v6257_v44, %v5963_v47 }
0x1d3e   : > { %v2752_v33 = vmul.f32 %v6241_v0, %v2731_v55 }
0x1d3f   : > { %2772 = vrot.lane.b32.xlu1 %v2753_v43, %s5144_s18  ;;  %v2710_v43 = vmul.f32 %v6235_v4, %v5931_v29 }
0x1d40   : > { %2770 = vrot.lane.b32.xlu0 %v2752_v33, %s5144_s18  ;;  %v2737_v22 = vpop.permute.xlu1 %2736 }
0x1d41   : > { %v2755_v11 = vmul.f32 %v6249_v19, %v2737_v22  ;;  %v2735_v21 = vpop.permute.xlu0 %2734 }
0x1d42   : > { %v2754_v23 = vmul.f32 %v6251_v24, %v2735_v21 }
0x1d43   : > { %2776 = vrot.lane.b32.xlu1 %v2755_v11, %s5144_s18  ;;  %v2712_v11 = vmul.f32 %v6241_v0, %v5941_v56 }
0x1d44   : > { %2774 = vrot.lane.b32.xlu0 %v2754_v23, %s5144_s18  ;;  %v2741_v53 = vpop.permute.xlu1 %2740 }
0x1d45   : > { %v2757_v15 = vmul.f32 %v6257_v44, %v2741_v53 }
0x1d46   : > { %v2739_v57 = vpop.permute.xlu0 %2738 }
0x1d47   : > { %v2756_v60 = vmul.f32 %v6259_v45, %v2739_v57  ;;  %2780 = vrot.lane.b32.xlu1 %v2757_v15, %s5144_s18  ;;  %v2714_v15 = vmul.f32 %v6251_v24, %v5951_v35 }
0x1d49   : > { %2778 = vrot.lane.b32.xlu0 %v2756_v60, %s5144_s18 }
0x1dad   : > { %v2769_v9 = vpop.permute.xlu1 %2768 }
0x1dae   : > { %v2791_v55 = vadd.f32 %v2769_v9, %v2711_v8  ;;  %v2767_v33 = vpop.permute.xlu0 %2766 }
0x1daf   : > { %v2790_v3 = vadd.f32 %v2767_v33, %v2710_v43 }
0x1db0   : > { %4883 = vtanh.f32 %v2791_v55  ;;  %v2716_v55 = vmul.f32 %v6259_v45, %v5965_v50 }
0x1db1   : > { %4885 = vtanh.f32 %v2790_v3  ;;  %v2773_v22 = vpop.permute.xlu1 %2772 }
0x1db2   : > { %v2793_v21 = vadd.f32 %v2773_v22, %v2713_v2  ;;  %v2771_v23 = vpop.permute.xlu0 %2770 }
0x1db3   : > { %v2792_v53 = vadd.f32 %v2771_v23, %v2712_v11 }
0x1db4   : > { %4887 = vtanh.f32 %v2793_v21 }
0x1db5   : > { %4889 = vtanh.f32 %v2792_v53  ;;  %v2777_v29 = vpop.permute.xlu1 %2776 }
0x1db6   : > { %v2795_v57 = vadd.f32 %v2777_v29, %v2715_v26  ;;  %v2775_v60 = vpop.permute.xlu0 %2774 }
0x1db7   : > { %v2794_v30 = vadd.f32 %v2775_v60, %v2714_v15 }
0x1db8   : > { %4891 = vtanh.f32 %v2795_v57 }
0x1db9   : > { %4893 = vtanh.f32 %v2794_v30  ;;  %v2781_v35 = vpop.permute.xlu1 %2780 }
0x1dba   : > { %v4884_v8 = vpop.eup %4883  ;;  %v2797_v3 = vadd.f32 %v2781_v35, %v2717_v1 }
0x1dbb   : > { %v4886_v9 = vpop.eup %4885  ;;  %2816 = vrot.lane.b32.xlu1 %v4884_v8, %s5143_s17  ;;  %v2779_v2 = vpop.permute.xlu0 %2778 }
0x1dbc   : > { %2814 = vrot.lane.b32.xlu0 %v4886_v9, %s5143_s17  ;;  %v2796_v11 = vadd.f32 %v2779_v2, %v2716_v55  ;;  %4895 = vtanh.f32 %v2797_v3 }
0x1dbe   : > { %v4888_v56 = vpop.eup %4887  ;;  %4897 = vtanh.f32 %v2796_v11 }
0x1dbf   : > { %v4890_v43 = vpop.eup %4889  ;;  %2820 = vrot.lane.b32.xlu1 %v4888_v56, %s5143_s17 }
0x1dc0   : > { %2818 = vrot.lane.b32.xlu0 %v4890_v43, %s5143_s17 }
0x1dc2   : > { %v4892_v33 = vpop.eup %4891 }
0x1dc3   : > { %v4894_v22 = vpop.eup %4893  ;;  %2824 = vrot.lane.b32.xlu1 %v4892_v33, %s5143_s17 }
0x1dc4   : > { %2822 = vrot.lane.b32.xlu0 %v4894_v22, %s5143_s17 }
0x1dc6   : > { %v4896_v21 = vpop.eup %4895 }
0x1dc7   : > { %2828 = vrot.lane.b32.xlu1 %v4896_v21, %s5143_s17 }
0x1dc8   : > { %v4898_v23 = vpop.eup %4897 }
0x1dc9   : > { %2826 = vrot.lane.b32.xlu0 %v4898_v23, %s5143_s17  ;;  %s6532_s17 = scalar_lea.vmem [#allocation11], %s3858_s22 }
0x1dca   : > { %s3768_s22 = sshll.u32 %s6532_s17, 4  ;;  %s6581_s22 = int_to_ptr.vmem [resolvable:$true] %s3768_s22 }
0x1dcb   : > { %s5063_s13 = scalar_lea.vmem %s6581_s22, 1024  ;;  %p5070_p4 = scmp.lt.s32.totalorder %s6581_s22, %s5068_s15 }
0x1dcc   : > { %p5064_p8 = scmp.ne.s32.totalorder %s6581_s22, %s5063_s13  ;;  %p5071_p0 = scmp.lt.s32.totalorder %s5069_s8, %s5063_s13 }
0x1dce   : > { %p5065_p10 = pnand %p5064_p8, %p6662_p9  ;;  %p5072_p5 = por %p5071_p0, %p5070_p4 }
0x1dd0   : > { %p5066_p1 = pneg %p5065_p10 }
0x1dd2   : > { %p5073_p11 = pnand %p5072_p5, %p5066_p1 }
0x1e2d   : > { %v2817_v47 = vpop.permute.xlu1 %2816 }
0x1e2e   : > { %v2839_v50 = vmul.f32 %v6233_v42, %v2817_v47  ;;  %v2815_v53 = vpop.permute.xlu0 %2814 }
0x1e2f   : > { %v2838_v26 = vmul.f32 %v6235_v4, %v2815_v53 }
0x1e30   : > { %2856 = vrot.lane.b32.xlu1 %v2839_v50, %s5144_s18  ;;  %v5145_v50 = vmov 0  }
0x1e31   : > { %v2821_v29 = vpop.permute.xlu1 %2820  ;;  %2854 = vrot.lane.b32.xlu0 %v2838_v26, %s5144_s18  ;;  %4577 = vset.pattern.permute.xlu1 %v5145_v50 }
0x1e32   : > { %v2841_v15 = vmul.f32 %v6238_v28, %v2821_v29  ;;  %v2819_v57 = vpop.permute.xlu0 %2818  ;;  %4578 = vset.pattern.permute.xlu0 %v5145_v50 }
0x1e33   : > { %v2840_v60 = vmul.f32 %v6241_v0, %v2819_v57 }
0x1e34   : > { %2860 = vrot.lane.b32.xlu1 %v2841_v15, %s5144_s18 }
0x1e35   : > { %2858 = vrot.lane.b32.xlu0 %v2840_v60, %s5144_s18  ;;  %v2825_v30 = vpop.permute.xlu1 %2824 }
0x1e36   : > { %v2843_v42 = vmul.f32 %v6249_v19, %v2825_v30  ;;  %v2823_v8 = vpop.permute.xlu0 %2822 }
0x1e37   : > { %v2842_v4 = vmul.f32 %v6251_v24, %v2823_v8 }
0x1e38   : > { %2864 = vrot.lane.b32.xlu1 %v2843_v42, %s5144_s18 }
0x1e39   : > { %2862 = vrot.lane.b32.xlu0 %v2842_v4, %s5144_s18  ;;  %v2829_v9 = vpop.permute.xlu1 %2828 }
0x1e3a   : > { %v2845_v28 = vmul.f32 %v6257_v44, %v2829_v9 }
0x1e3b   : > { %v2827_v56 = vpop.permute.xlu0 %2826 }
0x1e3c   : > { %v2844_v0 = vmul.f32 %v6259_v45, %v2827_v56  ;;  %2868 = vrot.lane.b32.xlu1 %v2845_v28, %s5144_s18 }
0x1e3e   : > { %2866 = vrot.lane.b32.xlu0 %v2844_v0, %s5144_s18  ;;  %s3985_s18 = sshll.u32 %s5209_s5, 7 }
0x1e3f   : > { %s6588_s5 = scalar_lea.hbm %s6642_s6, %s3985_s18 }
0x1ea2   : > { %v2857_v43 = vpop.permute.xlu1 %2856 }
0x1ea3   : > { %2879 = vst.msk [vmem:[#allocation4 + $0xc8] sm:$0xff] %vm305_vm1, %v2857_v43  ;;  %v2855_v19 = vpop.permute.xlu0 %2854 }
0x1ea4   : > { %2878 = vst.msk [vmem:[#allocation4 + $0xc0] sm:$0xff] %vm305_vm1, %v2855_v19 }
0x1ea6   : > { %v2861_v24 = vpop.permute.xlu1 %2860 }
0x1ea7   : > { %2881 = vst.msk [vmem:[#allocation4 + $0xd8] sm:$0xff] %vm305_vm1, %v2861_v24  ;;  %v2859_v1 = vpop.permute.xlu0 %2858 }
0x1ea8   : > { %2880 = vst.msk [vmem:[#allocation4 + $0xd0] sm:$0xff] %vm305_vm1, %v2859_v1 }
0x1eaa   : > { %v2865_v44 = vpop.permute.xlu1 %2864  ;;  %v6314_v55 = vld [vmem:[#allocation4 + $0xc8] sm:$0xff] }
0x1eab   : > { %v6309_v35 = vld [vmem:[#allocation4 + $0xc0] sm:$0xff]  ;;  %2883 = vst.msk [vmem:[#allocation4 + $0xe8] sm:$0xff] %vm305_vm1, %v2865_v44  ;;  %v2863_v45 = vpop.permute.xlu0 %2862 }
0x1eac   : > { %4388 = vmatprep.mubr.msk.f32.mxu1 %vm305_vm1, %v6309_v35  ;;  %2882 = vst.msk [vmem:[#allocation4 + $0xe0] sm:$0xff] %vm305_vm1, %v2863_v45 }
0x1ead   : > { %4389 = vmatmul.mubr.msk.f32.gmra.mrb[38].mxu1 %vm305_vm1, %v6314_v55 }
0x1eae   : > { %v6323_v3 = vld [vmem:[#allocation4 + $0xd8] sm:$0xff]  ;;  %v2869_v11 = vpop.permute.xlu1 %2868 }
0x1eaf   : > { %v6319_v33 = vld [vmem:[#allocation4 + $0xd0] sm:$0xff]  ;;  %2885 = vst.msk [vmem:[#allocation4 + $0xf8] sm:$0xff] %vm305_vm1, %v2869_v11 }
0x1eb0   : > { %4391 = vmatprep.mubr.msk.f32.mxu1 %vm305_vm1, %v6319_v33  ;;  %v2867_v21 = vpop.permute.xlu0 %2866 }
0x1eb1   : > { %4392 = vmatmul.mubr.msk.f32.gmra.mrb[40].mxu1 %vm305_vm1, %v6323_v3  ;;  %2884 = vst.msk [vmem:[#allocation4 + $0xf0] sm:$0xff] %vm305_vm1, %v2867_v21 }
0x1eb2   : > { %v6331_v22 = vld [vmem:[#allocation4 + $0xe8] sm:$0xff] }
0x1eb3   : > { %v6327_v2 = vld [vmem:[#allocation4 + $0xe0] sm:$0xff] }
0x1eb4   : > { %4394 = vmatprep.mubr.msk.f32.mxu1 %vm305_vm1, %v6327_v2 }
0x1eb5   : > { %4395 = vmatmul.mubr.msk.f32.gmra.mrb[42].mxu1 %vm305_vm1, %v6331_v22 }
0x1eb6   : > { %v6341_v47 = vld [vmem:[#allocation4 + $0xf8] sm:$0xff] }
0x1eb8   : > { %v6337_v23 = vld [vmem:[#allocation4 + $0xf0] sm:$0xff] }
0x1eb9   : > { %4397 = vmatprep.mubr.msk.f32.mxu1 %vm305_vm1, %v6337_v23 }
0x1eba   : > { %4398 = vmatmul.mubr.msk.f32.gmra.mrb[44].mxu1 %vm305_vm1, %v6341_v47 }
0x1f80   : > { %v4390_v53 = vpop.f32.mrb[38].mxu1 }
0x1f81   : > { %v3217_v26 = vadd.f32 %v4390_v53, %v6077_v36  ;;  %v3211_v29 = vpop.f32.mrb[39].mxu1 }
0x1f82   : > { %v3212_v15 = vadd.f32 %v6077_v36, %v3211_v29 }
0x1f83   : > { %v3263_v57 = vsel %vm3250_vm2, %v3217_v26, -inf }
0x1f84   : > { %v3264_v60 = vmax.f32 %v6205_v7, %v3263_v57  ;;  %v3256_v30 = vsel %vm3250_vm2, %v3212_v15, -inf  ;;  %v4393_v42 = vpop.f32.mrb[40].mxu1 }
0x1f85   : > { %v3257_v8 = vmax.f32 %v6211_v46, %v3256_v30  ;;  %v3227_v4 = vadd.f32 %v4393_v42, %v6077_v36  ;;  %v3221_v9 = vpop.f32.mrb[41].mxu1 }
0x1f86   : > { %v3308_v28 = vsub.f32 %v6138_v25, %v3264_v60  ;;  %v3316_v56 = vsub.f32 %v6158_v39, %v3264_v60  ;;  %v3324_v0 = vsub.f32 %v6153_v58, %v3264_v60  ;;  %v3332_v43 = vsub.f32 %v3217_v26, %v3264_v60 }
0x1f87   : > { %v3307_v19 = vsub.f32 %v6147_v62, %v3257_v8  ;;  %v3315_v24 = vsub.f32 %v6167_v27, %v3257_v8  ;;  %v3323_v7 = vsub.f32 %v6162_v14, %v3257_v8  ;;  %v3331_v1 = vsub.f32 %v3212_v15, %v3257_v8 }
0x1f88   : > { %v3341_v44 = vmul.f32 1.442695, %v3308_v28  ;;  %v3357_v45 = vmul.f32 1.442695, %v3316_v56  ;;  %v3373_v46 = vmul.f32 1.442695, %v3324_v0  ;;  %v3222_v11 = vadd.f32 %v6077_v36, %v3221_v9 }
0x1f89   : > { %v3389_v21 = vmul.f32 1.442695, %v3332_v43  ;;  %v3339_v25 = vmul.f32 1.442695, %v3307_v19  ;;  %v3355_v50 = vmul.f32 1.442695, %v3315_v24 }
0x1f8a   : > { %4899 = vpow2.f32 %v3341_v44  ;;  %v3277_v39 = vsel %vm3250_vm2, %v3227_v4, -inf  ;;  %v4396_v58 = vpop.f32.mrb[42].mxu1  ;;  %v3371_v53 = vmul.f32 1.442695, %v3323_v7  ;;  %v3270_v27 = vsel %vm3250_vm2, %v3222_v11, -inf }
0x1f8b   : > { %4901 = vpow2.f32 %v3357_v45  ;;  %v3278_v62 = vmax.f32 %v6221_v54, %v3277_v39  ;;  %v3231_v14 = vpop.f32.mrb[43].mxu1  ;;  %v3387_v26 = vmul.f32 1.442695, %v3331_v1  ;;  %v3271_v29 = vmax.f32 %v6223_v59, %v3270_v27 }
0x1f8c   : > { %4903 = vpow2.f32 %v3373_v46  ;;  %v3237_v15 = vadd.f32 %v4396_v58, %v6077_v36  ;;  %v6370_v59 = vadd.f32 %v6077_v36, %v3231_v14 }
0x1f8d   : > { %4905 = vpow2.f32 %v3389_v21  ;;  %v3310_v57 = vsub.f32 %v6174_v12, %v3278_v62  ;;  %v3318_v60 = vsub.f32 %v6194_v37, %v3278_v62  ;;  %v3326_v30 = vsub.f32 %v6191_v16, %v3278_v62  ;;  %v4399_v21 = vpop.f32.mrb[44].mxu1 }
0x1f8e   : > { %4907 = vpow2.f32 %v3339_v25  ;;  %v3334_v42 = vsub.f32 %v3227_v4, %v3278_v62  ;;  %v3309_v54 = vsub.f32 %v6183_v31, %v3271_v29  ;;  %v3317_v8 = vsub.f32 %v6203_v18, %v3271_v29  ;;  %v3241_v39 = vpop.f32.mrb[45].mxu1 }
0x1f8f   : > { %4909 = vpow2.f32 %v3355_v50  ;;  %v3345_v9 = vmul.f32 1.442695, %v3310_v57  ;;  %v3361_v28 = vmul.f32 1.442695, %v3318_v60  ;;  %v3377_v56 = vmul.f32 1.442695, %v3326_v30 }
0x1f90   : > { %4911 = vpow2.f32 %v3371_v53  ;;  %v3325_v12 = vsub.f32 %v6200_v38, %v3271_v29  ;;  %v3333_v0 = vsub.f32 %v3222_v11, %v3271_v29  ;;  %v3393_v37 = vmul.f32 1.442695, %v3334_v42 }
0x1f91   : > { %4913 = vpow2.f32 %v3387_v26  ;;  %v3291_v16 = vsel %vm3250_vm2, %v3237_v15, -inf  ;;  %v3343_v4 = vmul.f32 1.442695, %v3309_v54  ;;  %v3359_v31 = vmul.f32 1.442695, %v3317_v8 }
0x1f92   : > { %4915 = vpow2.f32 %v3345_v9  ;;  %v3292_v18 = vmax.f32 %v6133_v10, %v3291_v16  ;;  %v3375_v43 = vmul.f32 1.442695, %v3325_v12  ;;  %v3391_v19 = vmul.f32 1.442695, %v3333_v0 }
0x1f93   : > { %4917 = vpow2.f32 %v3361_v28  ;;  %v3284_v24 = vsel %vm3250_vm2, %v6370_v59, -inf }
0x1f94   : > { %v6377_v7 = vpop.eup %4899  ;;  %4919 = vpow2.f32 %v3377_v56  ;;  %v3312_v38 = vsub.f32 %v6091_v6, %v3292_v18  ;;  %v3320_v1 = vsub.f32 %v6081_v52, %v3292_v18  ;;  %v3328_v44 = vsub.f32 %v6088_v51, %v3292_v18 }
0x1f95   : > { %v6382_v45 = vpop.eup %4901  ;;  %v3410_v10 = vsel %vm3250_vm2, %v6377_v7, 0.0  ;;  %4921 = vpow2.f32 %v3393_v37  ;;  %v3336_v46 = vsub.f32 %v3237_v15, %v3292_v18  ;;  %v3285_v11 = vmax.f32 %v6142_v40, %v3284_v24 }
0x1f96   : > { %v6387_v25 = vpop.eup %4903  ;;  %v3411_v50 = vsel %vm3250_vm2, %v6382_v45, 0.0  ;;  %4923 = vpow2.f32 %v3343_v4  ;;  %v3349_v6 = vmul.f32 1.442695, %v3312_v38  ;;  %v3365_v52 = vmul.f32 1.442695, %v3320_v1 }
0x1f97   : > { %v6391_v51 = vpop.eup %4905  ;;  %v3412_v58 = vadd.f32 %v3411_v50, %v3410_v10  ;;  %v3413_v53 = vsel %vm3250_vm2, %v6387_v25, 0.0  ;;  %4925 = vpow2.f32 %v3359_v31  ;;  %v3381_v62 = vmul.f32 1.442695, %v3328_v44 }
0x1f98   : > { %v6395_v27 = vpop.eup %4907  ;;  %v3415_v40 = vsel %vm3250_vm2, %v6391_v51, 0.0  ;;  %4927 = vpow2.f32 %v3375_v43  ;;  %v3397_v14 = vmul.f32 1.442695, %v3336_v46  ;;  %v3311_v26 = vsub.f32 %v6097_v34, %v3285_v11 }
0x1f99   : > { %v6400_v29 = vpop.eup %4909  ;;  %v3414_v15 = vadd.f32 %v3413_v53, %v3412_v58  ;;  %v3403_v57 = vsel %vm3250_vm2, %v6395_v27, 0.0  ;;  %4929 = vpow2.f32 %v3391_v19  ;;  %v3319_v60 = vsub.f32 %v6085_v17, %v3285_v11 }
0x1f9a   : > { %v6405_v30 = vpop.eup %4911  ;;  %v3404_v42 = vsel %vm3250_vm2, %v6400_v29, 0.0  ;;  %4931 = vpow2.f32 %v3349_v6  ;;  %v3327_v54 = vsub.f32 %v6094_v49, %v3285_v11  ;;  %v3335_v8 = vsub.f32 %v6370_v59, %v3285_v11 }
0x1f9b   : > { %v6411_v34 = vpop.eup %4913  ;;  %v3416_v9 = vadd.f32 %v3415_v40, %v3414_v15  ;;  %v3405_v28 = vadd.f32 %v3404_v42, %v3403_v57  ;;  %4933 = vpow2.f32 %v3365_v52  ;;  %v3406_v17 = vsel %vm3250_vm2, %v6405_v30, 0.0 }
0x1f9c   : > { %v6413_v56 = vpop.eup %4915  ;;  %4935 = vpow2.f32 %v3381_v62  ;;  %v3347_v12 = vmul.f32 1.442695, %v3311_v26  ;;  %v3363_v0 = vmul.f32 1.442695, %v3319_v60  ;;  %v3408_v49 = vsel %vm3250_vm2, %v6411_v34, 0.0 }
0x1f9d   : > { %v6417_v37 = vpop.eup %4917  ;;  %4937 = vrcp.f32 %v3416_v9  ;;  %v3407_v16 = vadd.f32 %v3406_v17, %v3405_v28  ;;  %v3424_v59 = vsel %vm3250_vm2, %v6413_v56, 0.0  ;;  %v3379_v18 = vmul.f32 1.442695, %v3327_v54 }
0x1f9e   : > { %v6423_v4 = vpop.eup %4919  ;;  %v3425_v31 = vsel %vm3250_vm2, %v6417_v37, 0.0  ;;  %4939 = vpow2.f32 %v3397_v14  ;;  %v3247_v43 = vadd.f32 %v4399_v21, %v6077_v36  ;;  %v3395_v1 = vmul.f32 1.442695, %v3335_v8 }
0x1f9f   : > { %v6428_v19 = vpop.eup %4921  ;;  %v3409_v24 = vadd.f32 %v3408_v49, %v3407_v16  ;;  %v3426_v38 = vadd.f32 %v3425_v31, %v3424_v59  ;;  %4941 = vpow2.f32 %v3347_v12  ;;  %v3427_v10 = vsel %vm3250_vm2, %v6423_v4, 0.0 }
0x1fa0   : > { %v6430_v44 = vpop.eup %4923  ;;  %4943 = vpow2.f32 %v3363_v0  ;;  %v3305_v46 = vsel %vm3250_vm2, %v3247_v43, -inf  ;;  %v3242_v11 = vadd.f32 %v6077_v36, %v3241_v39  ;;  %v3429_v53 = vsel %vm3250_vm2, %v6428_v19, 0.0 }
0x1fa1   : > { %v6436_v50 = vpop.eup %4925  ;;  %4945 = vrcp.f32 %v3409_v24  ;;  %v3428_v21 = vadd.f32 %v3427_v10, %v3426_v38  ;;  %v3417_v6 = vsel %vm3250_vm2, %v6430_v44, 0.0  ;;  %v3306_v52 = vmax.f32 %v6169_v13, %v3305_v46 }
0x1fa2   : > { %v6441_v58 = vpop.eup %4927  ;;  %v3418_v62 = vsel %vm3250_vm2, %v6436_v50, 0.0  ;;  %4947 = vpow2.f32 %v3379_v18  ;;  %v3298_v36 = vsel %vm3250_vm2, %v3242_v11, -inf }
0x1fa3   : > { %v6448_v39 = vpop.eup %4929  ;;  %v3430_v40 = vadd.f32 %v3429_v53, %v3428_v21  ;;  %v3419_v14 = vadd.f32 %v3418_v62, %v3417_v6  ;;  %v3420_v26 = vsel %vm3250_vm2, %v6441_v58, 0.0  ;;  %4949 = vpow2.f32 %v3395_v1 }
0x1fa4   : > { %v6452_v13 = vpop.eup %4931  ;;  %v3422_v15 = vsel %vm3250_vm2, %v6448_v39, 0.0  ;;  %v3314_v57 = vsub.f32 %v6123_v20, %v3306_v52  ;;  %v3322_v60 = vsub.f32 %v6104_v41, %v3306_v52  ;;  %v3330_v42 = vsub.f32 %v6120_v32, %v3306_v52 }
0x1fa5   : > { %v6459_v54 = vpop.eup %4933  ;;  %4951 = vrcp.f32 %v3430_v40  ;;  %v3421_v8 = vadd.f32 %v3420_v26, %v3419_v14  ;;  %v3438_v9 = vsel %vm3250_vm2, %v6452_v13, 0.0  ;;  %v3338_v28 = vsub.f32 %v3247_v43, %v3306_v52 }
0x1fa6   : > { %v6463_v17 = vpop.eup %4935  ;;  %v3439_v12 = vsel %vm3250_vm2, %v6459_v54, 0.0  ;;  %v3353_v0 = vmul.f32 1.442695, %v3314_v57  ;;  %v3369_v16 = vmul.f32 1.442695, %v3322_v60  ;;  %v3299_v20 = vmax.f32 %v6178_v48, %v3298_v36 }
0x1fa7   : > { %v4938_v41 = vpop.eup %4937  ;;  %v3423_v49 = vadd.f32 %v3422_v15, %v3421_v8  ;;  %v3440_v32 = vadd.f32 %v3439_v12, %v3438_v9  ;;  %v3441_v59 = vsel %vm3250_vm2, %v6463_v17, 0.0  ;;  %v3385_v31 = vmul.f32 1.442695, %v3330_v42 }
0x1fa8   : > { %v6470_v18 = vpop.eup %4939  ;;  %4953 = vpow2.f32 %v3353_v0  ;;  %v3401_v43 = vmul.f32 1.442695, %v3338_v28  ;;  %v3313_v24 = vsub.f32 %v6131_v63, %v3299_v20  ;;  %v3321_v38 = vsub.f32 %v6113_v61, %v3299_v20 }
0x1fa9   : > { %v6474_v1 = vpop.eup %4941  ;;  %4955 = vrcp.f32 %v3423_v49  ;;  %v3442_v10 = vadd.f32 %v3441_v59, %v3440_v32  ;;  %v3443_v48 = vsel %vm3250_vm2, %v6470_v18, 0.0  ;;  %v3329_v46 = vsub.f32 %v6128_v5, %v3299_v20 }
0x1faa   : > { %v6479_v21 = vpop.eup %4943  ;;  %v3431_v6 = vsel %vm3250_vm2, %v6474_v1, 0.0  ;;  %4957 = vpow2.f32 %v3369_v16  ;;  %v3337_v52 = vsub.f32 %v3242_v11, %v3299_v20  ;;  %v3351_v53 = vmul.f32 1.442695, %v3313_v24 }
0x1fab   : > { %v4946_v63 = vpop.eup %4945  ;;  %v3444_v62 = vadd.f32 %v3443_v48, %v3442_v10  ;;  %v3432_v61 = vsel %vm3250_vm2, %v6479_v21, 0.0  ;;  %4959 = vpow2.f32 %v3385_v31  ;;  %v3367_v36 = vmul.f32 1.442695, %v3321_v38 }
0x1fac   : > { %v6485_v40 = vpop.eup %4947  ;;  %v3433_v14 = vadd.f32 %v3432_v61, %v3431_v6  ;;  %4961 = vpow2.f32 %v3401_v43  ;;  %v3383_v5 = vmul.f32 1.442695, %v3329_v46  ;;  %v3399_v26 = vmul.f32 1.442695, %v3337_v52 }
0x1fad   : > { %v6487_v15 = vpop.eup %4949  ;;  %4963 = vrcp.f32 %v3444_v62  ;;  %v3434_v11 = vsel %vm3250_vm2, %v6485_v40, 0.0  ;;  %v3476_v57 = vmul.f32 %v4938_v41, %v6382_v45  ;;  %v3462_v60 = vmul.f32 %v4938_v41, %v6377_v7 }
0x1fae   : > { %v3435_v42 = vadd.f32 %v3434_v11, %v3433_v14  ;;  %v3436_v8 = vsel %vm3250_vm2, %v6487_v15, 0.0  ;;  %4965 = vpow2.f32 %v3351_v53  ;;  %v3484_v9 = vmul.f32 %v4938_v41, %v6387_v25 }
0x1faf   : > { %v4952_v28 = vpop.eup %4951  ;;  %4967 = vpow2.f32 %v3367_v36  ;;  %3546 = vperm.xlu0 %4578, %v3476_v57   ;;  %3506 = vperm.xlu1 %4577, %v3462_v60   ;;  %v3475_v12 = vmul.f32 %v4946_v63, %v6400_v29  ;;  %v3492_v0 = vmul.f32 %v4938_v41, %v6391_v51  ;;  %v3483_v16 = vmul.f32 %v4946_v63, %v6405_v30 }
0x1fb0   : > { %v3437_v45 = vadd.f32 %v3436_v8, %v3435_v42  ;;  %4969 = vpow2.f32 %v3383_v5  ;;  %v3491_v7 = vmul.f32 %v4946_v63, %v6411_v34  ;;  %v3460_v20 = vmul.f32 %v4946_v63, %v6395_v27 }
0x1fb1   : > { %4971 = vpow2.f32 %v3399_v26  ;;  %v3466_v49 = vmul.f32 %v4952_v28, %v6413_v56  ;;  %v3478_v25 = vmul.f32 %v4952_v28, %v6417_v37  ;;  %v3486_v32 = vmul.f32 %v4952_v28, %v6423_v4 }
0x1fb2   : > { %v4954_v59 = vpop.eup %4953  ;;  %4973 = vrcp.f32 %v3437_v45  ;;  %v3494_v29 = vmul.f32 %v4952_v28, %v6428_v19  ;;  %v4981_v45 = vld [vmem:[#allocation4 + $0x8] sm:$0xff] }
0x1fb3   : > { %v4956_v51 = vpop.eup %4955  ;;  %v3452_v30 = vsel %vm3250_vm2, %v4954_v59, 0.0  ;;  %3586 = vperm.xlu0 %4578, %v3484_v9   ;;  %3541 = vperm.xlu1 %4577, %v3475_v12  }
0x1fb4   : > { %v4958_v41 = vpop.eup %4957  ;;  %v3464_v34 = vmul.f32 %v4956_v51, %v6430_v44  ;;  %v3477_v27 = vmul.f32 %v4956_v51, %v6436_v50  ;;  %v3485_v56 = vmul.f32 %v4956_v51, %v6441_v58  ;;  %v3493_v37 = vmul.f32 %v4956_v51, %v6448_v39  ;;  %v4983_v51 = vld [vmem:[#allocation4 + $0x88] sm:$0xff] }
0x1fb5   : > { %v4960_v31 = vpop.eup %4959  ;;  %v3453_v4 = vsel %vm3250_vm2, %v4958_v41, 0.0 }
0x1fb6   : > { %v4962_v43 = vpop.eup %4961  ;;  %v3454_v24 = vadd.f32 %v3453_v4, %v3452_v30  ;;  %v3455_v38 = vsel %vm3250_vm2, %v4960_v31, 0.0  ;;  %v4984_v4 = vld [vmem:[#allocation4 + $0x40] sm:$0xff] }
0x1fb7   : > { %v4964_v19 = vpop.eup %4963  ;;  %3626 = vperm.xlu0 %4578, %v3492_v0   ;;  %3581 = vperm.xlu1 %4577, %v3483_v16   ;;  %v3457_v39 = vsel %vm3250_vm2, %v4962_v43, 0.0 }
0x1fb8   : > { %v4966_v10 = vpop.eup %4965  ;;  %v3456_v48 = vadd.f32 %v3455_v38, %v3454_v24  ;;  %v3470_v44 = vmul.f32 %v4964_v19, %v6452_v13  ;;  %v3480_v50 = vmul.f32 %v4964_v19, %v6459_v54  ;;  %v3488_v58 = vmul.f32 %v4964_v19, %v6463_v17 }
0x1fb9   : > { %v4968_v46 = vpop.eup %4967  ;;  %v3445_v6 = vsel %vm3250_vm2, %v4966_v10, 0.0  ;;  %v3496_v52 = vmul.f32 %v4964_v19, %v6470_v18 }
0x1fba   : > { %v4970_v53 = vpop.eup %4969  ;;  %v3458_v63 = vadd.f32 %v3457_v39, %v3456_v48  ;;  %v3446_v62 = vsel %vm3250_vm2, %v4968_v46, 0.0  ;;  %v4985_v48 = vld [vmem:[#allocation4 + $0x80] sm:$0xff] }
0x1fbb   : > { %v4972_v61 = vpop.eup %4971  ;;  %v3447_v36 = vadd.f32 %v3446_v62, %v3445_v6  ;;  %3621 = vperm.xlu1 %4577, %v3491_v7   ;;  %3501 = vperm.xlu0 %4578, %v3460_v20   ;;  %v3448_v54 = vsel %vm3250_vm2, %v4970_v53, 0.0  ;;  %v4982_v20 = vld [vmem:[#allocation4 + $0x48] sm:$0xff] }
0x1fbc   : > { %v4974_v13 = vpop.eup %4973  ;;  %4975 = vrcp.f32 %v3458_v63  ;;  %v3450_v18 = vsel %vm3250_vm2, %v4972_v61, 0.0 }
0x1fbd   : > { %v3449_v17 = vadd.f32 %v3448_v54, %v3447_v36  ;;  %v3468_v14 = vmul.f32 %v4974_v13, %v6474_v1  ;;  %v3479_v5 = vmul.f32 %v4974_v13, %v6479_v21  ;;  %v3487_v26 = vmul.f32 %v4974_v13, %v6485_v40 }
0x1fbe   : > { %v3495_v11 = vmul.f32 %v4974_v13, %v6487_v15 }
0x1fbf   : > { %v3451_v57 = vadd.f32 %v3450_v18, %v3449_v17  ;;  %3516 = vperm.xlu0 %4578, %v3466_v49   ;;  %3511 = vperm.xlu1 %4577, %v3464_v34   ;;  %v4987_v17 = vld [vmem:[#allocation4 + $0x50] sm:$0xff] }
0x1fc1   : > { %4977 = vrcp.f32 %v3451_v57 }
0x1fc3   : > { %3556 = vperm.xlu0 %4578, %v3478_v25   ;;  %3551 = vperm.xlu1 %4577, %v3477_v27  }
0x1fc6   : > { %v4976_v60 = vpop.eup %4975 }
0x1fc7   : > { %3596 = vperm.xlu0 %4578, %v3486_v32   ;;  %3591 = vperm.xlu1 %4577, %v3485_v56   ;;  %v3474_v42 = vmul.f32 %v4976_v60, %v4954_v59  ;;  %v3482_v8 = vmul.f32 %v4976_v60, %v4958_v41  ;;  %v3490_v1 = vmul.f32 %v4976_v60, %v4960_v31 }
0x1fc8   : > { %v3498_v9 = vmul.f32 %v4976_v60, %v4962_v43 }
0x1fcb   : > { %v4978_v21 = vpop.eup %4977  ;;  %3636 = vperm.xlu0 %4578, %v3494_v29   ;;  %3631 = vperm.xlu1 %4577, %v3493_v37  }
0x1fcc   : > { %v3472_v40 = vmul.f32 %v4978_v21, %v4966_v10  ;;  %v3481_v28 = vmul.f32 %v4978_v21, %v4968_v46  ;;  %v3489_v12 = vmul.f32 %v4978_v21, %v4970_v53  ;;  %v3497_v15 = vmul.f32 %v4978_v21, %v4972_v61 }
0x1fcf   : > { %3526 = vperm.xlu0 %4578, %v3470_v44   ;;  %3521 = vperm.xlu1 %4577, %v3468_v14  }
0x1fd3   : > { %3566 = vperm.xlu0 %4578, %v3480_v50   ;;  %3561 = vperm.xlu1 %4577, %v3479_v5   ;;  %v4986_v50 = vld [vmem:[#allocation4] sm:$0xff]  ;;  %v4988_v5 = vld [vmem:[#allocation4 + $0x58] sm:$0xff] }
0x1fd7   : > { %3606 = vperm.xlu0 %4578, %v3488_v58   ;;  %3601 = vperm.xlu1 %4577, %v3487_v26  }
0x1fdb   : > { %3646 = vperm.xlu0 %4578, %v3496_v52   ;;  %3641 = vperm.xlu1 %4577, %v3495_v11   ;;  %v4990_v11 = vld [vmem:[#allocation4 + $0x18] sm:$0xff] }
0x1fdf   : > { %3536 = vperm.xlu0 %4578, %v3474_v42   ;;  %3531 = vperm.xlu1 %4577, %v3472_v40   ;;  %v4992_v40 = vld [vmem:[#allocation4 + $0x98] sm:$0xff] }
0x1fe3   : > { %3576 = vperm.xlu0 %4578, %v3482_v8   ;;  %3571 = vperm.xlu1 %4577, %v3481_v28  }
0x1fe7   : > { %3616 = vperm.xlu0 %4578, %v3490_v1   ;;  %3611 = vperm.xlu1 %4577, %v3489_v12  }
0x1feb   : > { %3656 = vperm.xlu0 %4578, %v3498_v9   ;;  %3651 = vperm.xlu1 %4577, %v3497_v15   ;;  %v4991_v9 = vld [vmem:[#allocation4 + $0x90] sm:$0xff] }
0x202e   : > { %v3507_v0 = vpop.permute.xlu1 %3506  ;;  %v3547_v16 = vpop.permute.xlu0 %3546 }
0x202f   : > { %v3660_v7 = vmul.f32 %v4981_v45, %v3507_v0  ;;  %v3668_v49 = vmul.f32 %v4982_v20, %v3547_v16 }
0x2031   : > { %v3698_v59 = vsel %vm305_vm1, %v3660_v7, 0.0  ;;  %v3699_v29 = vsel %vm305_vm1, %v3668_v49, 0.0 }
0x2032   : > { %v3542_v25 = vpop.permute.xlu1 %3541  ;;  %v3587_v32 = vpop.permute.xlu0 %3586  ;;  %v3700_v34 = vadd.f32 %v3699_v29, %v3698_v59 }
0x2033   : > { %v3676_v30 = vmul.f32 %v4983_v51, %v3587_v32  ;;  %v3667_v43 = vmul.f32 %v4984_v4, %v3542_v25  ;;  %v4993_v4 = vld [vmem:[#allocation4 + $0x60] sm:$0xff] }
0x2035   : > { %v3701_v41 = vsel %vm305_vm1, %v3676_v30, 0.0 }
0x2036   : > { %v3582_v27 = vpop.permute.xlu1 %3581  ;;  %v3627_v56 = vpop.permute.xlu0 %3626  ;;  %v3702_v31 = vadd.f32 %v3701_v41, %v3700_v34 }
0x2037   : > { %v3684_v37 = vmul.f32 %v3627_v56, %v6314_v55  ;;  %v3675_v44 = vmul.f32 %v4985_v48, %v3582_v27  ;;  %v3692_v55 = vsel %vm305_vm1, %v3667_v43, 0.0  ;;  %v4994_v43 = vld [vmem:[#allocation4 + $0x68] sm:$0xff] }
0x2039   : > { %v3703_v24 = vsel %vm305_vm1, %v3684_v37, 0.0  ;;  %v3694_v63 = vsel %vm305_vm1, %v3675_v44, 0.0 }
0x203a   : > { %v3704_v19 = vadd.f32 %v3703_v24, %v3702_v31  ;;  %v3622_v38 = vpop.permute.xlu1 %3621  ;;  %v3502_v10 = vpop.permute.xlu0 %3501  ;;  %v4995_v24 = vld [vmem:[#allocation4 + $0x20] sm:$0xff] }
0x203b   : > { %v3659_v58 = vmul.f32 %v4986_v50, %v3502_v10  ;;  %v3683_v46 = vmul.f32 %v3622_v38, %v6309_v35  ;;  %v4989_v35 = vld [vmem:[#allocation4 + $0x10] sm:$0xff]  ;;  %v4996_v38 = vld [vmem:[#allocation4 + $0x28] sm:$0xff] }
0x203c   : > { %3748 = vst.msk [vmem:[%s6532_s17 + $0x8] sm:$0xff] %vm305_vm1, %v3704_v19 }
0x203d   : > { %v3691_v39 = vsel %vm305_vm1, %v3659_v58, 0.0  ;;  %v3696_v61 = vsel %vm305_vm1, %v3683_v46, 0.0 }
0x203e   : > { %v3693_v6 = vadd.f32 %v3692_v55, %v3691_v39  ;;  %v3512_v52 = vpop.permute.xlu1 %3511  ;;  %v3517_v53 = vpop.permute.xlu0 %3516  ;;  %v4997_v55 = vld [vmem:[#allocation4 + $0xa0] sm:$0xff]  ;;  %v4998_v39 = vld [vmem:[#allocation4 + $0xa8] sm:$0xff] }
0x203f   : > { %v3661_v18 = vmul.f32 %v4989_v35, %v3512_v52  ;;  %v3662_v57 = vmul.f32 %v4990_v11, %v3517_v53 }
0x2040   : > { %v3695_v62 = vadd.f32 %v3694_v63, %v3693_v6 }
0x2041   : > { %v3705_v12 = vsel %vm305_vm1, %v3661_v18, 0.0  ;;  %v3712_v15 = vsel %vm305_vm1, %v3662_v57, 0.0 }
0x2042   : > { %v3697_v36 = vadd.f32 %v3696_v61, %v3695_v62  ;;  %v3552_v13 = vpop.permute.xlu1 %3551  ;;  %v3557_v54 = vpop.permute.xlu0 %3556 }
0x2043   : > { %v3669_v14 = vmul.f32 %v4987_v17, %v3552_v13  ;;  %v3670_v26 = vmul.f32 %v4988_v5, %v3557_v54 }
0x2044   : > { %3747 = vst.msk [vmem:[%s6532_s17] sm:$0xff] %vm305_vm1, %v3697_v36 }
0x2045   : > { %v3706_v8 = vsel %vm305_vm1, %v3669_v14, 0.0  ;;  %v3713_v1 = vsel %vm305_vm1, %v3670_v26, 0.0 }
0x2046   : > { %v3592_v60 = vpop.permute.xlu1 %3591  ;;  %v3597_v42 = vpop.permute.xlu0 %3596  ;;  %v3707_v45 = vadd.f32 %v3706_v8, %v3705_v12  ;;  %v3714_v7 = vadd.f32 %v3713_v1, %v3712_v15  ;;  %v5002_v12 = vld [vmem:[#allocation4 + $0x38] sm:$0xff] }
0x2047   : > { %v3677_v21 = vmul.f32 %v4991_v9, %v3592_v60  ;;  %v3678_v28 = vmul.f32 %v4992_v40, %v3597_v42  ;;  %v4999_v9 = vld [vmem:[#allocation4 + $0x70] sm:$0xff] }
0x2048   : > { %v5001_v40 = vld [vmem:[#allocation4 + $0x30] sm:$0xff] }
0x2049   : > { %v3708_v0 = vsel %vm305_vm1, %v3677_v21, 0.0  ;;  %v3715_v16 = vsel %vm305_vm1, %v3678_v28, 0.0 }
0x204a   : > { %v3632_v20 = vpop.permute.xlu1 %3631  ;;  %v3637_v49 = vpop.permute.xlu0 %3636  ;;  %v3709_v59 = vadd.f32 %v3708_v0, %v3707_v45  ;;  %v3716_v29 = vadd.f32 %v3715_v16, %v3714_v7 }
0x204b   : > { %v3685_v25 = vmul.f32 %v3632_v20, %v6319_v33  ;;  %v3686_v32 = vmul.f32 %v3637_v49, %v6323_v3  ;;  %v5003_v20 = vld [vmem:[#allocation4 + $0xb0] sm:$0xff] }
0x204d   : > { %v3710_v51 = vsel %vm305_vm1, %v3685_v25, 0.0  ;;  %v3717_v30 = vsel %vm305_vm1, %v3686_v32, 0.0  ;;  %v5004_v25 = vld [vmem:[#allocation4 + $0xb8] sm:$0xff] }
0x204e   : > { %v3711_v41 = vadd.f32 %v3710_v51, %v3709_v59  ;;  %v3718_v34 = vadd.f32 %v3717_v30, %v3716_v29  ;;  %v3522_v27 = vpop.permute.xlu1 %3521  ;;  %v3527_v56 = vpop.permute.xlu0 %3526 }
0x204f   : > { %v3663_v19 = vmul.f32 %v4995_v24, %v3522_v27  ;;  %v3664_v10 = vmul.f32 %v4996_v38, %v3527_v56 }
0x2050   : > { %3749 = vst.msk [vmem:[%s6532_s17 + $0x10] sm:$0xff] %vm305_vm1, %v3711_v41  ;;  %3750 = vst.msk [vmem:[%s6532_s17 + $0x18] sm:$0xff] %vm305_vm1, %v3718_v34 }
0x2051   : > { %v3719_v52 = vsel %vm305_vm1, %v3663_v19, 0.0  ;;  %v3726_v53 = vsel %vm305_vm1, %v3664_v10, 0.0 }
0x2052   : > { %v3562_v37 = vpop.permute.xlu1 %3561  ;;  %v3567_v31 = vpop.permute.xlu0 %3566 }
0x2053   : > { %v3671_v33 = vmul.f32 %v4993_v4, %v3562_v37  ;;  %v3672_v3 = vmul.f32 %v4994_v43, %v3567_v31 }
0x2055   : > { %v3720_v50 = vsel %vm305_vm1, %v3671_v33, 0.0  ;;  %v3727_v58 = vsel %vm305_vm1, %v3672_v3, 0.0 }
0x2056   : > { %v3602_v48 = vpop.permute.xlu1 %3601  ;;  %v3607_v44 = vpop.permute.xlu0 %3606  ;;  %v3721_v61 = vadd.f32 %v3720_v50, %v3719_v52  ;;  %v3728_v36 = vadd.f32 %v3727_v58, %v3726_v53 }
0x2057   : > { %v3679_v46 = vmul.f32 %v4997_v55, %v3602_v48  ;;  %v3680_v6 = vmul.f32 %v4998_v39, %v3607_v44 }
0x2059   : > { %v3722_v63 = vsel %vm305_vm1, %v3679_v46, 0.0  ;;  %v3729_v62 = vsel %vm305_vm1, %v3680_v6, 0.0 }
0x205a   : > { %v3642_v13 = vpop.permute.xlu1 %3641  ;;  %v3647_v54 = vpop.permute.xlu0 %3646  ;;  %v3723_v5 = vadd.f32 %v3722_v63, %v3721_v61  ;;  %v3730_v26 = vadd.f32 %v3729_v62, %v3728_v36 }
0x205b   : > { %v3687_v17 = vmul.f32 %v3642_v13, %v6327_v2  ;;  %v3688_v14 = vmul.f32 %v3647_v54, %v6331_v22  ;;  %v5000_v22 = vld [vmem:[#allocation4 + $0x78] sm:$0xff] }
0x205d   : > { %v3724_v35 = vsel %vm305_vm1, %v3687_v17, 0.0  ;;  %v3731_v18 = vsel %vm305_vm1, %v3688_v14, 0.0 }
0x205e   : > { %v3725_v11 = vadd.f32 %v3724_v35, %v3723_v5  ;;  %v3732_v57 = vadd.f32 %v3731_v18, %v3730_v26  ;;  %v3532_v60 = vpop.permute.xlu1 %3531  ;;  %v3537_v42 = vpop.permute.xlu0 %3536 }
0x205f   : > { %v3665_v28 = vmul.f32 %v5001_v40, %v3532_v60  ;;  %v3666_v15 = vmul.f32 %v5002_v12, %v3537_v42 }
0x2060   : > { %3751 = vst.msk [vmem:[%s6532_s17 + $0x20] sm:$0xff] %vm305_vm1, %v3725_v11  ;;  %3752 = vst.msk [vmem:[%s6532_s17 + $0x28] sm:$0xff] %vm305_vm1, %v3732_v57 }
0x2061   : > { %v3733_v59 = vsel %vm305_vm1, %v3665_v28, 0.0  ;;  %v3740_v29 = vsel %vm305_vm1, %v3666_v15, 0.0 }
0x2062   : > { %v3572_v8 = vpop.permute.xlu1 %3571  ;;  %v3577_v1 = vpop.permute.xlu0 %3576 }
0x2063   : > { %v3673_v2 = vmul.f32 %v4999_v9, %v3572_v8  ;;  %v3674_v21 = vmul.f32 %v5000_v22, %v3577_v1 }
0x2065   : > { %v3734_v45 = vsel %vm305_vm1, %v3673_v2, 0.0  ;;  %v3741_v7 = vsel %vm305_vm1, %v3674_v21, 0.0 }
0x2066   : > { %v3612_v0 = vpop.permute.xlu1 %3611  ;;  %v3617_v16 = vpop.permute.xlu0 %3616  ;;  %v3735_v41 = vadd.f32 %v3734_v45, %v3733_v59  ;;  %v3742_v34 = vadd.f32 %v3741_v7, %v3740_v29 }
0x2067   : > { %v3681_v49 = vmul.f32 %v5003_v20, %v3612_v0  ;;  %v3682_v32 = vmul.f32 %v5004_v25, %v3617_v16 }
0x2069   : > { %v3736_v51 = vsel %vm305_vm1, %v3681_v49, 0.0  ;;  %v3743_v30 = vsel %vm305_vm1, %v3682_v32, 0.0 }
0x206a   : > { %v3652_v27 = vpop.permute.xlu1 %3651  ;;  %v3657_v56 = vpop.permute.xlu0 %3656  ;;  %v3737_v4 = vadd.f32 %v3736_v51, %v3735_v41  ;;  %v3744_v33 = vadd.f32 %v3743_v30, %v3742_v34 }
0x206b   : > { %v3689_v37 = vmul.f32 %v3652_v27, %v6337_v23  ;;  %v3690_v31 = vmul.f32 %v3657_v56, %v6341_v47 }
0x206d   : > { %v3738_v43 = vsel %vm305_vm1, %v3689_v37, 0.0  ;;  %v3745_v3 = vsel %vm305_vm1, %v3690_v31, 0.0 }
0x206e   : > { %v3739_v24 = vadd.f32 %v3738_v43, %v3737_v4  ;;  %v3746_v23 = vadd.f32 %v3745_v3, %v3744_v33 }
0x2070   : > { %3753 = vst.msk [vmem:[%s6532_s17 + $0x30] sm:$0xff] %vm305_vm1, %v3739_v24  ;;  %3754 = vst.msk [vmem:[%s6532_s17 + $0x38] sm:$0xff] %vm305_vm1, %v3746_v23 }
0x2071   : > { %5076 = shalt.err (!%p5073_p11)
}
0x2072   : > { %s5077_s29 = scalar_lea.hbm %s6588_s5, 1024  ;;  %s5081_s14 = scalar_lea.hbm %s6642_s6, 2048 }
0x2073   : > { %p5078_p13 = scmp.ne.s32.totalorder %s6588_s5, %s5077_s29  ;;  %p5082_p12 = scmp.lt.u32.totalorder %s6588_s5, %s6642_s6 }
0x2074   : > { %p5083_p3 = scmp.lt.u32.totalorder %s5081_s14, %s5077_s29  ;;  %p5085_p8 = scmp.lt.u32.totalorder %s5077_s29, %s6588_s5 }
0x2075   : > { %p5079_p2 = pnand %p5078_p13, %p6662_p9 }
0x2076   : > { %p5084_p7 = por %p5083_p3, %p5082_p12 }
0x2077   : > { %p5080_p6 = pneg %p5079_p2 }
0x2078   : > { %p5086_p10 = por %p5085_p8, %p5084_p7 }
0x207a   : > { %p5087_p1 = pnand %p5086_p10, %p5080_p6 }
0x207c   : > { %5090 = shalt.err (!%p5087_p1)
}
0x207d   : > { %s5147_s18 = smov 128   ;;  %s5148_s27 = smov 256  }
0x207e   : > { %s5149_s19 = smov 8  }
0x207f   : > { %4514 = dma.vmem_to_hbm [thread:$0]  (%p6662_p9), %s6581_s22, 1024, %s6588_s5, %s3756_s12, %s5147_s18, %s5148_s27, %s5149_s19  }
0x2080 PF: > { %s3783_s13 = sand.u32 1, %s5121_s23   ;;  %p6663_p4 = scmp.ne.s32.totalorder %s6651_s11, 0 }
0x2081   : > { %p6664_p0 = scmp.ge.s32.totalorder %s5133_s26, 2  ;;  %s3784_s9 = scalar_lea.sflag [#allocation8], %s3783_s13 }
0x2083   : > { %p4525_p5 = pnand %p6664_p0, %p6663_p4 }
0x2085   : > { %5116 = dma.done.wait (!%p4525_p5), %s3784_s9, 1024  }
0x2086   : > { %5118 = vsyncadd (!%p4525_p5), %s3784_s9, 4294966272  ;;  %p22_p11 = scmp.ge.s32.totalorder %s5213_s28, 4   ;;  %s6665_s23 = smov %s5125_s24 }
0x2087   : > { %s6666_s24 = smov %s5129_s25  ;;  %s6667_s25 = smov %s5225_s7 }
0x2088   : > { %s6668_s26 = smov %s5213_s28  ;;  %24 = sbr.rel (!%p22_p11) target bundleno = 9 (0x9), region = 93 }
0x208f   :  { %3789 = vsyncpa [#allocation7], 1 }
0x2090   :  { %3791 = vsyncpa [#allocation7 + $0x1], 1 }
0x2091   :  { %3792 = vsyncpa [#allocation10], 1 }
0x2092   :  { %3793 = vsyncpa [#allocation8], 1 }
0x2093   :  { %3795 = vsyncpa [#allocation8 + $0x1], 1 }

</bundles_post_ra>
